<compile_context>
chip_gen: v6e
topology: v6e:2x2x1
jax: 0.10.0
libtpu: 0.0.40
codegen_flags: <defaults>
</compile_context>

<pallas_src>
import functools
import math

import jax
import jax.numpy as jnp
import numpy as np
from jax.experimental import pallas as pl
from jax.experimental.pallas import tpu as pltpu


def _round_up(x, m):
    return ((x + m - 1) // m) * m


# ---------------------------------------------------------------------------
# Pallas kernel 1: conv-as-matmul with voxels on the lane axis
#   outT(Cout, Nvox) = act( W(Cout, K) @ patchesT(K, Nvox) + bias[:, None] )
# ---------------------------------------------------------------------------
def _conv_mm_kernel(w_ref, x_ref, b_ref, o_ref, *, activation):
    acc = jnp.dot(w_ref[...], x_ref[...], preferred_element_type=jnp.float32)
    acc = acc + b_ref[...]                          # (Cp,1) lane-broadcast, f32
    if activation == "leaky_relu":
        acc = jnp.where(acc >= 0, acc, 0.01 * acc)  # nn.LeakyReLU default slope
    o_ref[...] = acc.astype(o_ref.dtype)


def pallas_conv_matmul(w, x, bias, activation=None):
    """outT = act(w @ x + bias[:,None]); w:(Cout,K), x:(K,Nvox), bias:(Cout,)."""
    Cout, K = w.shape
    K2, Nvox = x.shape
    assert K == K2
    Cp = _round_up(Cout, 8)              # sublane pad only (8), not 128
    Kp = _round_up(K, 16)                # bf16 sublane packing; zero-pad is exact
    tn = next((c for c in (512, 256, 128) if Nvox % c == 0), 128)
    Nvp = _round_up(Nvox, tn)

    w_p = jnp.pad(w.astype(jnp.bfloat16), ((0, Cp - Cout), (0, Kp - K)))
    x_p = jnp.pad(x.astype(jnp.bfloat16), ((0, Kp - K), (0, Nvp - Nvox)))
    b_p = jnp.pad(bias.astype(jnp.float32).reshape(Cout, 1),
                  ((0, Cp - Cout), (0, 0)))

    kernel = functools.partial(_conv_mm_kernel, activation=activation)
    out = pl.pallas_call(
        kernel,
        out_shape=jax.ShapeDtypeStruct((Cp, Nvp), jnp.float32),
        grid_spec=pltpu.PrefetchScalarGridSpec(
            num_scalar_prefetch=0,
            grid=(Nvp // tn,),
            in_specs=[
                pl.BlockSpec((Cp, Kp), lambda j: (0, 0)),   # weights, resident
                pl.BlockSpec((Kp, tn), lambda j: (0, j)),   # patches tile
                pl.BlockSpec((Cp, 1), lambda j: (0, 0)),    # bias column
            ],
            out_specs=pl.BlockSpec((Cp, tn), lambda j: (0, j)),
        ),
        compiler_params=pltpu.CompilerParams(
            dimension_semantics=("parallel",)),
    )(w_p, x_p, b_p)
    if Cp != Cout or Nvp != Nvox:
        out = out[:Cout, :Nvox]
    return out


# ---------------------------------------------------------------------------
# Pallas kernels 2/3: lane-dense element-wise kernels
# ---------------------------------------------------------------------------
def _lane_dense_2d(x):
    n = x.size
    if n % 128 == 0:
        return x.reshape(-1, 128)
    return x.reshape(-1, x.shape[-1])


def _affine_norm_kernel(s_ref, x_ref, o_ref):
    # o = x * scale + offset ; scale/offset live in SMEM
    o_ref[...] = x_ref[...] * s_ref[0] + s_ref[1]


def pallas_affine_norm(x, scale, offset):
    shape = x.shape
    x2 = _lane_dense_2d(x.astype(jnp.float32))
    s = jnp.stack([scale, offset]).astype(jnp.float32)
    out = pl.pallas_call(
        _affine_norm_kernel,
        out_shape=jax.ShapeDtypeStruct(x2.shape, jnp.float32),
        grid=(1,),
        in_specs=[pl.BlockSpec(memory_space=pltpu.MemorySpace.SMEM),
                  pl.BlockSpec(x2.shape, lambda i: (0, 0))],
        out_specs=pl.BlockSpec(x2.shape, lambda i: (0, 0)),
    )(s, x2)
    return out.reshape(shape)


def _mask_relabel_kernel(flag_ref, m_ref, keep_ref, o_ref):
    m = m_ref[...]
    m = jnp.where(m == 254.0, 255.0, m)                      # ms[ms == 254] = 255
    do253 = flag_ref[0] != 0
    m = jnp.where(jnp.logical_and(do253, m == 253.0), 255.0, m)
    # ignore_boundary: non-interior voxels with label 1 -> 255
    boundary_fg = jnp.logical_and(keep_ref[...] == 0.0, m == 1.0)
    o_ref[...] = jnp.where(boundary_fg, 255.0, m)


def pallas_mask_relabel(mask, keep, relabel_253):
    """254 -> 255 always; 253 -> 255 iff relabel_253; then ignore_boundary."""
    shape = mask.shape
    m2 = _lane_dense_2d(mask.astype(jnp.float32))
    k2 = _lane_dense_2d(keep.astype(jnp.float32))
    flag = jnp.array([1 if relabel_253 else 0], jnp.int32)
    out = pl.pallas_call(
        _mask_relabel_kernel,
        out_shape=jax.ShapeDtypeStruct(m2.shape, jnp.float32),
        grid=(1,),
        in_specs=[pl.BlockSpec(memory_space=pltpu.MemorySpace.SMEM),
                  pl.BlockSpec(m2.shape, lambda i: (0, 0)),
                  pl.BlockSpec(k2.shape, lambda i: (0, 0))],
        out_specs=pl.BlockSpec(m2.shape, lambda i: (0, 0)),
    )(flag, m2, k2)
    return out.reshape(shape)


# ---------------------------------------------------------------------------
# Pallas kernel 4: trilinear weighting + out-of-FOV embedding blend
#   g: (8*C, P) gathered corner features, w: (8, P) effective corner weights
#   (validity already folded in), emb: (C, 1).
#   sampled = sum_k w[k] * g[k];  in_fov = sum_k w[k]  (== grid_sample of ones)
#   out = emb * (1 - in_fov) + in_fov * sampled
# ---------------------------------------------------------------------------
def _trilerp_blend_kernel(g_ref, w_ref, e_ref, o_ref, *, C):
    w = w_ref[...]                                        # (8, tn)
    acc = w[0:1, :] * g_ref[0:C, :]
    for k in range(1, 8):
        acc = acc + w[k:k + 1, :] * g_ref[k * C:(k + 1) * C, :]
    in_fov = jnp.sum(w, axis=0, keepdims=True)            # (1, tn)
    o_ref[...] = e_ref[...] * (1.0 - in_fov) + in_fov * acc


def pallas_trilerp_blend(g, w, emb):
    """g:(8*C, P), w:(8, P), emb:(C, 1) -> (C, P)."""
    C = emb.shape[0]
    P = g.shape[1]
    tn = next((c for c in (512, 256, 128) if P % c == 0), None)
    if tn is None:
        tn = 128
        Pp = _round_up(P, 128)
        g = jnp.pad(g, ((0, 0), (0, Pp - P)))
        w = jnp.pad(w, ((0, 0), (0, Pp - P)))
    Pp = g.shape[1]
    kernel = functools.partial(_trilerp_blend_kernel, C=C)
    out = pl.pallas_call(
        kernel,
        out_shape=jax.ShapeDtypeStruct((C, Pp), jnp.float32),
        grid_spec=pltpu.PrefetchScalarGridSpec(
            num_scalar_prefetch=0,
            grid=(Pp // tn,),
            in_specs=[
                pl.BlockSpec((8 * C, tn), lambda j: (0, j)),
                pl.BlockSpec((8, tn), lambda j: (0, j)),
                pl.BlockSpec((C, 1), lambda j: (0, 0)),
            ],
            out_specs=pl.BlockSpec((C, tn), lambda j: (0, j)),
        ),
        compiler_params=pltpu.CompilerParams(
            dimension_semantics=("parallel",)),
    )(g.astype(jnp.float32), w.astype(jnp.float32), emb.astype(jnp.float32))
    return out[:, :P] if Pp != P else out


# ---------------------------------------------------------------------------
# Conv3d via im2col + transposed Pallas matmul
# ---------------------------------------------------------------------------
def conv3d(x, w, b, stride, padding, activation="leaky_relu"):
    """x: (N, Cin, D, H, W); w: (Cout, Cin, kd, kh, kw); b: (Cout,)."""
    N, Cin, D, H, W = x.shape
    Cout, Cin2, kd, kh, kw = w.shape
    assert Cin == Cin2
    sd, sh, sw = stride
    pd, ph, pw = padding
    xp = jnp.pad(x, ((0, 0), (0, 0), (pd, pd), (ph, ph), (pw, pw)))
    Do = (D + 2 * pd - kd) // sd + 1
    Ho = (H + 2 * ph - kh) // sh + 1
    Wo = (W + 2 * pw - kw) // sw + 1
    patches = []
    for iz in range(kd):
        for iy in range(kh):
            for ix in range(kw):
                patches.append(
                    xp[:, :,
                       iz:iz + (Do - 1) * sd + 1:sd,
                       iy:iy + (Ho - 1) * sh + 1:sh,
                       ix:ix + (Wo - 1) * sw + 1:sw])
    Kk = kd * kh * kw
    p = jnp.stack(patches, axis=2)                               # (N,Cin,Kk,Do,Ho,Wo)
    pT = p.transpose(1, 2, 0, 3, 4, 5).reshape(Cin * Kk, N * Do * Ho * Wo)
    wmat = w.reshape(Cout, Cin * Kk)                             # (Cout, K)
    outT = pallas_conv_matmul(wmat, pT, b, activation=activation)  # (Cout, Nvox)
    return outT.reshape(Cout, N, Do, Ho, Wo).transpose(1, 0, 2, 3, 4)


def upsample_nearest(x, factors):
    for ax, f in zip((2, 3, 4), factors):
        if f > 1:
            x = jnp.repeat(x, f, axis=ax)
    return x


# ---------------------------------------------------------------------------
# FeatureRegistration  (affine_grid + grid_sample, bilinear, align_corners=True)
# ---------------------------------------------------------------------------
def _transform_affine_to_feature(affine, feat_shape, spatial_dim):
    scale_f = [c / r for c, r in zip(spatial_dim, feat_shape)]
    T = jnp.diag(jnp.array(list(scale_f[::-1]) + [1.0], dtype=jnp.float32))
    return affine @ T


def _t_natural_to_torch(feat_shape):
    T = np.eye(4, dtype=np.float32)
    for i, dim in enumerate(feat_shape[::-1]):
        if dim == 1:
            T[i, :] = 0.0
        else:
            T[i, i] = 2.0 / (dim - 1)
            T[i, -1] = -1.0
    return jnp.asarray(T)


def _t_torch_to_natural(feat_shape):
    T = np.eye(4, dtype=np.float32)
    for i, dim in enumerate(feat_shape[::-1]):
        T[i, i] = (dim - 1) / 2.0
        T[i, -1] = (dim - 1) / 2.0
    return jnp.asarray(T)


def _affine_grid(theta, out_shape):
    """theta: (N,3,4); returns (N, D*H*W, 3) normalized xyz (align_corners=True)."""
    D, H, W = out_shape
    xs = jnp.linspace(-1.0, 1.0, W)
    ys = jnp.linspace(-1.0, 1.0, H)
    zs = jnp.linspace(-1.0, 1.0, D)
    zz, yy, xx = jnp.meshgrid(zs, ys, xs, indexing="ij")
    base = jnp.stack([xx, yy, zz, jnp.ones_like(xx)], axis=-1).reshape(-1, 4)
    return jnp.einsum("nrc,pc->npr", theta, base)


def feature_registration(feats1, affine1, feats2, affine2, t_orig, spatial_orig,
                         out_fov_embedding):
    """Port of FeatureRegistration.forward (use_out_embedding=True, align_corners=True).

    Matches F.grid_sample(mode='bilinear', align_corners=True, padding_mode='zeros').
    Both batch samples are processed in a single Pallas blend kernel.
    """
    N, C = feats2.shape[:2]
    f1_shape = feats1.shape[-3:]
    f2_shape = feats2.shape[-3:]
    aff1 = _transform_affine_to_feature(affine1.astype(jnp.float32), f1_shape,
                                        (t_orig,) + tuple(spatial_orig))
    aff2 = _transform_affine_to_feature(affine2.astype(jnp.float32), f2_shape,
                                        (t_orig,) + tuple(spatial_orig))
    theta = (_t_natural_to_torch(f2_shape) @ jnp.linalg.inv(aff2)
             @ aff1 @ _t_torch_to_natural(f1_shape))[:, :3]          # (N,3,4)

    D1, H1, W1 = f1_shape
    D2, H2, W2 = f2_shape
    P = D1 * H1 * W1
    S2 = D2 * H2 * W2

    grid = _affine_grid(theta, f1_shape)                             # (N, P, 3)
    ix = (grid[..., 0] + 1.0) * 0.5 * (W2 - 1)
    iy = (grid[..., 1] + 1.0) * 0.5 * (H2 - 1)
    iz = (grid[..., 2] + 1.0) * 0.5 * (D2 - 1)
    x0, y0, z0 = jnp.floor(ix), jnp.floor(iy), jnp.floor(iz)
    fx, fy, fz = ix - x0, iy - y0, iz - z0

    idx_list, w_list = [], []
    for dz in (0, 1):
        for dy in (0, 1):
            for dx in (0, 1):
                xi, yi, zi = x0 + dx, y0 + dy, z0 + dz
                wgt = ((fx if dx else 1.0 - fx) *
                       (fy if dy else 1.0 - fy) *
                       (fz if dz else 1.0 - fz))
                valid = ((xi >= 0) & (xi <= W2 - 1) &
                         (yi >= 0) & (yi <= H2 - 1) &
                         (zi >= 0) & (zi <= D2 - 1))
                xi_c = jnp.clip(xi, 0, W2 - 1).astype(jnp.int32)
                yi_c = jnp.clip(yi, 0, H2 - 1).astype(jnp.int32)
                zi_c = jnp.clip(zi, 0, D2 - 1).astype(jnp.int32)
                idx_list.append((zi_c * H2 + yi_c) * W2 + xi_c)      # (N, P)
                w_list.append(jnp.where(valid, wgt, 0.0))            # (N, P)
    idx = jnp.stack(idx_list, axis=0)                                # (8, N, P)
    wts = jnp.stack(w_list, axis=0)                                  # (8, N, P)

    feats2_flat = feats2.reshape(N, C, S2).astype(jnp.float32)

    # TODO(synk): the data-dependent 8-corner gather stays in XLA (no rectangular
    # BlockSpec expresses it); per-sample gather avoids an 8x broadcast copy.
    def gather_one(f2n, idxn):                                       # (C,S2),(8,P)
        return jnp.take(f2n, idxn.reshape(-1), axis=1).reshape(C, 8, P)
    gathered = jax.vmap(gather_one)(feats2_flat,
                                    jnp.transpose(idx, (1, 0, 2)))   # (N,C,8,P)

    g = gathered.transpose(2, 1, 0, 3).reshape(8 * C, N * P)         # corner-major
    w = wts.reshape(8, N * P)
    emb = out_fov_embedding[0].reshape(C, 1).astype(jnp.float32)
    out = pallas_trilerp_blend(g, w, emb)                            # (C, N*P)
    return out.reshape(C, N, D1, H1, W1).transpose(1, 0, 2, 3, 4)


# ---------------------------------------------------------------------------
# DualViewSegNet (eval forward)
# ---------------------------------------------------------------------------
def _init_conv(key, cout, cin, kd, kh, kw):
    kw_, kb_ = jax.random.split(key)
    fan_in = cin * kd * kh * kw
    w = jax.random.normal(kw_, (cout, cin, kd, kh, kw), jnp.float32) / math.sqrt(fan_in)
    b = 0.01 * jax.random.normal(kb_, (cout,), jnp.float32)
    return w, b


class DualViewSegNetPallas:
    # TODO(synk): DualViewUNet inherits an unspecified nnU-Net-style base class;
    # a representative 3-level encoder/decoder using the stated (1,3,3)/(3,3,3)
    # kernel + stride pattern is implemented here.
    def __init__(self, num_classes, crop_size=(4, 16, 16), resize_dim=(4, 16, 16),
                 aux_seg=True, lower=0.0, upper=99.75, b_min=0.0, b_max=1.0, seed=0):
        self.num_classes = num_classes
        self.crop_size = tuple(crop_size)
        self.resize_dim = tuple(resize_dim)
        self.aux_seg = aux_seg
        self.lower, self.upper, self.b_min, self.b_max = lower, upper, b_min, b_max
        self.filters = [8, 16, 32]
        self.t_orig = self.crop_size[0]
        self.spatial_orig = self.crop_size[1:]

        keys = jax.random.split(jax.random.PRNGKey(seed), 13)
        f, nc = self.filters, num_classes
        self.enc0 = _init_conv(keys[0], f[0], 1, 1, 3, 3)
        self.enc1 = _init_conv(keys[1], f[1], f[0], 1, 3, 3)
        self.enc2 = _init_conv(keys[2], f[2], f[1], 3, 3, 3)
        self.fuse0 = _init_conv(keys[3], f[0], 2 * f[0], 1, 1, 1)
        self.fuse1 = _init_conv(keys[4], f[1], 2 * f[1], 1, 1, 1)
        self.dec1 = _init_conv(keys[5], f[1], f[2] + f[1], 1, 3, 3)
        self.dec0 = _init_conv(keys[6], f[0], f[1] + f[0], 1, 3, 3)
        self.out_block = _init_conv(keys[7], nc, f[0], 1, 1, 1)
        self.dec1_aux = _init_conv(keys[8], f[1], f[2] + f[1], 1, 3, 3)
        self.dec0_aux = _init_conv(keys[9], f[0], f[1] + f[0], 1, 3, 3)
        self.out_block_aux = _init_conv(keys[10], nc, f[0], 1, 1, 1)
        self.emb0 = 0.1 * jax.random.normal(keys[11], (1, f[0]), jnp.float32)
        self.emb1 = 0.1 * jax.random.normal(keys[12], (1, f[1]), jnp.float32)

        # Compile the whole forward (all pallas_calls + XLA glue) as one program.
        self._jit_forward = jax.jit(self._forward_arrays)

    # ---- preprocessing (eval mode: no flip; crop/resize is identity) ----
    def _norm(self, x):
        # TODO(synk): torch.quantile's global sort stays in JAX glue; the affine
        # rescale runs in a Pallas element-wise kernel.
        q = jnp.quantile(x, jnp.array([self.lower / 100.0, self.upper / 100.0],
                                      jnp.float32))
        lo, hi = q[0], q[1]
        scale = (self.b_max - self.b_min) / (hi - lo)
        offset = self.b_min - lo * scale
        return pallas_affine_norm(x, scale, offset)

    @staticmethod
    def _interior_mask(shape):
        # matches ignore_boundary's [:, 2:-2, 16:-16, 16:-16] interior region
        keep = np.zeros(shape, np.float32)
        keep[:, 2:-2, 16:-16, 16:-16] = 1.0
        return jnp.asarray(keep)

    def _decode_input(self, im1, ms1, aff1, im2, ms2, aff2):
        assert im1.shape[-3:] == self.crop_size  # RandomCropResizeWithAffine -> identity
        im1 = self._norm(im1)
        im2 = self._norm(im2)
        keep = self._interior_mask(ms1.shape)
        ms1 = pallas_mask_relabel(ms1, keep, relabel_253=True)   # eval: 253,254 -> 255
        ms2 = pallas_mask_relabel(ms2, keep, relabel_253=False)  # eval: 254 -> 255
        return im1[:, None], ms1, aff1, im2[:, None], ms2, aff2

    # ---- DualViewUNet ----
    def _encoders(self, im):
        e0 = conv3d(im, *self.enc0, stride=(1, 1, 1), padding=(0, 1, 1))
        e1 = conv3d(e0, *self.enc1, stride=(1, 2, 2), padding=(0, 1, 1))
        bott = conv3d(e1, *self.enc2, stride=(2, 2, 2), padding=(1, 1, 1))
        return bott, [e0, e1]

    def _fusion(self, enc1, aff1, enc2, aff2):
        fused = []
        for e1, e2, emb, fuse in zip(enc1, enc2, (self.emb0, self.emb1),
                                     (self.fuse0, self.fuse1)):
            e2_align = feature_registration(e1, aff1, e2, aff2,
                                            self.t_orig, self.spatial_orig, emb)
            cat = jnp.concatenate([e1, e2_align], axis=1)
            fused.append(conv3d(cat, *fuse, stride=(1, 1, 1), padding=(0, 0, 0)))
        return fused

    def _decoders(self, out, skips, dec_params):
        # TODO(synk): upsample/concat are cheap XLA reshapes feeding the next
        # Pallas conv matmul (not folded into its index_map).
        dec1, dec0 = dec_params
        out = upsample_nearest(out, (2, 2, 2))
        out = jnp.concatenate([out, skips[1]], axis=1)
        out = conv3d(out, *dec1, stride=(1, 1, 1), padding=(0, 1, 1))
        out = upsample_nearest(out, (1, 2, 2))
        out = jnp.concatenate([out, skips[0]], axis=1)
        out = conv3d(out, *dec0, stride=(1, 1, 1), padding=(0, 1, 1))
        return out

    def _net(self, im1, aff1, im2, aff2):
        # The encoder weights are shared between views: run one batched pass.
        n = im1.shape[0]
        bott, skips = self._encoders(jnp.concatenate([im1, im2], axis=0))
        out1, out2 = bott[:n], bott[n:]
        enc1 = [s[:n] for s in skips]
        enc2 = [s[n:] for s in skips]
        fused = self._fusion(enc1, aff1, enc2, aff2)
        out1 = self._decoders(out1, fused, (self.dec1, self.dec0))
        pred1 = conv3d(out1, *self.out_block, stride=(1, 1, 1),
                       padding=(0, 0, 0), activation=None)
        if self.aux_seg:
            out2 = self._decoders(out2, enc2, (self.dec1_aux, self.dec0_aux))
            pred2 = conv3d(out2, *self.out_block_aux, stride=(1, 1, 1),
                           padding=(0, 0, 0), activation=None)
        else:
            pred2 = None
        return pred1, pred2

    def _forward_arrays(self, im1, ms1, aff1, im2, ms2, aff2):
        im1, ms1, aff1, im2, ms2, aff2 = self._decode_input(
            im1, ms1, aff1, im2, ms2, aff2)
        pred1, _pred2 = self._net(im1, aff1, im2, aff2)
        # eval mode, ct_eval=False -> (logits, mask) = (pred1, ms1)
        return pred1, ms1

    def __call__(self, x):
        return self._jit_forward(x["SAG"], x["sag_mask"], x["sag_affine"],
                                 x["COR"], x["cor_mask"], x["cor_affine"])


# ---------------------------------------------------------------------------
# Demo
# ---------------------------------------------------------------------------
if __name__ == "__main__":
    N, D, H, W = 2, 4, 16, 16
    num_classes = 3

    key = jax.random.PRNGKey(0)
    k_im1, k_im2, k_m1, k_m2, k_a1, k_a2 = jax.random.split(key, 6)
    im1 = jax.random.normal(k_im1, (N, D, H, W), jnp.float32)
    im2 = jax.random.normal(k_im2, (N, D, H, W), jnp.float32)
    label_vals = jnp.array([0.0, 1.0, 253.0, 254.0, 255.0], jnp.float32)
    ms1 = label_vals[jax.random.randint(k_m1, (N, D, H, W), 0, 5)]
    ms2 = label_vals[jax.random.randint(k_m2, (N, D, H, W), 0, 5)]

    base = jnp.diag(jnp.array([1.0, 1.0, 2.0, 1.0], jnp.float32))
    t1 = 0.5 * jax.random.normal(k_a1, (N, 3), jnp.float32)
    t2 = 0.5 * jax.random.normal(k_a2, (N, 3), jnp.float32)
    aff1 = jnp.tile(base[None], (N, 1, 1)).at[:, :3, 3].set(t1)
    aff2 = jnp.tile(base[None], (N, 1, 1)).at[:, :3, 3].set(t2)

    x = {"SAG": im1, "sag_mask": ms1, "sag_affine": aff1,
         "COR": im2, "cor_mask": ms2, "cor_affine": aff2}

    model = DualViewSegNetPallas(num_classes=num_classes,
                                 crop_size=(D, H, W), resize_dim=(D, H, W))
    logits, mask = model(x)
    jax.block_until_ready((logits, mask))
    assert logits.shape == (N, num_classes, D, H, W)
    assert mask.shape == (N, D, H, W)
    assert bool(jnp.all(jnp.isfinite(logits)))
    print("KERNEL_OK")
</pallas_src>

<mosaic_0001>
module attributes {stable_mosaic.version = 11 : i64} {
  func.func @_affine_norm_kernel(%arg0: i32, %arg1: memref<2xf32, #tpu.memory_space<smem>>, %arg2: memref<16x128xf32, #tpu.memory_space<vmem>>, %arg3: memref<16x128xf32, #tpu.memory_space<vmem>>) attributes {dimension_semantics = [#tpu.dimension_semantics<arbitrary>], iteration_bounds = array<i64: 1>, scalar_prefetch = 0 : i64, scratch_operands = 0 : i64, tpu.core_type = #tpu.core_type<tc>, window_params = [{transform_indices = @transform_0, window_bounds = array<i64: 2>}, {pipeline_mode = #tpu.pipeline_mode<synchronous>, transform_indices = @transform_1, window_bounds = array<i64: 16, 128>}, {pipeline_mode = #tpu.pipeline_mode<synchronous>, transform_indices = @transform_2, window_bounds = array<i64: 16, 128>}]} {
    %c0 = arith.constant 0 : index
    %c0_0 = arith.constant 0 : index
    %0 = vector.load %arg2[%c0, %c0_0] : memref<16x128xf32, #tpu.memory_space<vmem>>, vector<16x128xf32>
    %c0_1 = arith.constant 0 : index
    %1 = memref.load %arg1[%c0_1] : memref<2xf32, #tpu.memory_space<smem>>
    %2 = vector.broadcast %1 : f32 to vector<16x128xf32>
    %3 = arith.mulf %0, %2 : vector<16x128xf32>
    %c1 = arith.constant 1 : index
    %4 = memref.load %arg1[%c1] : memref<2xf32, #tpu.memory_space<smem>>
    %5 = vector.broadcast %4 : f32 to vector<16x128xf32>
    %6 = arith.addf %3, %5 : vector<16x128xf32>
    %c0_2 = arith.constant 0 : index
    %c0_3 = arith.constant 0 : index
    %7 = vector.load %arg3[%c0_2, %c0_3] : memref<16x128xf32, #tpu.memory_space<vmem>>, vector<16x128xf32>
    tpu.vector_store %arg3[%c0_2, %c0_3], %6 {strides = array<i32>} : memref<16x128xf32, #tpu.memory_space<vmem>>, vector<16x128xf32>,
    return
  }
  func.func @transform_0(%arg0: i32) -> i32 {
    %c0_i32 = arith.constant 0 : i32
    %c0_i32_0 = arith.constant 0 : i32
    return %c0_i32 : i32
  }
  func.func @transform_1(%arg0: i32) -> (i32, i32) {
    %c0_i32 = arith.constant 0 : i32
    %c0_i32_0 = arith.constant 0 : i32
    %c0_i32_1 = arith.constant 0 : i32
    return %c0_i32, %c0_i32_0 : i32, i32
  }
  func.func @transform_2(%arg0: i32) -> (i32, i32) {
    %c0_i32 = arith.constant 0 : i32
    %c0_i32_0 = arith.constant 0 : i32
    %c0_i32_1 = arith.constant 0 : i32
    return %c0_i32, %c0_i32_0 : i32, i32
  }
}

module attributes {stable_mosaic.version = 11 : i64} {
  func.func @_conv_mm_kernel(%arg0: i32, %arg1: memref<8x16xbf16, #tpu.memory_space<vmem>>, %arg2: memref<16x512xbf16, #tpu.memory_space<vmem>>, %arg3: memref<8x1xf32, #tpu.memory_space<vmem>>, %arg4: memref<8x512xf32, #tpu.memory_space<vmem>>) attributes {dimension_semantics = [#tpu.dimension_semantics<parallel>], iteration_bounds = array<i64: 8>, scalar_prefetch = 0 : i64, scratch_operands = 0 : i64, tpu.core_type = #tpu.core_type<tc>, window_params = [{pipeline_mode = #tpu.pipeline_mode<synchronous>, transform_indices = @transform_0, window_bounds = array<i64: 8, 16>}, {transform_indices = @transform_1, window_bounds = array<i64: 16, 512>}, {pipeline_mode = #tpu.pipeline_mode<synchronous>, transform_indices = @transform_2, window_bounds = array<i64: 8, 1>}, {transform_indices = @transform_3, window_bounds = array<i64: 8, 512>}]} {
    %c0 = arith.constant 0 : index
    %c0_0 = arith.constant 0 : index
    %0 = vector.load %arg1[%c0, %c0_0] : memref<8x16xbf16, #tpu.memory_space<vmem>>, vector<8x16xbf16>
    %c0_1 = arith.constant 0 : index
    %c0_2 = arith.constant 0 : index
    %1 = vector.load %arg2[%c0_1, %c0_2] : memref<16x512xbf16, #tpu.memory_space<vmem>>, vector<16x512xbf16>
    %cst = arith.constant dense<0.000000e+00> : vector<8x512xf32>
    %2 = tpu.matmul %0, %1, %cst {dimension_numbers = #tpu.dot_dimension_numbers<[1], [0], [0], [1], [0, 0, 1, 1], [], []>} : vector<8x16xbf16>, vector<16x512xbf16>, vector<8x512xf32> -> vector<8x512xf32>
    %c0_3 = arith.constant 0 : index
    %c0_4 = arith.constant 0 : index
    %3 = vector.load %arg3[%c0_3, %c0_4] : memref<8x1xf32, #tpu.memory_space<vmem>>, vector<8x1xf32>
    %4 = vector.broadcast %3 : vector<8x1xf32> to vector<8x512xf32>
    %5 = arith.addf %2, %4 : vector<8x512xf32>
    %cst_5 = arith.constant 0.000000e+00 : f32
    %6 = vector.broadcast %cst_5 : f32 to vector<8x512xf32>
    %7 = arith.cmpf oge, %5, %6 : vector<8x512xf32>
    %cst_6 = arith.constant 0.00999999977 : f32
    %8 = vector.broadcast %cst_6 : f32 to vector<8x512xf32>
    %9 = arith.mulf %8, %5 : vector<8x512xf32>
    %10 = arith.select %7, %5, %9 : vector<8x512xi1>, vector<8x512xf32>
    %c0_7 = arith.constant 0 : index
    %c0_8 = arith.constant 0 : index
    %11 = vector.load %arg4[%c0_7, %c0_8] : memref<8x512xf32, #tpu.memory_space<vmem>>, vector<8x512xf32>
    tpu.vector_store %arg4[%c0_7, %c0_8], %10 {strides = array<i32>} : memref<8x512xf32, #tpu.memory_space<vmem>>, vector<8x512xf32>,
    return
  }
  func.func @transform_0(%arg0: i32) -> (i32, i32) {
    %c0_i32 = arith.constant 0 : i32
    %c0_i32_0 = arith.constant 0 : i32
    %c0_i32_1 = arith.constant 0 : i32
    return %c0_i32, %c0_i32_0 : i32, i32
  }
  func.func @transform_1(%arg0: i32) -> (i32, i32) {
    %c0_i32 = arith.constant 0 : i32
    %c0_i32_0 = arith.constant 0 : i32
    return %c0_i32, %arg0 : i32, i32
  }
  func.func @transform_2(%arg0: i32) -> (i32, i32) {
    %c0_i32 = arith.constant 0 : i32
    %c0_i32_0 = arith.constant 0 : i32
    %c0_i32_1 = arith.constant 0 : i32
    return %c0_i32, %c0_i32_0 : i32, i32
  }
  func.func @transform_3(%arg0: i32) -> (i32, i32) {
    %c0_i32 = arith.constant 0 : i32
    %c0_i32_0 = arith.constant 0 : i32
    return %c0_i32, %arg0 : i32, i32
  }
}

module attributes {stable_mosaic.version = 11 : i64} {
  func.func @_conv_mm_kernel(%arg0: i32, %arg1: memref<16x80xbf16, #tpu.memory_space<vmem>>, %arg2: memref<80x512xbf16, #tpu.memory_space<vmem>>, %arg3: memref<16x1xf32, #tpu.memory_space<vmem>>, %arg4: memref<16x512xf32, #tpu.memory_space<vmem>>) attributes {dimension_semantics = [#tpu.dimension_semantics<parallel>], iteration_bounds = array<i64: 2>, scalar_prefetch = 0 : i64, scratch_operands = 0 : i64, tpu.core_type = #tpu.core_type<tc>, window_params = [{pipeline_mode = #tpu.pipeline_mode<synchronous>, transform_indices = @transform_0, window_bounds = array<i64: 16, 80>}, {transform_indices = @transform_1, window_bounds = array<i64: 80, 512>}, {pipeline_mode = #tpu.pipeline_mode<synchronous>, transform_indices = @transform_2, window_bounds = array<i64: 16, 1>}, {transform_indices = @transform_3, window_bounds = array<i64: 16, 512>}]} {
    %c0 = arith.constant 0 : index
    %c0_0 = arith.constant 0 : index
    %0 = vector.load %arg1[%c0, %c0_0] : memref<16x80xbf16, #tpu.memory_space<vmem>>, vector<16x80xbf16>
    %c0_1 = arith.constant 0 : index
    %c0_2 = arith.constant 0 : index
    %1 = vector.load %arg2[%c0_1, %c0_2] : memref<80x512xbf16, #tpu.memory_space<vmem>>, vector<80x512xbf16>
    %cst = arith.constant dense<0.000000e+00> : vector<16x512xf32>
    %2 = tpu.matmul %0, %1, %cst {dimension_numbers = #tpu.dot_dimension_numbers<[1], [0], [0], [1], [0, 0, 1, 1], [], []>} : vector<16x80xbf16>, vector<80x512xbf16>, vector<16x512xf32> -> vector<16x512xf32>
    %c0_3 = arith.constant 0 : index
    %c0_4 = arith.constant 0 : index
    %3 = vector.load %arg3[%c0_3, %c0_4] : memref<16x1xf32, #tpu.memory_space<vmem>>, vector<16x1xf32>
    %4 = vector.broadcast %3 : vector<16x1xf32> to vector<16x512xf32>
    %5 = arith.addf %2, %4 : vector<16x512xf32>
    %cst_5 = arith.constant 0.000000e+00 : f32
    %6 = vector.broadcast %cst_5 : f32 to vector<16x512xf32>
    %7 = arith.cmpf oge, %5, %6 : vector<16x512xf32>
    %cst_6 = arith.constant 0.00999999977 : f32
    %8 = vector.broadcast %cst_6 : f32 to vector<16x512xf32>
    %9 = arith.mulf %8, %5 : vector<16x512xf32>
    %10 = arith.select %7, %5, %9 : vector<16x512xi1>, vector<16x512xf32>
    %c0_7 = arith.constant 0 : index
    %c0_8 = arith.constant 0 : index
    %11 = vector.load %arg4[%c0_7, %c0_8] : memref<16x512xf32, #tpu.memory_space<vmem>>, vector<16x512xf32>
    tpu.vector_store %arg4[%c0_7, %c0_8], %10 {strides = array<i32>} : memref<16x512xf32, #tpu.memory_space<vmem>>, vector<16x512xf32>,
    return
  }
  func.func @transform_0(%arg0: i32) -> (i32, i32) {
    %c0_i32 = arith.constant 0 : i32
    %c0_i32_0 = arith.constant 0 : i32
    %c0_i32_1 = arith.constant 0 : i32
    return %c0_i32, %c0_i32_0 : i32, i32
  }
  func.func @transform_1(%arg0: i32) -> (i32, i32) {
    %c0_i32 = arith.constant 0 : i32
    %c0_i32_0 = arith.constant 0 : i32
    return %c0_i32, %arg0 : i32, i32
  }
  func.func @transform_2(%arg0: i32) -> (i32, i32) {
    %c0_i32 = arith.constant 0 : i32
    %c0_i32_0 = arith.constant 0 : i32
    %c0_i32_1 = arith.constant 0 : i32
    return %c0_i32, %c0_i32_0 : i32, i32
  }
  func.func @transform_3(%arg0: i32) -> (i32, i32) {
    %c0_i32 = arith.constant 0 : i32
    %c0_i32_0 = arith.constant 0 : i32
    return %c0_i32, %arg0 : i32, i32
  }
}

module attributes {stable_mosaic.version = 11 : i64} {
  func.func @_conv_mm_kernel(%arg0: i32, %arg1: memref<32x432xbf16, #tpu.memory_space<vmem>>, %arg2: memref<432x128xbf16, #tpu.memory_space<vmem>>, %arg3: memref<32x1xf32, #tpu.memory_space<vmem>>, %arg4: memref<32x128xf32, #tpu.memory_space<vmem>>) attributes {dimension_semantics = [#tpu.dimension_semantics<parallel>], iteration_bounds = array<i64: 1>, scalar_prefetch = 0 : i64, scratch_operands = 0 : i64, tpu.core_type = #tpu.core_type<tc>, window_params = [{pipeline_mode = #tpu.pipeline_mode<synchronous>, transform_indices = @transform_0, window_bounds = array<i64: 32, 432>}, {transform_indices = @transform_1, window_bounds = array<i64: 432, 128>}, {pipeline_mode = #tpu.pipeline_mode<synchronous>, transform_indices = @transform_2, window_bounds = array<i64: 32, 1>}, {transform_indices = @transform_3, window_bounds = array<i64: 32, 128>}]} {
    %c0 = arith.constant 0 : index
    %c0_0 = arith.constant 0 : index
    %0 = vector.load %arg1[%c0, %c0_0] : memref<32x432xbf16, #tpu.memory_space<vmem>>, vector<32x432xbf16>
    %c0_1 = arith.constant 0 : index
    %c0_2 = arith.constant 0 : index
    %1 = vector.load %arg2[%c0_1, %c0_2] : memref<432x128xbf16, #tpu.memory_space<vmem>>, vector<432x128xbf16>
    %cst = arith.constant dense<0.000000e+00> : vector<32x128xf32>
    %2 = tpu.matmul %0, %1, %cst {dimension_numbers = #tpu.dot_dimension_numbers<[1], [0], [0], [1], [0, 0, 1, 1], [], []>} : vector<32x432xbf16>, vector<432x128xbf16>, vector<32x128xf32> -> vector<32x128xf32>
    %c0_3 = arith.constant 0 : index
    %c0_4 = arith.constant 0 : index
    %3 = vector.load %arg3[%c0_3, %c0_4] : memref<32x1xf32, #tpu.memory_space<vmem>>, vector<32x1xf32>
    %4 = vector.broadcast %3 : vector<32x1xf32> to vector<32x128xf32>
    %5 = arith.addf %2, %4 : vector<32x128xf32>
    %cst_5 = arith.constant 0.000000e+00 : f32
    %6 = vector.broadcast %cst_5 : f32 to vector<32x128xf32>
    %7 = arith.cmpf oge, %5, %6 : vector<32x128xf32>
    %cst_6 = arith.constant 0.00999999977 : f32
    %8 = vector.broadcast %cst_6 : f32 to vector<32x128xf32>
    %9 = arith.mulf %8, %5 : vector<32x128xf32>
    %10 = arith.select %7, %5, %9 : vector<32x128xi1>, vector<32x128xf32>
    %c0_7 = arith.constant 0 : index
    %c0_8 = arith.constant 0 : index
    %11 = vector.load %arg4[%c0_7, %c0_8] : memref<32x128xf32, #tpu.memory_space<vmem>>, vector<32x128xf32>
    tpu.vector_store %arg4[%c0_7, %c0_8], %10 {strides = array<i32>} : memref<32x128xf32, #tpu.memory_space<vmem>>, vector<32x128xf32>,
    return
  }
  func.func @transform_0(%arg0: i32) -> (i32, i32) {
    %c0_i32 = arith.constant 0 : i32
    %c0_i32_0 = arith.constant 0 : i32
    %c0_i32_1 = arith.constant 0 : i32
    return %c0_i32, %c0_i32_0 : i32, i32
  }
  func.func @transform_1(%arg0: i32) -> (i32, i32) {
    %c0_i32 = arith.constant 0 : i32
    %c0_i32_0 = arith.constant 0 : i32
    return %c0_i32, %arg0 : i32, i32
  }
  func.func @transform_2(%arg0: i32) -> (i32, i32) {
    %c0_i32 = arith.constant 0 : i32
    %c0_i32_0 = arith.constant 0 : i32
    %c0_i32_1 = arith.constant 0 : i32
    return %c0_i32, %c0_i32_0 : i32, i32
  }
  func.func @transform_3(%arg0: i32) -> (i32, i32) {
    %c0_i32 = arith.constant 0 : i32
    %c0_i32_0 = arith.constant 0 : i32
    return %c0_i32, %arg0 : i32, i32
  }
}

module attributes {stable_mosaic.version = 11 : i64} {
  func.func @_trilerp_blend_kernel(%arg0: i32, %arg1: memref<128x512xf32, #tpu.memory_space<vmem>>, %arg2: memref<8x512xf32, #tpu.memory_space<vmem>>, %arg3: memref<16x1xf32, #tpu.memory_space<vmem>>, %arg4: memref<16x512xf32, #tpu.memory_space<vmem>>) attributes {dimension_semantics = [#tpu.dimension_semantics<parallel>], iteration_bounds = array<i64: 1>, scalar_prefetch = 0 : i64, scratch_operands = 0 : i64, tpu.core_type = #tpu.core_type<tc>, window_params = [{transform_indices = @transform_0, window_bounds = array<i64: 128, 512>}, {transform_indices = @transform_1, window_bounds = array<i64: 8, 512>}, {pipeline_mode = #tpu.pipeline_mode<synchronous>, transform_indices = @transform_2, window_bounds = array<i64: 16, 1>}, {transform_indices = @transform_3, window_bounds = array<i64: 16, 512>}]} {
    %c0 = arith.constant 0 : index
    %c0_0 = arith.constant 0 : index
    %0 = vector.load %arg2[%c0, %c0_0] : memref<8x512xf32, #tpu.memory_space<vmem>>, vector<8x512xf32>
    %1 = vector.extract_strided_slice %0 {offsets = [0, 0], sizes = [1, 512], strides = [1, 1]} : vector<8x512xf32> to vector<1x512xf32>
    %c0_1 = arith.constant 0 : index
    %c0_2 = arith.constant 0 : index
    %2 = vector.load %arg1[%c0_1, %c0_2] : memref<128x512xf32, #tpu.memory_space<vmem>>, vector<16x512xf32>
    %3 = vector.broadcast %1 : vector<1x512xf32> to vector<16x512xf32>
    %4 = arith.mulf %3, %2 : vector<16x512xf32>
    %5 = vector.extract_strided_slice %0 {offsets = [1, 0], sizes = [1, 512], strides = [1, 1]} : vector<8x512xf32> to vector<1x512xf32>
    %c16 = arith.constant 16 : index
    %c0_3 = arith.constant 0 : index
    %6 = vector.load %arg1[%c16, %c0_3] : memref<128x512xf32, #tpu.memory_space<vmem>>, vector<16x512xf32>
    %7 = vector.broadcast %5 : vector<1x512xf32> to vector<16x512xf32>
    %8 = arith.mulf %7, %6 : vector<16x512xf32>
    %9 = arith.addf %4, %8 : vector<16x512xf32>
    %10 = vector.extract_strided_slice %0 {offsets = [2, 0], sizes = [1, 512], strides = [1, 1]} : vector<8x512xf32> to vector<1x512xf32>
    %c32 = arith.constant 32 : index
    %c0_4 = arith.constant 0 : index
    %11 = vector.load %arg1[%c32, %c0_4] : memref<128x512xf32, #tpu.memory_space<vmem>>, vector<16x512xf32>
    %12 = vector.broadcast %10 : vector<1x512xf32> to vector<16x512xf32>
    %13 = arith.mulf %12, %11 : vector<16x512xf32>
    %14 = arith.addf %9, %13 : vector<16x512xf32>
    %15 = vector.extract_strided_slice %0 {offsets = [3, 0], sizes = [1, 512], strides = [1, 1]} : vector<8x512xf32> to vector<1x512xf32>
    %c48 = arith.constant 48 : index
    %c0_5 = arith.constant 0 : index
    %16 = vector.load %arg1[%c48, %c0_5] : memref<128x512xf32, #tpu.memory_space<vmem>>, vector<16x512xf32>
    %17 = vector.broadcast %15 : vector<1x512xf32> to vector<16x512xf32>
    %18 = arith.mulf %17, %16 : vector<16x512xf32>
    %19 = arith.addf %14, %18 : vector<16x512xf32>
    %20 = vector.extract_strided_slice %0 {offsets = [4, 0], sizes = [1, 512], strides = [1, 1]} : vector<8x512xf32> to vector<1x512xf32>
    %c64 = arith.constant 64 : index
    %c0_6 = arith.constant 0 : index
    %21 = vector.load %arg1[%c64, %c0_6] : memref<128x512xf32, #tpu.memory_space<vmem>>, vector<16x512xf32>
    %22 = vector.broadcast %20 : vector<1x512xf32> to vector<16x512xf32>
    %23 = arith.mulf %22, %21 : vector<16x512xf32>
    %24 = arith.addf %19, %23 : vector<16x512xf32>
    %25 = vector.extract_strided_slice %0 {offsets = [5, 0], sizes = [1, 512], strides = [1, 1]} : vector<8x512xf32> to vector<1x512xf32>
    %c80 = arith.constant 80 : index
    %c0_7 = arith.constant 0 : index
    %26 = vector.load %arg1[%c80, %c0_7] : memref<128x512xf32, #tpu.memory_space<vmem>>, vector<16x512xf32>
    %27 = vector.broadcast %25 : vector<1x512xf32> to vector<16x512xf32>
    %28 = arith.mulf %27, %26 : vector<16x512xf32>
    %29 = arith.addf %24, %28 : vector<16x512xf32>
    %30 = vector.extract_strided_slice %0 {offsets = [6, 0], sizes = [1, 512], strides = [1, 1]} : vector<8x512xf32> to vector<1x512xf32>
    %c96 = arith.constant 96 : index
    %c0_8 = arith.constant 0 : index
    %31 = vector.load %arg1[%c96, %c0_8] : memref<128x512xf32, #tpu.memory_space<vmem>>, vector<16x512xf32>
    %32 = vector.broadcast %30 : vector<1x512xf32> to vector<16x512xf32>
    %33 = arith.mulf %32, %31 : vector<16x512xf32>
    %34 = arith.addf %29, %33 : vector<16x512xf32>
    %35 = vector.extract_strided_slice %0 {offsets = [7, 0], sizes = [1, 512], strides = [1, 1]} : vector<8x512xf32> to vector<1x512xf32>
    %c112 = arith.constant 112 : index
    %c0_9 = arith.constant 0 : index
    %36 = vector.load %arg1[%c112, %c0_9] : memref<128x512xf32, #tpu.memory_space<vmem>>, vector<16x512xf32>
    %37 = vector.broadcast %35 : vector<1x512xf32> to vector<16x512xf32>
    %38 = arith.mulf %37, %36 : vector<16x512xf32>
    %39 = arith.addf %34, %38 : vector<16x512xf32>
    %cst = arith.constant dense<0.000000e+00> : vector<512xf32>
    %40 = vector.multi_reduction <add>, %0, %cst [0] : vector<8x512xf32> to vector<512xf32>
    %41 = vector.shape_cast %40 : vector<512xf32> to vector<1x512xf32>
    %c0_10 = arith.constant 0 : index
    %c0_11 = arith.constant 0 : index
    %42 = vector.load %arg3[%c0_10, %c0_11] : memref<16x1xf32, #tpu.memory_space<vmem>>, vector<16x1xf32>
    %cst_12 = arith.constant 1.000000e+00 : f32
    %43 = vector.broadcast %cst_12 : f32 to vector<1x512xf32>
    %44 = arith.subf %43, %41 : vector<1x512xf32>
    %45 = vector.broadcast %42 : vector<16x1xf32> to vector<16x512xf32>
    %46 = vector.broadcast %44 : vector<1x512xf32> to vector<16x512xf32>
    %47 = arith.mulf %45, %46 : vector<16x512xf32>
    %48 = vector.broadcast %41 : vector<1x512xf32> to vector<16x512xf32>
    %49 = arith.mulf %48, %39 : vector<16x512xf32>
    %50 = arith.addf %47, %49 : vector<16x512xf32>
    %c0_13 = arith.constant 0 : index
    %c0_14 = arith.constant 0 : index
    %51 = vector.load %arg4[%c0_13, %c0_14] : memref<16x512xf32, #tpu.memory_space<vmem>>, vector<16x512xf32>
    tpu.vector_store %arg4[%c0_13, %c0_14], %50 {strides = array<i32>} : memref<16x512xf32, #tpu.memory_space<vmem>>, vector<16x512xf32>,
    return
  }
  func.func @transform_0(%arg0: i32) -> (i32, i32) {
    %c0_i32 = arith.constant 0 : i32
    %c0_i32_0 = arith.constant 0 : i32
    return %c0_i32, %arg0 : i32, i32
  }
  func.func @transform_1(%arg0: i32) -> (i32, i32) {
    %c0_i32 = arith.constant 0 : i32
    %c0_i32_0 = arith.constant 0 : i32
    return %c0_i32, %arg0 : i32, i32
  }
  func.func @transform_2(%arg0: i32) -> (i32, i32) {
    %c0_i32 = arith.constant 0 : i32
    %c0_i32_0 = arith.constant 0 : i32
    %c0_i32_1 = arith.constant 0 : i32
    return %c0_i32, %c0_i32_0 : i32, i32
  }
  func.func @transform_3(%arg0: i32) -> (i32, i32) {
    %c0_i32 = arith.constant 0 : i32
    %c0_i32_0 = arith.constant 0 : i32
    return %c0_i32, %arg0 : i32, i32
  }
}

module attributes {stable_mosaic.version = 11 : i64} {
  func.func @_conv_mm_kernel(%arg0: i32, %arg1: memref<16x32xbf16, #tpu.memory_space<vmem>>, %arg2: memref<32x512xbf16, #tpu.memory_space<vmem>>, %arg3: memref<16x1xf32, #tpu.memory_space<vmem>>, %arg4: memref<16x512xf32, #tpu.memory_space<vmem>>) attributes {dimension_semantics = [#tpu.dimension_semantics<parallel>], iteration_bounds = array<i64: 1>, scalar_prefetch = 0 : i64, scratch_operands = 0 : i64, tpu.core_type = #tpu.core_type<tc>, window_params = [{pipeline_mode = #tpu.pipeline_mode<synchronous>, transform_indices = @transform_0, window_bounds = array<i64: 16, 32>}, {transform_indices = @transform_1, window_bounds = array<i64: 32, 512>}, {pipeline_mode = #tpu.pipeline_mode<synchronous>, transform_indices = @transform_2, window_bounds = array<i64: 16, 1>}, {transform_indices = @transform_3, window_bounds = array<i64: 16, 512>}]} {
    %c0 = arith.constant 0 : index
    %c0_0 = arith.constant 0 : index
    %0 = vector.load %arg1[%c0, %c0_0] : memref<16x32xbf16, #tpu.memory_space<vmem>>, vector<16x32xbf16>
    %c0_1 = arith.constant 0 : index
    %c0_2 = arith.constant 0 : index
    %1 = vector.load %arg2[%c0_1, %c0_2] : memref<32x512xbf16, #tpu.memory_space<vmem>>, vector<32x512xbf16>
    %cst = arith.constant dense<0.000000e+00> : vector<16x512xf32>
    %2 = tpu.matmul %0, %1, %cst {dimension_numbers = #tpu.dot_dimension_numbers<[1], [0], [0], [1], [0, 0, 1, 1], [], []>} : vector<16x32xbf16>, vector<32x512xbf16>, vector<16x512xf32> -> vector<16x512xf32>
    %c0_3 = arith.constant 0 : index
    %c0_4 = arith.constant 0 : index
    %3 = vector.load %arg3[%c0_3, %c0_4] : memref<16x1xf32, #tpu.memory_space<vmem>>, vector<16x1xf32>
    %4 = vector.broadcast %3 : vector<16x1xf32> to vector<16x512xf32>
    %5 = arith.addf %2, %4 : vector<16x512xf32>
    %cst_5 = arith.constant 0.000000e+00 : f32
    %6 = vector.broadcast %cst_5 : f32 to vector<16x512xf32>
    %7 = arith.cmpf oge, %5, %6 : vector<16x512xf32>
    %cst_6 = arith.constant 0.00999999977 : f32
    %8 = vector.broadcast %cst_6 : f32 to vector<16x512xf32>
    %9 = arith.mulf %8, %5 : vector<16x512xf32>
    %10 = arith.select %7, %5, %9 : vector<16x512xi1>, vector<16x512xf32>
    %c0_7 = arith.constant 0 : index
    %c0_8 = arith.constant 0 : index
    %11 = vector.load %arg4[%c0_7, %c0_8] : memref<16x512xf32, #tpu.memory_space<vmem>>, vector<16x512xf32>
    tpu.vector_store %arg4[%c0_7, %c0_8], %10 {strides = array<i32>} : memref<16x512xf32, #tpu.memory_space<vmem>>, vector<16x512xf32>,
    return
  }
  func.func @transform_0(%arg0: i32) -> (i32, i32) {
    %c0_i32 = arith.constant 0 : i32
    %c0_i32_0 = arith.constant 0 : i32
    %c0_i32_1 = arith.constant 0 : i32
    return %c0_i32, %c0_i32_0 : i32, i32
  }
  func.func @transform_1(%arg0: i32) -> (i32, i32) {
    %c0_i32 = arith.constant 0 : i32
    %c0_i32_0 = arith.constant 0 : i32
    return %c0_i32, %arg0 : i32, i32
  }
  func.func @transform_2(%arg0: i32) -> (i32, i32) {
    %c0_i32 = arith.constant 0 : i32
    %c0_i32_0 = arith.constant 0 : i32
    %c0_i32_1 = arith.constant 0 : i32
    return %c0_i32, %c0_i32_0 : i32, i32
  }
  func.func @transform_3(%arg0: i32) -> (i32, i32) {
    %c0_i32 = arith.constant 0 : i32
    %c0_i32_0 = arith.constant 0 : i32
    return %c0_i32, %arg0 : i32, i32
  }
}

module attributes {stable_mosaic.version = 11 : i64} {
  func.func @_conv_mm_kernel(%arg0: i32, %arg1: memref<16x432xbf16, #tpu.memory_space<vmem>>, %arg2: memref<432x512xbf16, #tpu.memory_space<vmem>>, %arg3: memref<16x1xf32, #tpu.memory_space<vmem>>, %arg4: memref<16x512xf32, #tpu.memory_space<vmem>>) attributes {dimension_semantics = [#tpu.dimension_semantics<parallel>], iteration_bounds = array<i64: 1>, scalar_prefetch = 0 : i64, scratch_operands = 0 : i64, tpu.core_type = #tpu.core_type<tc>, window_params = [{pipeline_mode = #tpu.pipeline_mode<synchronous>, transform_indices = @transform_0, window_bounds = array<i64: 16, 432>}, {transform_indices = @transform_1, window_bounds = array<i64: 432, 512>}, {pipeline_mode = #tpu.pipeline_mode<synchronous>, transform_indices = @transform_2, window_bounds = array<i64: 16, 1>}, {transform_indices = @transform_3, window_bounds = array<i64: 16, 512>}]} {
    %c0 = arith.constant 0 : index
    %c0_0 = arith.constant 0 : index
    %0 = vector.load %arg1[%c0, %c0_0] : memref<16x432xbf16, #tpu.memory_space<vmem>>, vector<16x432xbf16>
    %c0_1 = arith.constant 0 : index
    %c0_2 = arith.constant 0 : index
    %1 = vector.load %arg2[%c0_1, %c0_2] : memref<432x512xbf16, #tpu.memory_space<vmem>>, vector<432x512xbf16>
    %cst = arith.constant dense<0.000000e+00> : vector<16x512xf32>
    %2 = tpu.matmul %0, %1, %cst {dimension_numbers = #tpu.dot_dimension_numbers<[1], [0], [0], [1], [0, 0, 1, 1], [], []>} : vector<16x432xbf16>, vector<432x512xbf16>, vector<16x512xf32> -> vector<16x512xf32>
    %c0_3 = arith.constant 0 : index
    %c0_4 = arith.constant 0 : index
    %3 = vector.load %arg3[%c0_3, %c0_4] : memref<16x1xf32, #tpu.memory_space<vmem>>, vector<16x1xf32>
    %4 = vector.broadcast %3 : vector<16x1xf32> to vector<16x512xf32>
    %5 = arith.addf %2, %4 : vector<16x512xf32>
    %cst_5 = arith.constant 0.000000e+00 : f32
    %6 = vector.broadcast %cst_5 : f32 to vector<16x512xf32>
    %7 = arith.cmpf oge, %5, %6 : vector<16x512xf32>
    %cst_6 = arith.constant 0.00999999977 : f32
    %8 = vector.broadcast %cst_6 : f32 to vector<16x512xf32>
    %9 = arith.mulf %8, %5 : vector<16x512xf32>
    %10 = arith.select %7, %5, %9 : vector<16x512xi1>, vector<16x512xf32>
    %c0_7 = arith.constant 0 : index
    %c0_8 = arith.constant 0 : index
    %11 = vector.load %arg4[%c0_7, %c0_8] : memref<16x512xf32, #tpu.memory_space<vmem>>, vector<16x512xf32>
    tpu.vector_store %arg4[%c0_7, %c0_8], %10 {strides = array<i32>} : memref<16x512xf32, #tpu.memory_space<vmem>>, vector<16x512xf32>,
    return
  }
  func.func @transform_0(%arg0: i32) -> (i32, i32) {
    %c0_i32 = arith.constant 0 : i32
    %c0_i32_0 = arith.constant 0 : i32
    %c0_i32_1 = arith.constant 0 : i32
    return %c0_i32, %c0_i32_0 : i32, i32
  }
  func.func @transform_1(%arg0: i32) -> (i32, i32) {
    %c0_i32 = arith.constant 0 : i32
    %c0_i32_0 = arith.constant 0 : i32
    return %c0_i32, %arg0 : i32, i32
  }
  func.func @transform_2(%arg0: i32) -> (i32, i32) {
    %c0_i32 = arith.constant 0 : i32
    %c0_i32_0 = arith.constant 0 : i32
    %c0_i32_1 = arith.constant 0 : i32
    return %c0_i32, %c0_i32_0 : i32, i32
  }
  func.func @transform_3(%arg0: i32) -> (i32, i32) {
    %c0_i32 = arith.constant 0 : i32
    %c0_i32_0 = arith.constant 0 : i32
    return %c0_i32, %arg0 : i32, i32
  }
}

module attributes {stable_mosaic.version = 11 : i64} {
  func.func @_trilerp_blend_kernel(%arg0: i32, %arg1: memref<64x512xf32, #tpu.memory_space<vmem>>, %arg2: memref<8x512xf32, #tpu.memory_space<vmem>>, %arg3: memref<8x1xf32, #tpu.memory_space<vmem>>, %arg4: memref<8x512xf32, #tpu.memory_space<vmem>>) attributes {dimension_semantics = [#tpu.dimension_semantics<parallel>], iteration_bounds = array<i64: 4>, scalar_prefetch = 0 : i64, scratch_operands = 0 : i64, tpu.core_type = #tpu.core_type<tc>, window_params = [{transform_indices = @transform_0, window_bounds = array<i64: 64, 512>}, {transform_indices = @transform_1, window_bounds = array<i64: 8, 512>}, {pipeline_mode = #tpu.pipeline_mode<synchronous>, transform_indices = @transform_2, window_bounds = array<i64: 8, 1>}, {transform_indices = @transform_3, window_bounds = array<i64: 8, 512>}]} {
    %c0 = arith.constant 0 : index
    %c0_0 = arith.constant 0 : index
    %0 = vector.load %arg2[%c0, %c0_0] : memref<8x512xf32, #tpu.memory_space<vmem>>, vector<8x512xf32>
    %1 = vector.extract_strided_slice %0 {offsets = [0, 0], sizes = [1, 512], strides = [1, 1]} : vector<8x512xf32> to vector<1x512xf32>
    %c0_1 = arith.constant 0 : index
    %c0_2 = arith.constant 0 : index
    %2 = vector.load %arg1[%c0_1, %c0_2] : memref<64x512xf32, #tpu.memory_space<vmem>>, vector<8x512xf32>
    %3 = vector.broadcast %1 : vector<1x512xf32> to vector<8x512xf32>
    %4 = arith.mulf %3, %2 : vector<8x512xf32>
    %5 = vector.extract_strided_slice %0 {offsets = [1, 0], sizes = [1, 512], strides = [1, 1]} : vector<8x512xf32> to vector<1x512xf32>
    %c8 = arith.constant 8 : index
    %c0_3 = arith.constant 0 : index
    %6 = vector.load %arg1[%c8, %c0_3] : memref<64x512xf32, #tpu.memory_space<vmem>>, vector<8x512xf32>
    %7 = vector.broadcast %5 : vector<1x512xf32> to vector<8x512xf32>
    %8 = arith.mulf %7, %6 : vector<8x512xf32>
    %9 = arith.addf %4, %8 : vector<8x512xf32>
    %10 = vector.extract_strided_slice %0 {offsets = [2, 0], sizes = [1, 512], strides = [1, 1]} : vector<8x512xf32> to vector<1x512xf32>
    %c16 = arith.constant 16 : index
    %c0_4 = arith.constant 0 : index
    %11 = vector.load %arg1[%c16, %c0_4] : memref<64x512xf32, #tpu.memory_space<vmem>>, vector<8x512xf32>
    %12 = vector.broadcast %10 : vector<1x512xf32> to vector<8x512xf32>
    %13 = arith.mulf %12, %11 : vector<8x512xf32>
    %14 = arith.addf %9, %13 : vector<8x512xf32>
    %15 = vector.extract_strided_slice %0 {offsets = [3, 0], sizes = [1, 512], strides = [1, 1]} : vector<8x512xf32> to vector<1x512xf32>
    %c24 = arith.constant 24 : index
    %c0_5 = arith.constant 0 : index
    %16 = vector.load %arg1[%c24, %c0_5] : memref<64x512xf32, #tpu.memory_space<vmem>>, vector<8x512xf32>
    %17 = vector.broadcast %15 : vector<1x512xf32> to vector<8x512xf32>
    %18 = arith.mulf %17, %16 : vector<8x512xf32>
    %19 = arith.addf %14, %18 : vector<8x512xf32>
    %20 = vector.extract_strided_slice %0 {offsets = [4, 0], sizes = [1, 512], strides = [1, 1]} : vector<8x512xf32> to vector<1x512xf32>
    %c32 = arith.constant 32 : index
    %c0_6 = arith.constant 0 : index
    %21 = vector.load %arg1[%c32, %c0_6] : memref<64x512xf32, #tpu.memory_space<vmem>>, vector<8x512xf32>
    %22 = vector.broadcast %20 : vector<1x512xf32> to vector<8x512xf32>
    %23 = arith.mulf %22, %21 : vector<8x512xf32>
    %24 = arith.addf %19, %23 : vector<8x512xf32>
    %25 = vector.extract_strided_slice %0 {offsets = [5, 0], sizes = [1, 512], strides = [1, 1]} : vector<8x512xf32> to vector<1x512xf32>
    %c40 = arith.constant 40 : index
    %c0_7 = arith.constant 0 : index
    %26 = vector.load %arg1[%c40, %c0_7] : memref<64x512xf32, #tpu.memory_space<vmem>>, vector<8x512xf32>
    %27 = vector.broadcast %25 : vector<1x512xf32> to vector<8x512xf32>
    %28 = arith.mulf %27, %26 : vector<8x512xf32>
    %29 = arith.addf %24, %28 : vector<8x512xf32>
    %30 = vector.extract_strided_slice %0 {offsets = [6, 0], sizes = [1, 512], strides = [1, 1]} : vector<8x512xf32> to vector<1x512xf32>
    %c48 = arith.constant 48 : index
    %c0_8 = arith.constant 0 : index
    %31 = vector.load %arg1[%c48, %c0_8] : memref<64x512xf32, #tpu.memory_space<vmem>>, vector<8x512xf32>
    %32 = vector.broadcast %30 : vector<1x512xf32> to vector<8x512xf32>
    %33 = arith.mulf %32, %31 : vector<8x512xf32>
    %34 = arith.addf %29, %33 : vector<8x512xf32>
    %35 = vector.extract_strided_slice %0 {offsets = [7, 0], sizes = [1, 512], strides = [1, 1]} : vector<8x512xf32> to vector<1x512xf32>
    %c56 = arith.constant 56 : index
    %c0_9 = arith.constant 0 : index
    %36 = vector.load %arg1[%c56, %c0_9] : memref<64x512xf32, #tpu.memory_space<vmem>>, vector<8x512xf32>
    %37 = vector.broadcast %35 : vector<1x512xf32> to vector<8x512xf32>
    %38 = arith.mulf %37, %36 : vector<8x512xf32>
    %39 = arith.addf %34, %38 : vector<8x512xf32>
    %cst = arith.constant dense<0.000000e+00> : vector<512xf32>
    %40 = vector.multi_reduction <add>, %0, %cst [0] : vector<8x512xf32> to vector<512xf32>
    %41 = vector.shape_cast %40 : vector<512xf32> to vector<1x512xf32>
    %c0_10 = arith.constant 0 : index
    %c0_11 = arith.constant 0 : index
    %42 = vector.load %arg3[%c0_10, %c0_11] : memref<8x1xf32, #tpu.memory_space<vmem>>, vector<8x1xf32>
    %cst_12 = arith.constant 1.000000e+00 : f32
    %43 = vector.broadcast %cst_12 : f32 to vector<1x512xf32>
    %44 = arith.subf %43, %41 : vector<1x512xf32>
    %45 = vector.broadcast %42 : vector<8x1xf32> to vector<8x512xf32>
    %46 = vector.broadcast %44 : vector<1x512xf32> to vector<8x512xf32>
    %47 = arith.mulf %45, %46 : vector<8x512xf32>
    %48 = vector.broadcast %41 : vector<1x512xf32> to vector<8x512xf32>
    %49 = arith.mulf %48, %39 : vector<8x512xf32>
    %50 = arith.addf %47, %49 : vector<8x512xf32>
    %c0_13 = arith.constant 0 : index
    %c0_14 = arith.constant 0 : index
    %51 = vector.load %arg4[%c0_13, %c0_14] : memref<8x512xf32, #tpu.memory_space<vmem>>, vector<8x512xf32>
    tpu.vector_store %arg4[%c0_13, %c0_14], %50 {strides = array<i32>} : memref<8x512xf32, #tpu.memory_space<vmem>>, vector<8x512xf32>,
    return
  }
  func.func @transform_0(%arg0: i32) -> (i32, i32) {
    %c0_i32 = arith.constant 0 : i32
    %c0_i32_0 = arith.constant 0 : i32
    return %c0_i32, %arg0 : i32, i32
  }
  func.func @transform_1(%arg0: i32) -> (i32, i32) {
    %c0_i32 = arith.constant 0 : i32
    %c0_i32_0 = arith.constant 0 : i32
    return %c0_i32, %arg0 : i32, i32
  }
  func.func @transform_2(%arg0: i32) -> (i32, i32) {
    %c0_i32 = arith.constant 0 : i32
    %c0_i32_0 = arith.constant 0 : i32
    %c0_i32_1 = arith.constant 0 : i32
    return %c0_i32, %c0_i32_0 : i32, i32
  }
  func.func @transform_3(%arg0: i32) -> (i32, i32) {
    %c0_i32 = arith.constant 0 : i32
    %c0_i32_0 = arith.constant 0 : i32
    return %c0_i32, %arg0 : i32, i32
  }
}

module attributes {stable_mosaic.version = 11 : i64} {
  func.func @_conv_mm_kernel(%arg0: i32, %arg1: memref<8x16xbf16, #tpu.memory_space<vmem>>, %arg2: memref<16x512xbf16, #tpu.memory_space<vmem>>, %arg3: memref<8x1xf32, #tpu.memory_space<vmem>>, %arg4: memref<8x512xf32, #tpu.memory_space<vmem>>) attributes {dimension_semantics = [#tpu.dimension_semantics<parallel>], iteration_bounds = array<i64: 4>, scalar_prefetch = 0 : i64, scratch_operands = 0 : i64, tpu.core_type = #tpu.core_type<tc>, window_params = [{pipeline_mode = #tpu.pipeline_mode<synchronous>, transform_indices = @transform_0, window_bounds = array<i64: 8, 16>}, {transform_indices = @transform_1, window_bounds = array<i64: 16, 512>}, {pipeline_mode = #tpu.pipeline_mode<synchronous>, transform_indices = @transform_2, window_bounds = array<i64: 8, 1>}, {transform_indices = @transform_3, window_bounds = array<i64: 8, 512>}]} {
    %c0 = arith.constant 0 : index
    %c0_0 = arith.constant 0 : index
    %0 = vector.load %arg1[%c0, %c0_0] : memref<8x16xbf16, #tpu.memory_space<vmem>>, vector<8x16xbf16>
    %c0_1 = arith.constant 0 : index
    %c0_2 = arith.constant 0 : index
    %1 = vector.load %arg2[%c0_1, %c0_2] : memref<16x512xbf16, #tpu.memory_space<vmem>>, vector<16x512xbf16>
    %cst = arith.constant dense<0.000000e+00> : vector<8x512xf32>
    %2 = tpu.matmul %0, %1, %cst {dimension_numbers = #tpu.dot_dimension_numbers<[1], [0], [0], [1], [0, 0, 1, 1], [], []>} : vector<8x16xbf16>, vector<16x512xbf16>, vector<8x512xf32> -> vector<8x512xf32>
    %c0_3 = arith.constant 0 : index
    %c0_4 = arith.constant 0 : index
    %3 = vector.load %arg3[%c0_3, %c0_4] : memref<8x1xf32, #tpu.memory_space<vmem>>, vector<8x1xf32>
    %4 = vector.broadcast %3 : vector<8x1xf32> to vector<8x512xf32>
    %5 = arith.addf %2, %4 : vector<8x512xf32>
    %cst_5 = arith.constant 0.000000e+00 : f32
    %6 = vector.broadcast %cst_5 : f32 to vector<8x512xf32>
    %7 = arith.cmpf oge, %5, %6 : vector<8x512xf32>
    %cst_6 = arith.constant 0.00999999977 : f32
    %8 = vector.broadcast %cst_6 : f32 to vector<8x512xf32>
    %9 = arith.mulf %8, %5 : vector<8x512xf32>
    %10 = arith.select %7, %5, %9 : vector<8x512xi1>, vector<8x512xf32>
    %c0_7 = arith.constant 0 : index
    %c0_8 = arith.constant 0 : index
    %11 = vector.load %arg4[%c0_7, %c0_8] : memref<8x512xf32, #tpu.memory_space<vmem>>, vector<8x512xf32>
    tpu.vector_store %arg4[%c0_7, %c0_8], %10 {strides = array<i32>} : memref<8x512xf32, #tpu.memory_space<vmem>>, vector<8x512xf32>,
    return
  }
  func.func @transform_0(%arg0: i32) -> (i32, i32) {
    %c0_i32 = arith.constant 0 : i32
    %c0_i32_0 = arith.constant 0 : i32
    %c0_i32_1 = arith.constant 0 : i32
    return %c0_i32, %c0_i32_0 : i32, i32
  }
  func.func @transform_1(%arg0: i32) -> (i32, i32) {
    %c0_i32 = arith.constant 0 : i32
    %c0_i32_0 = arith.constant 0 : i32
    return %c0_i32, %arg0 : i32, i32
  }
  func.func @transform_2(%arg0: i32) -> (i32, i32) {
    %c0_i32 = arith.constant 0 : i32
    %c0_i32_0 = arith.constant 0 : i32
    %c0_i32_1 = arith.constant 0 : i32
    return %c0_i32, %c0_i32_0 : i32, i32
  }
  func.func @transform_3(%arg0: i32) -> (i32, i32) {
    %c0_i32 = arith.constant 0 : i32
    %c0_i32_0 = arith.constant 0 : i32
    return %c0_i32, %arg0 : i32, i32
  }
}

module attributes {stable_mosaic.version = 11 : i64} {
  func.func @_conv_mm_kernel(%arg0: i32, %arg1: memref<8x224xbf16, #tpu.memory_space<vmem>>, %arg2: memref<224x512xbf16, #tpu.memory_space<vmem>>, %arg3: memref<8x1xf32, #tpu.memory_space<vmem>>, %arg4: memref<8x512xf32, #tpu.memory_space<vmem>>) attributes {dimension_semantics = [#tpu.dimension_semantics<parallel>], iteration_bounds = array<i64: 4>, scalar_prefetch = 0 : i64, scratch_operands = 0 : i64, tpu.core_type = #tpu.core_type<tc>, window_params = [{pipeline_mode = #tpu.pipeline_mode<synchronous>, transform_indices = @transform_0, window_bounds = array<i64: 8, 224>}, {transform_indices = @transform_1, window_bounds = array<i64: 224, 512>}, {pipeline_mode = #tpu.pipeline_mode<synchronous>, transform_indices = @transform_2, window_bounds = array<i64: 8, 1>}, {transform_indices = @transform_3, window_bounds = array<i64: 8, 512>}]} {
    %c0 = arith.constant 0 : index
    %c0_0 = arith.constant 0 : index
    %0 = vector.load %arg1[%c0, %c0_0] : memref<8x224xbf16, #tpu.memory_space<vmem>>, vector<8x224xbf16>
    %c0_1 = arith.constant 0 : index
    %c0_2 = arith.constant 0 : index
    %1 = vector.load %arg2[%c0_1, %c0_2] : memref<224x512xbf16, #tpu.memory_space<vmem>>, vector<224x512xbf16>
    %cst = arith.constant dense<0.000000e+00> : vector<8x512xf32>
    %2 = tpu.matmul %0, %1, %cst {dimension_numbers = #tpu.dot_dimension_numbers<[1], [0], [0], [1], [0, 0, 1, 1], [], []>} : vector<8x224xbf16>, vector<224x512xbf16>, vector<8x512xf32> -> vector<8x512xf32>
    %c0_3 = arith.constant 0 : index
    %c0_4 = arith.constant 0 : index
    %3 = vector.load %arg3[%c0_3, %c0_4] : memref<8x1xf32, #tpu.memory_space<vmem>>, vector<8x1xf32>
    %4 = vector.broadcast %3 : vector<8x1xf32> to vector<8x512xf32>
    %5 = arith.addf %2, %4 : vector<8x512xf32>
    %cst_5 = arith.constant 0.000000e+00 : f32
    %6 = vector.broadcast %cst_5 : f32 to vector<8x512xf32>
    %7 = arith.cmpf oge, %5, %6 : vector<8x512xf32>
    %cst_6 = arith.constant 0.00999999977 : f32
    %8 = vector.broadcast %cst_6 : f32 to vector<8x512xf32>
    %9 = arith.mulf %8, %5 : vector<8x512xf32>
    %10 = arith.select %7, %5, %9 : vector<8x512xi1>, vector<8x512xf32>
    %c0_7 = arith.constant 0 : index
    %c0_8 = arith.constant 0 : index
    %11 = vector.load %arg4[%c0_7, %c0_8] : memref<8x512xf32, #tpu.memory_space<vmem>>, vector<8x512xf32>
    tpu.vector_store %arg4[%c0_7, %c0_8], %10 {strides = array<i32>} : memref<8x512xf32, #tpu.memory_space<vmem>>, vector<8x512xf32>,
    return
  }
  func.func @transform_0(%arg0: i32) -> (i32, i32) {
    %c0_i32 = arith.constant 0 : i32
    %c0_i32_0 = arith.constant 0 : i32
    %c0_i32_1 = arith.constant 0 : i32
    return %c0_i32, %c0_i32_0 : i32, i32
  }
  func.func @transform_1(%arg0: i32) -> (i32, i32) {
    %c0_i32 = arith.constant 0 : i32
    %c0_i32_0 = arith.constant 0 : i32
    return %c0_i32, %arg0 : i32, i32
  }
  func.func @transform_2(%arg0: i32) -> (i32, i32) {
    %c0_i32 = arith.constant 0 : i32
    %c0_i32_0 = arith.constant 0 : i32
    %c0_i32_1 = arith.constant 0 : i32
    return %c0_i32, %c0_i32_0 : i32, i32
  }
  func.func @transform_3(%arg0: i32) -> (i32, i32) {
    %c0_i32 = arith.constant 0 : i32
    %c0_i32_0 = arith.constant 0 : i32
    return %c0_i32, %arg0 : i32, i32
  }
}

module attributes {stable_mosaic.version = 11 : i64} {
  func.func @_conv_mm_kernel(%arg0: i32, %arg1: memref<8x16xbf16, #tpu.memory_space<vmem>>, %arg2: memref<16x512xbf16, #tpu.memory_space<vmem>>, %arg3: memref<8x1xf32, #tpu.memory_space<vmem>>, %arg4: memref<8x512xf32, #tpu.memory_space<vmem>>) attributes {dimension_semantics = [#tpu.dimension_semantics<parallel>], iteration_bounds = array<i64: 4>, scalar_prefetch = 0 : i64, scratch_operands = 0 : i64, tpu.core_type = #tpu.core_type<tc>, window_params = [{pipeline_mode = #tpu.pipeline_mode<synchronous>, transform_indices = @transform_0, window_bounds = array<i64: 8, 16>}, {transform_indices = @transform_1, window_bounds = array<i64: 16, 512>}, {pipeline_mode = #tpu.pipeline_mode<synchronous>, transform_indices = @transform_2, window_bounds = array<i64: 8, 1>}, {transform_indices = @transform_3, window_bounds = array<i64: 8, 512>}]} {
    %c0 = arith.constant 0 : index
    %c0_0 = arith.constant 0 : index
    %0 = vector.load %arg1[%c0, %c0_0] : memref<8x16xbf16, #tpu.memory_space<vmem>>, vector<8x16xbf16>
    %c0_1 = arith.constant 0 : index
    %c0_2 = arith.constant 0 : index
    %1 = vector.load %arg2[%c0_1, %c0_2] : memref<16x512xbf16, #tpu.memory_space<vmem>>, vector<16x512xbf16>
    %cst = arith.constant dense<0.000000e+00> : vector<8x512xf32>
    %2 = tpu.matmul %0, %1, %cst {dimension_numbers = #tpu.dot_dimension_numbers<[1], [0], [0], [1], [0, 0, 1, 1], [], []>} : vector<8x16xbf16>, vector<16x512xbf16>, vector<8x512xf32> -> vector<8x512xf32>
    %c0_3 = arith.constant 0 : index
    %c0_4 = arith.constant 0 : index
    %3 = vector.load %arg3[%c0_3, %c0_4] : memref<8x1xf32, #tpu.memory_space<vmem>>, vector<8x1xf32>
    %4 = vector.broadcast %3 : vector<8x1xf32> to vector<8x512xf32>
    %5 = arith.addf %2, %4 : vector<8x512xf32>
    %c0_5 = arith.constant 0 : index
    %c0_6 = arith.constant 0 : index
    %6 = vector.load %arg4[%c0_5, %c0_6] : memref<8x512xf32, #tpu.memory_space<vmem>>, vector<8x512xf32>
    tpu.vector_store %arg4[%c0_5, %c0_6], %5 {strides = array<i32>} : memref<8x512xf32, #tpu.memory_space<vmem>>, vector<8x512xf32>,
    return
  }
  func.func @transform_0(%arg0: i32) -> (i32, i32) {
    %c0_i32 = arith.constant 0 : i32
    %c0_i32_0 = arith.constant 0 : i32
    %c0_i32_1 = arith.constant 0 : i32
    return %c0_i32, %c0_i32_0 : i32, i32
  }
  func.func @transform_1(%arg0: i32) -> (i32, i32) {
    %c0_i32 = arith.constant 0 : i32
    %c0_i32_0 = arith.constant 0 : i32
    return %c0_i32, %arg0 : i32, i32
  }
  func.func @transform_2(%arg0: i32) -> (i32, i32) {
    %c0_i32 = arith.constant 0 : i32
    %c0_i32_0 = arith.constant 0 : i32
    %c0_i32_1 = arith.constant 0 : i32
    return %c0_i32, %c0_i32_0 : i32, i32
  }
  func.func @transform_3(%arg0: i32) -> (i32, i32) {
    %c0_i32 = arith.constant 0 : i32
    %c0_i32_0 = arith.constant 0 : i32
    return %c0_i32, %arg0 : i32, i32
  }
}

module attributes {stable_mosaic.version = 11 : i64} {
  func.func @_mask_relabel_kernel(%arg0: i32, %arg1: memref<1xi32, #tpu.memory_space<smem>>, %arg2: memref<16x128xf32, #tpu.memory_space<vmem>>, %arg3: memref<16x128xf32, #tpu.memory_space<vmem>>, %arg4: memref<16x128xf32, #tpu.memory_space<vmem>>) attributes {dimension_semantics = [#tpu.dimension_semantics<arbitrary>], iteration_bounds = array<i64: 1>, scalar_prefetch = 0 : i64, scratch_operands = 0 : i64, tpu.core_type = #tpu.core_type<tc>, window_params = [{transform_indices = @transform_0, window_bounds = array<i64: 1>}, {pipeline_mode = #tpu.pipeline_mode<synchronous>, transform_indices = @transform_1, window_bounds = array<i64: 16, 128>}, {pipeline_mode = #tpu.pipeline_mode<synchronous>, transform_indices = @transform_2, window_bounds = array<i64: 16, 128>}, {pipeline_mode = #tpu.pipeline_mode<synchronous>, transform_indices = @transform_3, window_bounds = array<i64: 16, 128>}]} {
    %c0 = arith.constant 0 : index
    %c0_0 = arith.constant 0 : index
    %0 = vector.load %arg2[%c0, %c0_0] : memref<16x128xf32, #tpu.memory_space<vmem>>, vector<16x128xf32>
    %cst = arith.constant 2.540000e+02 : f32
    %1 = vector.broadcast %cst : f32 to vector<16x128xf32>
    %2 = arith.cmpf oeq, %0, %1 : vector<16x128xf32>
    %cst_1 = arith.constant 2.550000e+02 : f32
    %3 = vector.broadcast %cst_1 : f32 to vector<16x128xf32>
    %4 = arith.select %2, %3, %0 : vector<16x128xi1>, vector<16x128xf32>
    %c0_2 = arith.constant 0 : index
    %5 = memref.load %arg1[%c0_2] : memref<1xi32, #tpu.memory_space<smem>>
    %c0_i32 = arith.constant 0 : i32
    %6 = arith.cmpi ne, %5, %c0_i32 : i32
    %cst_3 = arith.constant 2.530000e+02 : f32
    %7 = vector.broadcast %cst_3 : f32 to vector<16x128xf32>
    %8 = arith.cmpf oeq, %4, %7 : vector<16x128xf32>
    %9 = vector.broadcast %6 : i1 to vector<16x128xi1>
    %10 = arith.andi %9, %8 : vector<16x128xi1>
    %cst_4 = arith.constant 2.550000e+02 : f32
    %11 = vector.broadcast %cst_4 : f32 to vector<16x128xf32>
    %12 = arith.select %10, %11, %4 : vector<16x128xi1>, vector<16x128xf32>
    %c0_5 = arith.constant 0 : index
    %c0_6 = arith.constant 0 : index
    %13 = vector.load %arg3[%c0_5, %c0_6] : memref<16x128xf32, #tpu.memory_space<vmem>>, vector<16x128xf32>
    %cst_7 = arith.constant 0.000000e+00 : f32
    %14 = vector.broadcast %cst_7 : f32 to vector<16x128xf32>
    %15 = arith.cmpf oeq, %13, %14 : vector<16x128xf32>
    %cst_8 = arith.constant 1.000000e+00 : f32
    %16 = vector.broadcast %cst_8 : f32 to vector<16x128xf32>
    %17 = arith.cmpf oeq, %12, %16 : vector<16x128xf32>
    %18 = arith.andi %15, %17 : vector<16x128xi1>
    %cst_9 = arith.constant 2.550000e+02 : f32
    %19 = vector.broadcast %cst_9 : f32 to vector<16x128xf32>
    %20 = arith.select %18, %19, %12 : vector<16x128xi1>, vector<16x128xf32>
    %c0_10 = arith.constant 0 : index
    %c0_11 = arith.constant 0 : index
    %21 = vector.load %arg4[%c0_10, %c0_11] : memref<16x128xf32, #tpu.memory_space<vmem>>, vector<16x128xf32>
    tpu.vector_store %arg4[%c0_10, %c0_11], %20 {strides = array<i32>} : memref<16x128xf32, #tpu.memory_space<vmem>>, vector<16x128xf32>,
    return
  }
  func.func @transform_0(%arg0: i32) -> i32 {
    %c0_i32 = arith.constant 0 : i32
    %c0_i32_0 = arith.constant 0 : i32
    return %c0_i32 : i32
  }
  func.func @transform_1(%arg0: i32) -> (i32, i32) {
    %c0_i32 = arith.constant 0 : i32
    %c0_i32_0 = arith.constant 0 : i32
    %c0_i32_1 = arith.constant 0 : i32
    return %c0_i32, %c0_i32_0 : i32, i32
  }
  func.func @transform_2(%arg0: i32) -> (i32, i32) {
    %c0_i32 = arith.constant 0 : i32
    %c0_i32_0 = arith.constant 0 : i32
    %c0_i32_1 = arith.constant 0 : i32
    return %c0_i32, %c0_i32_0 : i32, i32
  }
  func.func @transform_3(%arg0: i32) -> (i32, i32) {
    %c0_i32 = arith.constant 0 : i32
    %c0_i32_0 = arith.constant 0 : i32
    %c0_i32_1 = arith.constant 0 : i32
    return %c0_i32, %c0_i32_0 : i32, i32
  }
}

</mosaic_0001>

<bundles_post_ra>
// kernel: _forward_arrays.14
= control target key start
LH: loop header
LB: loop body
LE: loop exit
PB: predicated region body
PF: predicated region fallthrough
CT: control target
= control target key end

     0   :  { %7 = vsyncpa [#allocation3], 0  ;;  %s88_s0 = inlined_call_operand.vmem [shape: f32[2], index: 0, kind: input, shape index: {}]   ;;  %s89_s1 = inlined_call_operand.vmem [shape: f32[16,128], index: 1, kind: input, shape index: {}]   ;;  %s90_s2 = inlined_call_operand.vmem [shape: f32[16,128], index: 2, kind: output, shape index: {}]  }
   0x1   :  { %s14_s11 = sshll.u32 %s88_s0, 4  ;;  %s15_s11 = int_to_ptr.vmem [resolvable:$true] %s14_s11 }
   0x2   :  { %s43_s12 = scalar_lea.vmem %s15_s11, 16  ;;  %p48_p1 = scmp.lt.s32.totalorder %s15_s11, %s15_s11 }
   0x3   :  { %p44_p0 = scmp.ne.s32.totalorder %s15_s11, %s43_s12  ;;  %p49_p2 = scmp.lt.s32.totalorder %s43_s12, %s43_s12 }
   0x5   :  { %p50_p3 = por %p49_p2, %p48_p1 }
   0x7   :  { %p51_p4 = pnand %p50_p3, %p44_p0 }
   0x9   :  { %54 = shalt.err (!%p51_p4)
}
   0xa   :  { %s57_s13 = smov [#allocation2]  }
   0xb   :  { %17 = dma.vmem_to_smem %s15_s11, 16, %s57_s13, [#allocation3]  }
   0xc   :  { %55 = dma.done.wait [#allocation3], 16  }
   0xd   :  { %56 = vsyncadd [#allocation3], 4294967280 }
   0xe   :  { %23 = sfence }
   0xf   :  { %s26_s14 = sld [smem:[#allocation2]]  ;;  %v24_v0 = vld [vmem:[%s89_s1] sm:$0xff]  ;;  %v25_v1 = vld [vmem:[%s89_s1 + $0x8] sm:$0xff] }
  0x10   :  { %s41_s15 = sld [smem:[#allocation2 + $0x1]] }
  0x15   :  { %v27_v2 = vstv %s26_s14 }
  0x16   :  { %v28_v3 = vmul.f32 %v27_v2, %v24_v0  ;;  %v31_v4 = vstv %s41_s15  ;;  %v29_v5 = vmul.f32 %v27_v2, %v25_v1 }
  0x18   :  { %v32_v6 = vadd.f32 %v31_v4, %v28_v3  ;;  %v33_v7 = vadd.f32 %v31_v4, %v29_v5 }
  0x1a   :  { %34 = vst [vmem:[%s90_s2] sm:$0xff] %v32_v6  ;;  %35 = vst [vmem:[%s90_s2 + $0x8] sm:$0xff] %v33_v7 }
  0x1b   :  { %40 = vsyncpa [#allocation3], 1 }

// kernel: _forward_arrays.16
= control target key start
LH: loop header
LB: loop body
LE: loop exit
PB: predicated region body
PF: predicated region fallthrough
CT: control target
= control target key end

     0   :  { %s492_s12 = smov 0   ;;  %s494_s13 = smov 0   ;;  %s550_s0 = inlined_call_operand.vmem [shape: bf16[8,16], index: 0, kind: input, shape index: {}]   ;;  %s551_s1 = inlined_call_operand.vmem [shape: bf16[16,4096], index: 1, kind: input, shape index: {}]   ;;  %s552_s2 = inlined_call_operand.vmem [shape: f32[8,1], index: 2, kind: input, shape index: {}]   ;;  %s553_s3 = inlined_call_operand.vmem [shape: f32[8,4096], index: 3, kind: output, shape index: {}]  }
   0x1   :  { %s496_s14 = smov 0  }
   0x2 LB: > { %s395_s15 = sadd.s32 4294967295, %s469_s14   ;;  %s509_s16 = sadd.s32 1, %s469_s14   ;;  %s469_s14 = sphi %s496_s14, %s556_s14   ;;  %s465_s13 = sphi %s494_s13, %s555_s13   ;;  %s461_s12 = sphi %s492_s12, %s554_s12  }
   0x3   : > { %s38_s17 = ssub.s32 %s469_s14, %s509_s16  ;;  %s41_s18 = sadd.s32 1, %s465_s13 }
   0x4   : > { %p39_p0 = scmp.eq.s32.totalorder %s38_s17, 0  ;;  %p48_p1 = scmp.ne.s32.totalorder %s465_s13, %s461_s12 }
   0x5   : > { %p49_p2 = scmp.eq.s32.totalorder %s469_s14, 0  ;;  %p398_p4 = scmp.ge.s32.totalorder %s469_s14, 8 }
   0x6   : > { %s518_s19 = scalar_select %p39_p0, %s465_s13, %s41_s18  }
   0x7   : > { %p50_p3 = por %p49_p2, %p48_p1  ;;  %127 = sbr.rel (%p398_p4) target bundleno = 18 (0x12), region = 24 }
   0xc   : > { %130 = sbr.rel (!%p50_p3) target bundleno = 18 (0x12), region = 28  ;;  %s132_s20 = sand.u32 (%p50_p3), 1, %s465_s13  }
   0xd   : > { %s414_s21 = sshll.u32 (%p50_p3), %s469_s14, 4  ;;  %s399_s22 = sshll.u32 (%p50_p3), %s132_s20, 5 }
   0xe   : > { %s137_s25 = scalar_lea.vmem (%p50_p3), %s551_s1, %s414_s21  ;;  %s134_s26 = scalar_lea.vmem (%p50_p3), [#allocation2], %s399_s22 }
   0xf   : > { %v150_v0 = vld [vmem:[%s137_s25] sm:$0xff] (%p50_p3)  ;;  %v152_v1 = vld [vmem:[%s137_s25 + $0x8] sm:$0xff] (%p50_p3) }
  0x10   : > { %v154_v2 = vld [vmem:[%s137_s25 + $0x80] sm:$0xff] (%p50_p3)  ;;  %151 = vst [vmem:[%s134_s26] sm:$0xff] (%p50_p3), %v150_v0  ;;  %153 = vst [vmem:[%s134_s26 + $0x8] sm:$0xff] (%p50_p3), %v152_v1  ;;  %v156_v3 = vld [vmem:[%s137_s25 + $0x88] sm:$0xff] (%p50_p3) }
  0x11   : > { %155 = vst [vmem:[%s134_s26 + $0x10] sm:$0xff] %v154_v2  ;;  %157 = vst [vmem:[%s134_s26 + $0x18] sm:$0xff] %v156_v3 }
  0x12 PF: > { %p402_p5 = scmp.ge.s32.totalorder %s469_s14, 1  ;;  %p162_p6 = scmp.lt.s32.totalorder %s469_s14, 9 }
  0x14   : > { %p163_p7 = pnand %p402_p5, %p162_p6 }
  0x15   : > { %s169_s27 = sand.u32 (!%p163_p7), 1, %s461_s12   ;;  %s404_s7 = sshll.u32 (!%p163_p7), %s395_s15, 2 }
  0x16   : > { %166 = sbr.rel (%p163_p7) target bundleno = 237 (0xed), region = 51  ;;  %s403_s30 = sshll.u32 (!%p163_p7), %s169_s27, 5 }
  0x17   : > { %s171_s4 = scalar_lea.vmem (!%p163_p7), [#allocation2], %s403_s30  ;;  %p194_p8 = scmp.lt.s32.totalorder (!%p163_p7), %s404_s7, 31 }
  0x1b   : > { %v205_v4 = vld [vmem:[%s552_s2] sm:$0xff]  ;;  %v471_v5 = vmov 0   ;;  %v443_v7 = vld [vmem:[%s171_s4 + $0xc] ss:$16 sps:$4 sm:$0xff]   ;;  %v446_v9 = vld [vmem:[%s171_s4 + $0x8] ss:$16 sps:$4 sm:$0xff]  }
  0x1c   : > { %267 = vmatprep.mubr.bf16.mxu0 %v471_v5  ;;  %308 = vmatprep.mubr.bf16.mxu1 %v471_v5  ;;  %v441_v6 = vld [vmem:[%s171_s4 + $0x4] ss:$16 sps:$4 sm:$0xff]   ;;  %v445_v8 = vld [vmem:[%s171_s4] ss:$16 sps:$4 sm:$0xff]   ;;  %vm231_vm0 = vcmask 130048   ;;  %s558_s7 = smov (!%p194_p8, %s404_s7), 31 }
  0x1d   : > { %440 = vset.pattern.permute.xlu0 %v471_v5  ;;  %249 = vmatprep.subr.bf16.mxu0 %v441_v6  ;;  %v200_v10 = vld [vmem:[%s550_s0] sm:$0xf]  ;;  %s405_s8 = sshll.u32 %s558_s7, 3 }
  0x1e   : > { %208 = vperm.xlu0 %440, %v205_v4   ;;  %290 = vmatprep.subr.bf16.mxu1 %v443_v7  ;;  %s197_s11 = scalar_lea.vmem %s553_s3, %s405_s8 }
  0x1f   : > { %250 = vmatpush1.bf16.msra.mxu0 %v445_v8  ;;  %291 = vmatpush1.bf16.msra.mxu1 %v446_v9 }
  0x22   : > { %410 = vmatmul.mubr.msk.bf16.vlgmr.msra.gmra.mxu0 %vm231_vm0, %v200_v10  ;;  %411 = vmatmul.mubr.msk.bf16.vlgmr.msra.gmra.mxu1 %vm231_vm0, %v200_v10 }
  0x99   : > { %v209_v11 = vpop.permute.xlu0 %208 }
  0xe2   : > { %v269_v12 = vpop.f32.mrf.mxu0  ;;  %v310_v13 = vpop.f32.mrf.mxu1 }
  0xe3   : > { %v270_v14 = vadd.f32 %v269_v12, %v209_v11  ;;  %v311_v15 = vadd.f32 %v310_v13, %v209_v11 }
  0xe4   : > { %v271_v16 = vpop.f32.mrf.mxu0  ;;  %v312_v17 = vpop.f32.mrf.mxu1 }
  0xe5   : > { %vm317_vm1 = vcmp.ge.f32.partialorder %v270_v14, 0.0  ;;  %v321_v18 = vmul.f32 0.01, %v270_v14  ;;  %vm319_vm2 = vcmp.ge.f32.partialorder %v311_v15, 0.0  ;;  %v323_v19 = vmul.f32 0.01, %v311_v15 }
  0xe6   : > { %v272_v20 = vadd.f32 %v271_v16, %v209_v11  ;;  %v313_v21 = vadd.f32 %v312_v17, %v209_v11  ;;  %v273_v22 = vpop.f32.mrf.mxu0  ;;  %v314_v23 = vpop.f32.mrf.mxu1 }
  0xe7   : > { %v325_v24 = vsel %vm317_vm1, %v270_v14, %v321_v18  ;;  %v327_v25 = vsel %vm319_vm2, %v311_v15, %v323_v19 }
  0xe8   : > { %329 = vst [vmem:[%s197_s11] sm:$0xff] %v325_v24  ;;  %331 = vst [vmem:[%s197_s11 + $0x10] sm:$0xff] %v327_v25  ;;  %vm318_vm3 = vcmp.ge.f32.partialorder %v272_v20, 0.0  ;;  %v322_v26 = vmul.f32 0.01, %v272_v20  ;;  %vm320_vm4 = vcmp.ge.f32.partialorder %v313_v21, 0.0  ;;  %v274_v28 = vpop.f32.mrf.mxu0  ;;  %v315_v29 = vpop.f32.mrf.mxu1 }
  0xe9   : > { %v324_v27 = vmul.f32 0.01, %v313_v21 }
  0xea   : > { %v326_v30 = vsel %vm318_vm3, %v272_v20, %v322_v26 }
  0xeb   : > { %v328_v31 = vsel %vm320_vm4, %v313_v21, %v324_v27  ;;  %330 = vst [vmem:[%s197_s11 + $0x8] sm:$0xff] %v326_v30 }
  0xec   : > { %332 = vst [vmem:[%s197_s11 + $0x18] sm:$0xff] %v328_v31 }
  0xed PF: > { %p10_p9 = scmp.ge.s32.totalorder %s509_s16, 10   ;;  %s554_s12 = smov %s465_s13 }
  0xee   : > { %s555_s13 = smov %s518_s19  ;;  %s556_s14 = smov %s509_s16 }
  0xef   :  { %12 = sbr.rel (!%p10_p9) target bundleno = 2 (0x2), region = 90 }

// kernel: _forward_arrays.17
= control target key start
LH: loop header
LB: loop body
LE: loop exit
PB: predicated region body
PF: predicated region fallthrough
CT: control target
= control target key end

     0   :  { %s726_s12 = smov 0   ;;  %s728_s13 = smov 0   ;;  %s883_s0 = inlined_call_operand.vmem [shape: bf16[16,80], index: 0, kind: input, shape index: {}]   ;;  %s884_s1 = inlined_call_operand.vmem [shape: bf16[80,1024], index: 1, kind: input, shape index: {}]   ;;  %s885_s2 = inlined_call_operand.vmem [shape: f32[16,1], index: 2, kind: input, shape index: {}]   ;;  %s886_s3 = inlined_call_operand.vmem [shape: f32[16,1024], index: 3, kind: output, shape index: {}]  }
   0x1   :  { %s730_s14 = smov 0  }
   0x2 LB: > { %s584_s15 = sadd.s32 4294967295, %s703_s14   ;;  %s743_s16 = sadd.s32 1, %s703_s14   ;;  %s703_s14 = sphi %s730_s14, %s890_s14   ;;  %s699_s13 = sphi %s728_s13, %s889_s13   ;;  %s695_s12 = sphi %s726_s12, %s888_s12  }
   0x3   : > { %s38_s17 = ssub.s32 %s703_s14, %s743_s16  ;;  %s41_s18 = sadd.s32 1, %s699_s13 }
   0x4   : > { %p39_p0 = scmp.eq.s32.totalorder %s38_s17, 0  ;;  %p48_p1 = scmp.ne.s32.totalorder %s699_s13, %s695_s12 }
   0x5   : > { %p49_p2 = scmp.eq.s32.totalorder %s703_s14, 0  ;;  %p99_p3 = scmp.eq.s32.totalorder %s584_s15, 1 }
   0x6   : > { %s754_s19 = scalar_select %p39_p0, %s699_s13, %s41_s18  }
   0x7   : > { %p50_p4 = por %p49_p2, %p48_p1  ;;  %p756_p5 = por %p99_p3, %p48_p1 }
   0x8   : > { %p587_p6 = scmp.ge.s32.totalorder %s703_s14, 2 }
   0xa   : > { %127 = sbr.rel (%p587_p6) target bundleno = 29 (0x1d), region = 24 }
   0xf   : > { %130 = sbr.rel (!%p50_p4) target bundleno = 29 (0x1d), region = 28  ;;  %s132_s21 = sand.u32 (%p50_p4), 1, %s699_s13  }
  0x10   : > { %s620_s22 = sshll.u32 (%p50_p4), %s703_s14, 4  ;;  %s622_s23 = smul.u32 (%p50_p4), 160, %s132_s21 }
  0x11   : > { %s766_s26 = scalar_lea.vmem (%p50_p4), %s884_s1, %s620_s22 }
  0x12   : > { %v150_v0 = vld [vmem:[%s766_s26] sm:$0xff] (%p50_p4)  ;;  %v152_v1 = vld [vmem:[%s766_s26 + $0x8] sm:$0xff] (%p50_p4)  ;;  %s774_s27 = scalar_lea.vmem (%p50_p4), [#allocation2], %s622_s23 }
  0x13   : > { %v154_v2 = vld [vmem:[%s766_s26 + $0x20] sm:$0xff] (%p50_p4)  ;;  %v156_v3 = vld [vmem:[%s766_s26 + $0x28] sm:$0xff] (%p50_p4)  ;;  %151 = vst [vmem:[%s774_s27] sm:$0xff] (%p50_p4), %v150_v0  ;;  %153 = vst [vmem:[%s774_s27 + $0x8] sm:$0xff] (%p50_p4), %v152_v1 }
  0x14   : > { %v158_v4 = vld [vmem:[%s766_s26 + $0x40] sm:$0xff]  ;;  %v160_v5 = vld [vmem:[%s766_s26 + $0x48] sm:$0xff]  ;;  %155 = vst [vmem:[%s774_s27 + $0x10] sm:$0xff] %v154_v2  ;;  %157 = vst [vmem:[%s774_s27 + $0x18] sm:$0xff] %v156_v3 }
  0x15   : > { %159 = vst [vmem:[%s774_s27 + $0x20] sm:$0xff] %v158_v4  ;;  %161 = vst [vmem:[%s774_s27 + $0x28] sm:$0xff] %v160_v5  ;;  %v162_v6 = vld [vmem:[%s766_s26 + $0x60] sm:$0xff]  ;;  %v164_v7 = vld [vmem:[%s766_s26 + $0x68] sm:$0xff] }
  0x16   : > { %v166_v8 = vld [vmem:[%s766_s26 + $0x80] sm:$0xff]  ;;  %163 = vst [vmem:[%s774_s27 + $0x30] sm:$0xff] %v162_v6  ;;  %165 = vst [vmem:[%s774_s27 + $0x38] sm:$0xff] %v164_v7  ;;  %v168_v9 = vld [vmem:[%s766_s26 + $0x88] sm:$0xff] }
  0x17   : > { %167 = vst [vmem:[%s774_s27 + $0x40] sm:$0xff] %v166_v8  ;;  %v170_v10 = vld [vmem:[%s766_s26 + $0xa0] sm:$0xff]  ;;  %v172_v11 = vld [vmem:[%s766_s26 + $0xa8] sm:$0xff]  ;;  %169 = vst [vmem:[%s774_s27 + $0x48] sm:$0xff] %v168_v9 }
  0x18   : > { %171 = vst [vmem:[%s774_s27 + $0x50] sm:$0xff] %v170_v10  ;;  %173 = vst [vmem:[%s774_s27 + $0x58] sm:$0xff] %v172_v11  ;;  %v174_v12 = vld [vmem:[%s766_s26 + $0xc0] sm:$0xff]  ;;  %v176_v13 = vld [vmem:[%s766_s26 + $0xc8] sm:$0xff] }
  0x19   : > { %v178_v14 = vld [vmem:[%s766_s26 + $0xe0] sm:$0xff]  ;;  %175 = vst [vmem:[%s774_s27 + $0x60] sm:$0xff] %v174_v12  ;;  %177 = vst [vmem:[%s774_s27 + $0x68] sm:$0xff] %v176_v13  ;;  %v180_v15 = vld [vmem:[%s766_s26 + $0xe8] sm:$0xff] }
  0x1a   : > { %179 = vst [vmem:[%s774_s27 + $0x70] sm:$0xff] %v178_v14  ;;  %v182_v16 = vld [vmem:[%s766_s26 + $0x100] sm:$0xff]  ;;  %v184_v17 = vld [vmem:[%s766_s26 + $0x108] sm:$0xff]  ;;  %181 = vst [vmem:[%s774_s27 + $0x78] sm:$0xff] %v180_v15 }
  0x1b   : > { %183 = vst [vmem:[%s774_s27 + $0x80] sm:$0xff] %v182_v16  ;;  %185 = vst [vmem:[%s774_s27 + $0x88] sm:$0xff] %v184_v17  ;;  %v186_v18 = vld [vmem:[%s766_s26 + $0x120] sm:$0xff]  ;;  %v188_v19 = vld [vmem:[%s766_s26 + $0x128] sm:$0xff] }
  0x1c   : > { %187 = vst [vmem:[%s774_s27 + $0x90] sm:$0xff] %v186_v18  ;;  %189 = vst [vmem:[%s774_s27 + $0x98] sm:$0xff] %v188_v19 }
  0x1d PF: > { %p590_p7 = scmp.ge.s32.totalorder %s703_s14, 1  ;;  %p194_p8 = scmp.lt.s32.totalorder %s703_s14, 3 }
  0x1f   : > { %p195_p9 = pnand %p590_p7, %p194_p8 }
  0x20   : > { %s201_s28 = sand.u32 (!%p195_p9), 1, %s695_s12  }
  0x21   : > { %198 = sbr.rel (%p195_p9) target bundleno = 276 (0x114), region = 51  ;;  %s591_s10 = sshll.u32 (!%p195_p9), %s201_s28, 6 }
  0x22   : > { %s623_s29 = smul.u32 (!%p195_p9), 160, %s201_s28  ;;  %s848_s11 = scalar_lea.vmem (!%p195_p9), [#allocation3], %s591_s10 }
  0x24   : > { %s821_s7 = scalar_lea.vmem (!%p195_p9), [#allocation2], %s623_s29 }
  0x26   : > { %v705_v20 = vmov 0   ;;  %v248_v21 = vld [vmem:[%s885_s2] sm:$0xff]  ;;  %v249_v22 = vld [vmem:[%s885_s2 + $0x8] sm:$0xff]  ;;  %vm365_vm0 = vcmask 654336   ;;  %s621_s12 = sshll.u32 (%p756_p5), %s584_s15, 5 }
  0x27   : > { %401 = vmatprep.mubr.bf16.mxu0 %v705_v20  ;;  %444 = vmatprep.mubr.bf16.mxu1 %v705_v20  ;;  %v650_v23 = vld [vmem:[%s821_s7 + $0x84] ss:$16 sps:$4 sm:$0xff]   ;;  %v652_v24 = vld [vmem:[%s821_s7 + $0x8c] ss:$16 sps:$4 sm:$0xff]   ;;  %v654_v25 = vld [vmem:[%s821_s7 + $0x80] ss:$16 sps:$4 sm:$0xff]   ;;  %s496_s21 = scalar_lea.vmem (%p756_p5), %s886_s3, %s621_s12 }
  0x28   : > { %649 = vset.pattern.permute.xlu0 %v705_v20  ;;  %375 = vmatprep.subr.bf16.mxu0 %v650_v23  ;;  %v655_v26 = vld [vmem:[%s821_s7 + $0x88] ss:$16 sps:$4 sm:$0xff]   ;;  %v656_v27 = vld [vmem:[%s821_s7 + $0x64] ss:$16 sps:$4 sm:$0xff]   ;;  %v658_v28 = vld [vmem:[%s821_s7 + $0x6c] ss:$16 sps:$4 sm:$0xff]  }
  0x29   : > { %252 = vperm.xlu0 %649, %v248_v21   ;;  %418 = vmatprep.subr.bf16.mxu1 %v652_v24  ;;  %v660_v29 = vld [vmem:[%s821_s7 + $0x60] ss:$16 sps:$4 sm:$0xff]   ;;  %v661_v30 = vld [vmem:[%s821_s7 + $0x68] ss:$16 sps:$4 sm:$0xff]   ;;  %v662_v31 = vld [vmem:[%s821_s7 + $0x44] ss:$16 sps:$4 sm:$0xff]  }
  0x2a   : > { %376 = vmatpush1.bf16.msra.mxu0 %v654_v25  ;;  %419 = vmatpush1.bf16.msra.mxu1 %v655_v26  ;;  %v664_v32 = vld [vmem:[%s821_s7 + $0x4c] ss:$16 sps:$4 sm:$0xff]   ;;  %v666_v33 = vld [vmem:[%s821_s7 + $0x40] ss:$16 sps:$4 sm:$0xff]   ;;  %v667_v34 = vld [vmem:[%s821_s7 + $0x48] ss:$16 sps:$4 sm:$0xff]  }
  0x2b   : > { %377 = vmatprep.subr.bf16.mxu0 %v656_v27  ;;  %420 = vmatprep.subr.bf16.mxu1 %v658_v28  ;;  %v668_v35 = vld [vmem:[%s821_s7 + $0x24] ss:$16 sps:$4 sm:$0xff]   ;;  %v670_v36 = vld [vmem:[%s821_s7 + $0x2c] ss:$16 sps:$4 sm:$0xff]   ;;  %v672_v37 = vld [vmem:[%s821_s7 + $0x20] ss:$16 sps:$4 sm:$0xff]  }
  0x2c   : > { %v673_v38 = vld [vmem:[%s821_s7 + $0x28] ss:$16 sps:$4 sm:$0xff]   ;;  %v674_v39 = vld [vmem:[%s821_s7 + $0x4] ss:$16 sps:$4 sm:$0xff]   ;;  %v676_v40 = vld [vmem:[%s821_s7 + $0xc] ss:$16 sps:$4 sm:$0xff]  }
  0x2d   : > { %257 = vperm.xlu0 %649, %v249_v22   ;;  %v678_v41 = vld [vmem:[%s821_s7] ss:$16 sps:$4 sm:$0xff]   ;;  %v679_v42 = vld [vmem:[%s821_s7 + $0x8] ss:$16 sps:$4 sm:$0xff]  }
  0x2e   : > { %378 = vmatpush1.bf16.msra.mxu0 %v660_v29  ;;  %421 = vmatpush1.bf16.msra.mxu1 %v661_v30  ;;  %v680_v43 = vld [vmem:[%s883_s0] sm:$0xff]  }
  0x2f   : > { %379 = vmatprep.subr.bf16.mxu0 %v662_v31  ;;  %422 = vmatprep.subr.bf16.mxu1 %v664_v32 }
  0x32   : > { %380 = vmatpush1.bf16.msra.mxu0 %v666_v33  ;;  %423 = vmatpush1.bf16.msra.mxu1 %v667_v34 }
  0x33   : > { %381 = vmatprep.subr.bf16.mxu0 %v668_v35  ;;  %424 = vmatprep.subr.bf16.mxu1 %v670_v36 }
  0x36   : > { %382 = vmatpush1.bf16.msra.mxu0 %v672_v37  ;;  %425 = vmatpush1.bf16.msra.mxu1 %v673_v38 }
  0x37   : > { %383 = vmatprep.subr.bf16.mxu0 %v674_v39  ;;  %426 = vmatprep.subr.bf16.mxu1 %v676_v40 }
  0x3a   : > { %384 = vmatpush1.bf16.msra.mxu0 %v678_v41  ;;  %427 = vmatpush1.bf16.msra.mxu1 %v679_v42 }
  0x3d   : > { %613 = vmatmul.mubr.msk.bf16.vlgmr.msra.gmra.mxu0 %vm365_vm0, %v680_v43  ;;  %614 = vmatmul.mubr.msk.bf16.vlgmr.msra.gmra.mxu1 %vm365_vm0, %v680_v43 }
  0xa4   : > { %v253_v44 = vpop.permute.xlu0 %252 }
  0xa8   : > { %v258_v53 = vpop.permute.xlu0 %257 }
  0xfd   : > { %v403_v45 = vpop.f32.mrf.mxu0  ;;  %v446_v46 = vpop.f32.mrf.mxu1 }
  0xfe   : > { %v404_v47 = vadd.f32 %v403_v45, %v253_v44  ;;  %v447_v48 = vadd.f32 %v446_v46, %v253_v44 }
  0xff   : > { %v405_v49 = vpop.f32.mrf.mxu0  ;;  %v448_v50 = vpop.f32.mrf.mxu1 }
 0x100   : > { %vm455_vm1 = vcmp.ge.f32.partialorder %v404_v47, 0.0  ;;  %v463_v51 = vmul.f32 0.01, %v404_v47  ;;  %vm457_vm2 = vcmp.ge.f32.partialorder %v447_v48, 0.0  ;;  %v465_v52 = vmul.f32 0.01, %v447_v48 }
 0x101   : > { %v406_v54 = vadd.f32 %v405_v49, %v253_v44  ;;  %v449_v55 = vadd.f32 %v448_v50, %v253_v44  ;;  %v407_v56 = vpop.f32.mrf.mxu0  ;;  %v450_v57 = vpop.f32.mrf.mxu1 }
 0x102   : > { %v471_v58 = vsel %vm455_vm1, %v404_v47, %v463_v51  ;;  %v473_v59 = vsel %vm457_vm2, %v447_v48, %v465_v52  ;;  %v408_v60 = vadd.f32 %v407_v56, %v258_v53  ;;  %v451_v61 = vadd.f32 %v450_v57, %v258_v53 }
 0x103   : > { %479 = vst [vmem:[%s848_s11] sm:$0xff] %v471_v58  ;;  %481 = vst [vmem:[%s848_s11 + $0x10] sm:$0xff] %v473_v59  ;;  %vm456_vm3 = vcmp.ge.f32.partialorder %v406_v54, 0.0  ;;  %v464_v62 = vmul.f32 0.01, %v406_v54  ;;  %vm458_vm4 = vcmp.ge.f32.partialorder %v449_v55, 0.0  ;;  %v409_v0 = vpop.f32.mrf.mxu0  ;;  %v452_v1 = vpop.f32.mrf.mxu1 }
 0x104   : > { %v466_v63 = vmul.f32 0.01, %v449_v55  ;;  %vm459_vm5 = vcmp.ge.f32.partialorder %v408_v60, 0.0  ;;  %v467_v2 = vmul.f32 0.01, %v408_v60  ;;  %vm461_vm6 = vcmp.ge.f32.partialorder %v451_v61, 0.0 }
 0x105   : > { %v469_v3 = vmul.f32 0.01, %v451_v61  ;;  %v472_v4 = vsel %vm456_vm3, %v406_v54, %v464_v62  ;;  %v410_v6 = vadd.f32 %v409_v0, %v258_v53  ;;  %v453_v7 = vadd.f32 %v452_v1, %v258_v53 }
 0x106   : > { %v474_v5 = vsel %vm458_vm4, %v449_v55, %v466_v63  ;;  %480 = vst [vmem:[%s848_s11 + $0x8] sm:$0xff] %v472_v4  ;;  %v475_v8 = vsel %vm459_vm5, %v408_v60, %v467_v2 }
 0x107   : > { %482 = vst [vmem:[%s848_s11 + $0x18] sm:$0xff] %v474_v5  ;;  %v477_v9 = vsel %vm461_vm6, %v451_v61, %v469_v3  ;;  %483 = vst [vmem:[%s848_s11 + $0x20] sm:$0xff] %v475_v8  ;;  %vm460_vm7 = vcmp.ge.f32.partialorder %v410_v6, 0.0  ;;  %v468_v10 = vmul.f32 0.01, %v410_v6  ;;  %vm462_vm8 = vcmp.ge.f32.partialorder %v453_v7, 0.0 }
 0x108   : > { %485 = vst [vmem:[%s848_s11 + $0x30] sm:$0xff] %v477_v9  ;;  %v470_v11 = vmul.f32 0.01, %v453_v7  ;;  %493 = sbr.rel (!%p756_p5) target bundleno = 276 (0x114), region = 59 }
 0x109   : > { %v476_v12 = vsel %vm460_vm7, %v410_v6, %v468_v10 }
 0x10a   : > { %v478_v13 = vsel %vm462_vm8, %v453_v7, %v470_v11  ;;  %484 = vst [vmem:[%s848_s11 + $0x28] sm:$0xff] %v476_v12  ;;  %v509_v14 = vld [vmem:[%s848_s11] sm:$0xff] (%p756_p5)  ;;  %v513_v16 = vld [vmem:[%s848_s11 + $0x10] sm:$0xff] (%p756_p5) }
 0x10b   : > { %486 = vst [vmem:[%s848_s11 + $0x38] sm:$0xff] %v478_v13  ;;  %510 = vst [vmem:[%s496_s21] sm:$0xff] (%p756_p5), %v509_v14 }
 0x10c   : > { %514 = vst [vmem:[%s496_s21 + $0x10] sm:$0xff] (%p756_p5), %v513_v16 }
 0x10d   : > { %v511_v15 = vld [vmem:[%s848_s11 + $0x8] sm:$0xff] }
 0x10e   : > { %v515_v17 = vld [vmem:[%s848_s11 + $0x18] sm:$0xff]  ;;  %v517_v18 = vld [vmem:[%s848_s11 + $0x20] sm:$0xff]  ;;  %512 = vst [vmem:[%s496_s21 + $0x8] sm:$0xff] %v511_v15 }
 0x10f   : > { %516 = vst [vmem:[%s496_s21 + $0x18] sm:$0xff] %v515_v17  ;;  %518 = vst [vmem:[%s496_s21 + $0x40] sm:$0xff] %v517_v18  ;;  %v521_v20 = vld [vmem:[%s848_s11 + $0x30] sm:$0xff] }
 0x110   : > { %522 = vst [vmem:[%s496_s21 + $0x50] sm:$0xff] %v521_v20 }
 0x111   : > { %v519_v19 = vld [vmem:[%s848_s11 + $0x28] sm:$0xff] }
 0x112   : > { %520 = vst [vmem:[%s496_s21 + $0x48] sm:$0xff] %v519_v19  ;;  %v523_v21 = vld [vmem:[%s848_s11 + $0x38] sm:$0xff] }
 0x113   : > { %524 = vst [vmem:[%s496_s21 + $0x58] sm:$0xff] %v523_v21 }
 0x114 PF: > { %p10_p10 = scmp.ge.s32.totalorder %s743_s16, 4   ;;  %s888_s12 = smov %s699_s13 }
 0x115   : > { %s889_s13 = smov %s754_s19  ;;  %s890_s14 = smov %s743_s16 }
 0x116   :  { %12 = sbr.rel (!%p10_p10) target bundleno = 2 (0x2), region = 113 }

// kernel: _forward_arrays.18
= control target key start
LH: loop header
LB: loop body
LE: loop exit
PB: predicated region body
PF: predicated region fallthrough
CT: control target
= control target key end

     0   :  { %v533_v0 = vmov 0   ;;  %vm301_vm0 = vcmask 392192   ;;  %s698_s1 = inlined_call_operand.vmem [shape: bf16[432,128], index: 1, kind: input, shape index: {}]   ;;  %s699_s0 = inlined_call_operand.vmem [shape: bf16[32,432], index: 0, kind: input, shape index: {}]   ;;  %s700_s2 = inlined_call_operand.vmem [shape: f32[32,1], index: 2, kind: input, shape index: {}]   ;;  %s701_s3 = inlined_call_operand.vmem [shape: f32[32,128], index: 3, kind: output, shape index: {}]  }
   0x1   :  { %357 = vmatprep.subr.bf16.mxu1 %v533_v0  ;;  %v494_v1 = vld [vmem:[%s698_s1 + $0x78] sm:$0xff]   ;;  %492 = vset.pattern.permute.xlu0 %v533_v0  ;;  %v497_v4 = vld [vmem:[%s698_s1 + $0x70] sm:$0xff]   ;;  %v500_v7 = vld [vmem:[%s698_s1 + $0x68] sm:$0xff]  }
   0x2   :  { %v495_v2 = vld [vmem:[%s698_s1 + $0xb8] sm:$0xff]   ;;  %493 = vset.pattern.permute.xlu1 %v533_v0  ;;  %463 = vmatprep.subr.bf16.mxu0 %v494_v1  ;;  %v498_v5 = vld [vmem:[%s698_s1 + $0xb0] sm:$0xff]   ;;  %v501_v8 = vld [vmem:[%s698_s1 + $0xa8] sm:$0xff]  }
   0x3   :  { %v496_v3 = vld [vmem:[%s698_s1 + $0x38] sm:$0xff]   ;;  %358 = vmatpush1.bf16.msra.mxu1 %v495_v2  ;;  %v499_v6 = vld [vmem:[%s698_s1 + $0x30] sm:$0xff]   ;;  %v502_v9 = vld [vmem:[%s698_s1 + $0x28] sm:$0xff]  }
   0x4   :  { %464 = vmatpush3.bf16.msra.mxu0 %v496_v3  ;;  %359 = vmatprep.subr.bf16.mxu1 %v533_v0  ;;  %v503_v10 = vld [vmem:[%s698_s1 + $0x60] sm:$0xff]   ;;  %v506_v13 = vld [vmem:[%s698_s1 + $0x58] sm:$0xff]   ;;  %v509_v16 = vld [vmem:[%s698_s1 + $0x50] sm:$0xff]  }
   0x5   :  { %465 = vmatprep.subr.bf16.mxu0 %v497_v4  ;;  %v504_v11 = vld [vmem:[%s698_s1 + $0xa0] sm:$0xff]   ;;  %v507_v14 = vld [vmem:[%s698_s1 + $0x98] sm:$0xff]   ;;  %v510_v17 = vld [vmem:[%s698_s1 + $0x90] sm:$0xff]  }
   0x6   :  { %v505_v12 = vld [vmem:[%s698_s1 + $0x20] sm:$0xff]   ;;  %v508_v15 = vld [vmem:[%s698_s1 + $0x18] sm:$0xff]   ;;  %v511_v18 = vld [vmem:[%s698_s1 + $0x10] sm:$0xff]  }
   0x7   :  { %360 = vmatpush1.bf16.msra.mxu1 %v498_v5  ;;  %v512_v19 = vld [vmem:[%s698_s1 + $0x48] sm:$0xff]   ;;  %v515_v22 = vld [vmem:[%s698_s1 + $0x40] sm:$0xff]   ;;  %v521_v28 = vld [vmem:[%s698_s1 + $0xd0] sm:$0xff]  }
   0x8   :  { %466 = vmatpush3.bf16.msra.mxu0 %v499_v6  ;;  %361 = vmatprep.subr.bf16.mxu1 %v533_v0  ;;  %v513_v20 = vld [vmem:[%s698_s1 + $0x88] sm:$0xff]   ;;  %v520_v23 = vld [vmem:[%s699_s0 + $0x4] ss:$16 sps:$4 sm:$0xff]   ;;  %v518_v26 = vld [vmem:[%s699_s0] ss:$16 sps:$4 sm:$0xff]  }
   0x9   :  { %467 = vmatprep.subr.bf16.mxu0 %v500_v7  ;;  %v514_v21 = vld [vmem:[%s698_s1 + $0x8] sm:$0xff]   ;;  %v516_v24 = vld [vmem:[%s698_s1 + $0x80] sm:$0xff]   ;;  %340 = vmatprep.mubr.bf16.mxu0 %v520_v23  ;;  %v79_v31 = vld [vmem:[%s700_s2 + $0x10] sm:$0xff] }
   0xa   :  { %v517_v25 = vld [vmem:[%s698_s1] sm:$0xff]   ;;  %v529_v27 = vld [vmem:[%s699_s0 + $0xc] ss:$16 sps:$4 sm:$0xff]   ;;  %93 = vperm.xlu1 %493, %v79_v31   ;;  %v527_v37 = vld [vmem:[%s699_s0 + $0x8] ss:$16 sps:$4 sm:$0xff]  }
   0xb   :  { %362 = vmatpush1.bf16.msra.mxu1 %v501_v8  ;;  %v523_v29 = vld [vmem:[%s699_s0 + $0x24] ss:$16 sps:$4 sm:$0xff]   ;;  %461 = vmatprep.mubr.msk.bf16.mxu1 %vm301_vm0, %v529_v27  ;;  %v78_v32 = vld [vmem:[%s700_s2 + $0x8] sm:$0xff]  ;;  %v80_v34 = vld [vmem:[%s700_s2 + $0x18] sm:$0xff] }
   0xc   :  { %468 = vmatpush3.bf16.msra.mxu0 %v502_v9  ;;  %363 = vmatprep.subr.bf16.mxu1 %v533_v0  ;;  %v77_v30 = vld [vmem:[%s700_s2] sm:$0xff]  ;;  %v522_v33 = vld [vmem:[%s698_s1 + $0xc8] sm:$0xff]  }
   0xd   :  { %469 = vmatprep.subr.bf16.mxu0 %v503_v10  ;;  %83 = vperm.xlu0 %492, %v77_v30   ;;  %v525_v35 = vld [vmem:[%s699_s0 + $0x20] ss:$16 sps:$4 sm:$0xff]   ;;  %v530_v38 = vld [vmem:[%s699_s0 + $0x2c] ss:$16 sps:$4 sm:$0xff]   ;;  %v532_v39 = vld [vmem:[%s699_s0 + $0x28] ss:$16 sps:$4 sm:$0xff]  }
   0xe   :  { %98 = vperm.xlu1 %493, %v80_v34   ;;  %v526_v36 = vld [vmem:[%s698_s1 + $0xc0] sm:$0xff]  }
   0xf   :  { %364 = vmatpush1.bf16.msra.mxu1 %v504_v11 }
  0x10   :  { %470 = vmatpush3.bf16.msra.mxu0 %v505_v12  ;;  %365 = vmatprep.subr.bf16.mxu1 %v533_v0 }
  0x11   :  { %471 = vmatprep.subr.bf16.mxu0 %v506_v13  ;;  %88 = vperm.xlu0 %492, %v78_v32  }
  0x13   :  { %366 = vmatpush1.bf16.msra.mxu1 %v507_v14 }
  0x14   :  { %472 = vmatpush3.bf16.msra.mxu0 %v508_v15  ;;  %367 = vmatprep.subr.bf16.mxu1 %v533_v0 }
  0x15   :  { %473 = vmatprep.subr.bf16.mxu0 %v509_v16 }
  0x17   :  { %368 = vmatpush1.bf16.msra.mxu1 %v510_v17 }
  0x18   :  { %474 = vmatpush3.bf16.msra.mxu0 %v511_v18  ;;  %369 = vmatprep.subr.bf16.mxu1 %v533_v0 }
  0x19   :  { %475 = vmatprep.subr.bf16.mxu0 %v512_v19 }
  0x1b   :  { %370 = vmatpush1.bf16.msra.mxu1 %v513_v20 }
  0x1c   :  { %476 = vmatpush3.bf16.msra.mxu0 %v514_v21  ;;  %371 = vmatprep.subr.bf16.mxu1 %v533_v0 }
  0x1d   :  { %477 = vmatprep.subr.bf16.mxu0 %v515_v22 }
  0x1f   :  { %372 = vmatpush1.bf16.msra.mxu1 %v516_v24 }
  0x20   :  { %478 = vmatpush3.bf16.msra.mxu0 %v517_v25  ;;  %383 = vmatprep.subr.bf16.mxu1 %v533_v0 }
  0x23   :  { %341 = vmatmul.mubr.bf16.vlgmr.msra.gmra.mxu0 %v518_v26  ;;  %384 = vmatpush2.bf16.msra.mxu1 %v521_v28 }
  0x24   :  { %385 = vmatprep.subr.bf16.mxu1 %v533_v0  ;;  %348 = vmatprep.mubr.bf16.mxu0 %v523_v29 }
  0x27   :  { %386 = vmatpush2.bf16.msra.mxu1 %v522_v33 }
  0x28   :  { %387 = vmatprep.subr.bf16.mxu1 %v533_v0 }
  0x2b   :  { %349 = vmatmul.mubr.bf16.gmra.mxu0 %v525_v35  ;;  %388 = vmatpush2.bf16.msra.mxu1 %v526_v36 }
  0x2e   :  { %390 = vmatmul.mubr.bf16.vlgmr.msra.gmra.mxu1 %v527_v37 }
  0x2f   :  { %462 = vmatprep.mubr.msk.bf16.mxu1 %vm301_vm0, %v530_v38 }
  0x36   :  { %398 = vmatmul.mubr.bf16.gmra.mxu1 %v532_v39 }
  0x85   :  { %v94_v54 = vpop.permute.xlu1 %93 }
  0x88   :  { %v84_v43 = vpop.permute.xlu0 %83 }
  0x89   :  { %v99_v3 = vpop.permute.xlu1 %98 }
  0x8c   :  { %v89_v50 = vpop.permute.xlu0 %88 }
  0xe3   :  { %v479_v40 = vpop.f32.mrf.mxu0 }
  0xe5   :  { %v480_v41 = vpop.f32.mrf.mxu0 }
  0xe6   :  { %v481_v44 = vadd.f32 %v480_v41, %v479_v40 }
  0xe7   :  { %v482_v42 = vpop.f32.mrf.mxu0 }
  0xe8   :  { %v343_v47 = vadd.f32 %v481_v44, %v84_v43 }
  0xe9   :  { %v483_v45 = vpop.f32.mrf.mxu0 }
  0xea   :  { %v484_v48 = vadd.f32 %v483_v45, %v482_v42 }
  0xeb   :  { %v485_v46 = vpop.f32.mrf.mxu0 }
  0xec   :  { %v346_v56 = vadd.f32 %v484_v48, %v89_v50 }
  0xed   :  { %v486_v49 = vpop.f32.mrf.mxu0 }
  0xee   :  { %v391_v51 = vpop.f32.mrf.mxu1  ;;  %v487_v57 = vadd.f32 %v486_v49, %v485_v46 }
  0xef   :  { %v392_v52 = vadd.f32 %v391_v51, %v343_v47  ;;  %v488_v53 = vpop.f32.mrf.mxu0 }
  0xf0   :  { %v393_v55 = vpop.f32.mrf.mxu1  ;;  %v351_v0 = vadd.f32 %v487_v57, %v94_v54 }
  0xf1   :  { %vm406_vm1 = vcmp.ge.f32.partialorder %v392_v52, 0.0  ;;  %v410_v58 = vmul.f32 0.01, %v392_v52  ;;  %v489_v59 = vpop.f32.mrf.mxu0 }
  0xf2   :  { %v394_v60 = vpop.f32.mrf.mxu1  ;;  %v490_v1 = vadd.f32 %v489_v59, %v488_v53 }
  0xf3   :  { %v414_v61 = vsel %vm406_vm1, %v392_v52, %v410_v58  ;;  %v395_v62 = vadd.f32 %v394_v60, %v346_v56 }
  0xf4   :  { %418 = vst [vmem:[%s701_s3] sm:$0xff] %v414_v61  ;;  %v396_v63 = vpop.f32.mrf.mxu1  ;;  %v354_v8 = vadd.f32 %v490_v1, %v99_v3 }
  0xf5   :  { %vm407_vm2 = vcmp.ge.f32.partialorder %v395_v62, 0.0  ;;  %v411_v2 = vmul.f32 0.01, %v395_v62 }
  0xf6   :  { %v399_v4 = vpop.f32.mrf.mxu1 }
  0xf7   :  { %v415_v5 = vsel %vm407_vm2, %v395_v62, %v411_v2  ;;  %v400_v6 = vadd.f32 %v399_v4, %v351_v0 }
  0xf8   :  { %419 = vst [vmem:[%s701_s3 + $0x8] sm:$0xff] %v415_v5  ;;  %v401_v7 = vpop.f32.mrf.mxu1 }
  0xf9   :  { %vm408_vm3 = vcmp.ge.f32.partialorder %v400_v6, 0.0  ;;  %v412_v9 = vmul.f32 0.01, %v400_v6 }
  0xfa   :  { %v402_v10 = vpop.f32.mrf.mxu1 }
  0xfb   :  { %v416_v11 = vsel %vm408_vm3, %v400_v6, %v412_v9  ;;  %v403_v12 = vadd.f32 %v402_v10, %v354_v8 }
  0xfc   :  { %420 = vst [vmem:[%s701_s3 + $0x10] sm:$0xff] %v416_v11  ;;  %v404_v13 = vpop.f32.mrf.mxu1 }
  0xfd   :  { %vm409_vm4 = vcmp.ge.f32.partialorder %v403_v12, 0.0  ;;  %v413_v14 = vmul.f32 0.01, %v403_v12 }
  0xff   :  { %v417_v15 = vsel %vm409_vm4, %v403_v12, %v413_v14 }
 0x100   :  { %421 = vst [vmem:[%s701_s3 + $0x18] sm:$0xff] %v417_v15 }

// kernel: custom-call.26
= control target key start
LH: loop header
LB: loop body
LE: loop exit
PB: predicated region body
PF: predicated region fallthrough
CT: control target
= control target key end

     0   :  { %5 = vsyncpa [#allocation6], 0  ;;  %s909_s0 = inlined_call_operand.vmem [shape: f32[2,4,4], index: 0, kind: input, shape index: {}]   ;;  %s910_s1 = inlined_call_operand.vmem [shape: f32[2,4,4], index: 1, kind: output, shape index: {0}]   ;;  %s911_s2 = inlined_call_operand.hbm [shape: s32[2,4], index: 2, kind: output, shape index: {1}]   ;;  %s912_s3 = inlined_call_operand.vmem [shape: s32[2,4], index: 3, kind: output, shape index: {2}]  }
   0x1   :  { %7 = vsyncpa [#allocation6 + $0x1], 0  ;;  %s726_s12 = smov 0   ;;  %s728_s13 = smov 0  }
   0x2   :  { %s730_s14 = smov 0   ;;  %s732_s15 = smov 0  }
   0x3 LB: > { %s747_s16 = sadd.s32 4294967295, %s698_s15   ;;  %s563_s17 = sadd.s32 4294967294, %s698_s15   ;;  %s698_s15 = sphi %s732_s15, %s920_s15   ;;  %s694_s14 = sphi %s730_s14, %s919_s14   ;;  %s690_s13 = sphi %s728_s13, %s918_s13   ;;  %s686_s12 = sphi %s726_s12, %s917_s12  }
   0x4   : > { %s751_s18 = sadd.s32 1, %s698_s15   ;;  %s17_s19 = sshrl.u32 %s698_s15, 3 }
   0x5   : > { %s18_s20 = sshrl.u32 %s751_s18, 3  ;;  %s22_s21 = sadd.s32 1, %s694_s14 }
   0x6   : > { %s19_s22 = ssub.s32 %s17_s19, %s18_s20  ;;  %p32_p0 = scmp.ne.s32.totalorder %s694_s14, %s690_s13 }
   0x7   : > { %p20_p1 = scmp.eq.s32.totalorder %s19_s22, 0  ;;  %p33_p2 = scmp.eq.s32.totalorder %s747_s16, 1 }
   0x8   : > { %p38_p3 = scmp.ne.s32.totalorder %s690_s13, %s686_s12  ;;  %p39_p4 = scmp.eq.s32.totalorder %s563_s17, 1 }
   0x9   : > { %s762_s23 = scalar_select %p20_p1, %s694_s14, %s22_s21  }
   0xa   : > { %p764_p5 = por %p33_p2, %p32_p0  ;;  %p768_p6 = por %p39_p4, %p38_p3 }
   0xb   : > { %p565_p7 = scmp.ge.s32.totalorder %s698_s15, 2 }
   0xc   : > { %s85_s26 = sand.u32 (!%p565_p7), 1, %s698_s15   ;;  %s567_s27 = sshll.u32 (!%p565_p7), %s698_s15, 2 }
   0xd   : > { %83 = sbr.rel (%p565_p7) target bundleno = 20 (0x14), region = 16  ;;  %s566_s28 = sshll.u32 (!%p565_p7), %s85_s26, 2 }
   0xe   : > { %s89_s4 = scalar_lea.vmem (!%p565_p7), %s909_s0, %s567_s27  ;;  %s87_s5 = scalar_lea.vmem (!%p565_p7), [#allocation1], %s566_s28 }
  0x12   : > { %v106_v0 = vld [vmem:[%s89_s4] sm:$0xf] }
  0x13   : > { %107 = vst [vmem:[%s87_s5] sm:$0xf] %v106_v0 }
  0x14 PF: > { %p568_p8 = scmp.ge.s32.totalorder %s698_s15, 1  ;;  %p124_p9 = scmp.lt.s32.totalorder %s698_s15, 3 }
  0x16   : > { %p125_p10 = pnand %p568_p8, %p124_p9 }
  0x18   : > { %128 = sbr.rel (%p125_p10) target bundleno = 446 (0x1be), region = 50 }
  0x1d   : > { %s135_s6 = sand.u32 1, %s747_s16   ;;  %s146_s7 = sand.u32 1, %s690_s13   ;;  %v169_v1 = vlaneseq  ;;  %v704_v4 = vmov 0  }
  0x1e   : > { %s784_s8 = sshll.u32 %s135_s6, 2  ;;  %s788_s9 = sshll.u32 %s146_s7, 1 }
  0x1f   : > { %v791_v2 = vshrl.u32 %v169_v1, 7  ;;  %s137_s10 = scalar_lea.vmem [#allocation1], %s784_s8  ;;  %s164_s11 = sand.u32 7, %s747_s16  }
  0x20   : > { %v158_v3 = vld [vmem:[%s137_s10] sm:$0xf]  ;;  %s796_s17 = scalar_lea.vmem [#allocation4], %s164_s11  ;;  %s141_s19 = scalar_lea.vmem [#allocation3], %s784_s8 }
  0x21   : > { %159 = vst [vmem:[#allocation0] sm:$0xf] %v158_v3  ;;  %173 = vst [vmem:[#allocation9] sm:$0xff] %v791_v2  ;;  %s148_s20 = scalar_lea.vmem [#allocation5], %s788_s9  ;;  %s154_s21 = scalar_lea.vmem [#allocation8], %s788_s9 }
  0x22   : > { %168 = vst [vmem:[%s796_s17] sm:$0x1] %v704_v4  ;;  %s802_s22 = scalar_lea.vmem [#allocation7], %s164_s11  ;;  %s804_s26 = smov 0  }
  0x28   : > { %v162_v5 = vld [vmem:[#allocation0] sm:$0xff] }
  0x29   : > { %163 = vst [vmem:[#allocation2] sm:$0xff] %v162_v5 }
  0x2a LB: >> { %vm189_vm0 = vcmp.lt.s32.totalorder %v791_v2, 4  ;;  %v811_v8 = vstv %s702_s26  ;;  %s230_s27 = ssub.s32 128, %s702_s26  ;;  %v236_v38 = vand.u32 127, %v169_v1  ;;  %v239_v40 = vld [vmem:[%s796_s17] ss:$0 sm:$0xff]  ;;  %s242_s28 = scalar_lea.vmem [#allocation2], %s702_s26  ;;  %s702_s26 = sphi %s804_s26, %s179_s26  }
  0x2b   : >> { %vm188_vm1 = vcmp.ge.s32.totalorder %v791_v2, %v811_v8  ;;  %s248_s30 = scalar_lea.vmem [#allocation9], %s702_s26  ;;  %vm268_vm15 = vcmp.gt.s32.totalorder %v791_v2, %v811_v8  ;;  %s179_s26 = sadd.s32 1, %s702_s26  }
  0x2c   : >> { %vm190_vm3 = vmand %vm188_vm1, %vm189_vm0  ;;  %vm260_vm12 = vcmp.gt.s32.totalorder %v236_v38, %v811_v8  ;;  %vm237_vm13 = vcmp.eq.s32.totalorder %v236_v38, %v811_v8  ;;  %v250_v42 = vld [vmem:[%s248_s30] ss:$0 sm:$0xff]  ;;  %p176_p11 = scmp.ge.s32.totalorder %s179_s26, 4  }
  0x2d   : >> { %vm272_vm1 = vmand %vm268_vm15, %vm237_vm13  ;;  %s913_s6 = sshrl.u32 (%p176_p11), %s747_s16, 3  ;;  %s577_s10 = sshll.u32 (%p176_p11), %s747_s16, 2 }
  0x2e   : > { %s578_s11 = sshll.u32 (%p176_p11), %s913_s6, 5 }
  0x30   : >> { %v184_v6 = vld [vmem:[#allocation2] sm:$0xff]  ;;  %v244_v41 = vld [vmem:[%s242_s28] ss:$0 sm:$0xff] }
  0x31   : >> { %v185_v7 = vand.u32 2147483647, %v184_v6 }
  0x33   : >> { %vm573_vm2 = vcmp.gt.f32.partialorder %v185_v7, -inf }
  0x34   : >> { %vm192_vm4 = vmand %vm190_vm3, %vm573_vm2 }
  0x35   : >> { %v193_v9 = vsel %vm192_vm4, %v791_v2, %v811_v8  ;;  %v194_v10 = vsel %vm192_vm4, %v185_v7, -inf }
  0x36   : >> { %v195_v11 = vrot.slane %v194_v10, 1  ;;  %v196_v12 = vrot.slane %v193_v9, 1 }
  0x38   : >> { %vm197_vm5 = vcmp.ge.f32.partialorder %v195_v11, %v194_v10  ;;  %v200_v13 = vrot.slane %v195_v11, 1  ;;  %v201_v14 = vrot.slane %v196_v12, 1 }
  0x39   : >> { %v198_v15 = vsel %vm197_vm5, %v195_v11, %v194_v10  ;;  %v199_v16 = vsel %vm197_vm5, %v196_v12, %v193_v9 }
  0x3a   : >> { %vm202_vm6 = vcmp.ge.f32.partialorder %v200_v13, %v198_v15  ;;  %v205_v17 = vrot.slane %v200_v13, 1  ;;  %v206_v18 = vrot.slane %v201_v14, 1 }
  0x3b   : >> { %v203_v19 = vsel %vm202_vm6, %v200_v13, %v198_v15  ;;  %v204_v20 = vsel %vm202_vm6, %v201_v14, %v199_v16 }
  0x3c   : >> { %vm207_vm7 = vcmp.ge.f32.partialorder %v205_v17, %v203_v19  ;;  %v210_v21 = vrot.slane %v205_v17, 1  ;;  %v211_v22 = vrot.slane %v206_v18, 1 }
  0x3d   : >> { %v208_v23 = vsel %vm207_vm7, %v205_v17, %v203_v19  ;;  %v209_v24 = vsel %vm207_vm7, %v206_v18, %v204_v20 }
  0x3e   : >> { %vm212_vm8 = vcmp.ge.f32.partialorder %v210_v21, %v208_v23  ;;  %v215_v25 = vrot.slane %v210_v21, 1  ;;  %v216_v26 = vrot.slane %v211_v22, 1 }
  0x3f   : >> { %v213_v27 = vsel %vm212_vm8, %v210_v21, %v208_v23  ;;  %v214_v28 = vsel %vm212_vm8, %v211_v22, %v209_v24 }
  0x40   : >> { %vm217_vm9 = vcmp.ge.f32.partialorder %v215_v25, %v213_v27  ;;  %v220_v29 = vrot.slane %v215_v25, 1  ;;  %v221_v30 = vrot.slane %v216_v26, 1 }
  0x41   : >> { %v218_v31 = vsel %vm217_vm9, %v215_v25, %v213_v27  ;;  %v219_v32 = vsel %vm217_vm9, %v216_v26, %v214_v28 }
  0x42   : >> { %vm222_vm10 = vcmp.ge.f32.partialorder %v220_v29, %v218_v31  ;;  %v225_v33 = vrot.slane %v220_v29, 1  ;;  %v226_v34 = vrot.slane %v221_v30, 1 }
  0x43   : >> { %v223_v35 = vsel %vm222_vm10, %v220_v29, %v218_v31  ;;  %v224_v36 = vsel %vm222_vm10, %v221_v30, %v219_v32 }
  0x44   : >> { %vm227_vm11 = vcmp.ge.f32.partialorder %v225_v33, %v223_v35 }
  0x45   : >> { %v229_v37 = vsel %vm227_vm11, %v226_v34, %v224_v36 }
  0x46   : >> { %231 = vrot.lane.b32.xlu0 %v229_v37, %s230_s27  ;;  %s849_s27 = scalar_lea.vmem (%p176_p11), %s910_s1, %s577_s10 }
  0xb8   : >> { %v232_v39 = vpop.permute.xlu0 %231 }
  0xb9   : >> { %582 = vpush %v232_v39 }
  0xea   : >> { %s583_s29 = spop %582 }
  0xeb   : >> { %v238_v43 = vstv %s583_s29  ;;  %s243_s4 = scalar_lea.vmem [#allocation2], %s583_s29  ;;  %s249_s5 = scalar_lea.vmem [#allocation9], %s583_s29 }
  0xec   : >> { %v245_v44 = vld [vmem:[%s243_s4] ss:$0 sm:$0xff]  ;;  %v240_v46 = vsel %vm237_vm13, %v238_v43, %v239_v40 }
  0xed   : >> { %v251_v45 = vld [vmem:[%s249_s5] ss:$0 sm:$0xff]  ;;  %246 = vst [vmem:[%s243_s4] sm:$0x1] %v244_v41  ;;  %vm254_vm14 = vcmp.ne.f32.partialorder %v245_v44, 0.0  ;;  %241 = vst [vmem:[%s796_s17] sm:$0x1] %v240_v46  ;;  %v261_v53 = vsel %vm260_vm12, %v245_v44, 0.0 }
  0xee   : >> { %252 = vst [vmem:[%s249_s5] sm:$0x1] %v250_v42  ;;  %247 = vst [vmem:[%s242_s28] sm:$0x1] %v245_v44  ;;  %s410_s4 = sshll.u32 (%p176_p11), %s148_s20, 4  ;;  %s357_s5 = scalar_lea.sflag (%p176_p11), [#allocation6], %s146_s7  ;;  %s411_s4 = int_to_ptr.vmem [resolvable:$true] %s410_s4 }
  0xef   : >> { %253 = vst [vmem:[%s248_s30] sm:$0x1] %v251_v45  ;;  %vm255_vm0 = vmand %vm237_vm13, %vm254_vm14  ;;  %s854_s30 = scalar_lea.hbm (%p176_p11), %s911_s2, %s578_s11  ;;  %s634_s6 = scalar_lea.vmem (%p176_p11), %s411_s4, 32 }
  0xf0   : >> { %v256_v47 = vsel %vm255_vm0, %v245_v44, 1.0  ;;  %p635_p12 = scmp.ne.s32.totalorder (%p176_p11), %s411_s4, %s634_s6  ;;  %s705_s17 = smov (%p176_p11), [#allocation5]  }
  0xf1   : >> { %v269_v48 = vsel %vm268_vm15, %v256_v47, 1.0  ;;  %s638_s10 = sshll.u32 (%p176_p11), %s705_s17, 4  ;;  %s639_s10 = int_to_ptr.vmem [resolvable:$false] %s638_s10 }
  0xf2   : >> { %632 = vrcp.f32 %v269_v48  ;;  %p636_p13 = pnand (%p176_p11), %p635_p12, %p764_p5  ;;  %s640_s26 = scalar_lea.vmem (%p176_p11), %s639_s10, 64 }
  0xf3   : > { %p641_p1 = scmp.lt.s32.totalorder (%p176_p11), %s411_s4, %s639_s10  ;;  %p642_p2 = scmp.lt.s32.totalorder (%p176_p11), %s640_s26, %s634_s6 }
  0xf4   : > { %v340_v59 = vld [vmem:[#allocation4] sm:$0x3] (%p176_p11)  ;;  %p637_p0 = pneg (%p176_p11), %p636_p13 }
  0xf5   : >> { %v265_v50 = vld [vmem:[#allocation2] sm:$0xff]  ;;  %343 = vst [vmem:[%s148_s20] sm:$0x3] (%p176_p11), %v340_v59  ;;  %p643_p3 = por (%p176_p11), %p642_p2, %p641_p1 }
  0xf6   : > { %v279_v57 = vld [vmem:[#allocation9] sm:$0xff] (%p176_p11) }
  0xf7   : > { %p644_p4 = pnand (%p176_p11), %p643_p3, %p637_p0 }
  0xff   : >> { %v633_v49 = vpop.eup %632 }
 0x100   : >> { %v271_v51 = vmul.f32 %v633_v49, %v265_v50 }
 0x102   : >> { %v273_v52 = vsel %vm272_vm1, %v271_v51, 0.0 }
 0x103   : >> { %274 = vadd.xlane.f32.xlu0 %v273_v52 }
 0x130   : > { %295 = vxpose.xlu0.b32.start.end [1/1] (short) (narrow) (%p176_p11), %v279_v57, 8 }
 0x18c   : >> { %v275_v54 = vpop.xlane.xlu0 %274 }
 0x18d   : >> { %v276_v55 = vmul.f32 %v275_v54, %v261_v53  ;;  %178 = sbr.rel (!%p176_p11) target bundleno = 42 (0x2a), region = 202 }
 0x18f   : >> { %v277_v56 = vsub.f32 %v271_v51, %v276_v55 }
 0x191   : >> { %278 = vst [vmem:[#allocation2] sm:$0xff] %v277_v56 }
 0x198   : > { %v332_v58 = vld [vmem:[#allocation2] sm:$0xf] }
 0x199   : > { %335 = vst [vmem:[%s141_s19] sm:$0xf] %v332_v58 }
 0x1a0   : > { %v383_v60 = vld [vmem:[%s141_s19] sm:$0xf] }
 0x1a1   : > { %647 = shalt.err (!%p644_p4)
}
 0x1a2   : > { %s648_s8 = scalar_lea.hbm %s854_s30, 32  ;;  %s652_s20 = scalar_lea.hbm %s911_s2, 32 }
 0x1a3   : > { %p649_p8 = scmp.ne.s32.totalorder %s854_s30, %s648_s8  ;;  %p653_p11 = scmp.lt.s32.totalorder %s854_s30, %s911_s2 }
 0x1a4   : > { %p654_p12 = scmp.lt.s32.totalorder %s652_s20, %s648_s8 }
 0x1a5   : > { %p650_p9 = pnand %p649_p8, %p764_p5 }
 0x1a6   : > { %p655_p13 = por %p654_p12, %p653_p11 }
 0x1a7   : > { %p651_p10 = pneg %p650_p9 }
 0x1a9   : > { %p656_p0 = pnand %p655_p13, %p651_p10 }
 0x1ab   : > { %659 = shalt.err (!%p656_p0)
}
 0x1ac   : > { %584 = dma.vmem_to_hbm [thread:$0]  (%p764_p5), %s411_s4, 32, %s854_s30, %s357_s5   ;;  %384 = vst [vmem:[%s849_s27] sm:$0xf] %v383_v60  ;;  %v311_v61 = vpop.trf.xlu0 }
 0x1ad   : > { %327 = vst [vmem:[%s802_s22] sm:$0x1] %v311_v61  ;;  %s916_s6 = sshrl.u32 (%p764_p5), %s747_s16, 3 }
 0x1ae   : > { %s579_s29 = sshll.u32 (%p764_p5), %s916_s6, 1 }
 0x1af   : > { %s419_s26 = scalar_lea.vmem (%p764_p5), %s912_s3, %s579_s29 }
 0x1b1   : > { %416 = sbr.rel (!%p764_p5) target bundleno = 446 (0x1be), region = 96 }
 0x1b4   : > { %v348_v62 = vld [vmem:[#allocation7] sm:$0x3] }
 0x1b5   : > { %351 = vst [vmem:[%s154_s21] sm:$0x3] %v348_v62 }
 0x1bc   : > { %v436_v63 = vld [vmem:[%s154_s21] sm:$0x3] }
 0x1bd   : > { %437 = vst [vmem:[%s419_s26] sm:$0x3] %v436_v63 }
 0x1be PF: > { %s465_s22 = sand.u32 1, %s686_s12   ;;  %p587_p5 = pnand %p565_p7, %p768_p6 }
 0x1bf   : > { %s466_s16 = scalar_lea.sflag [#allocation6], %s465_s22 }
 0x1c0   : > { %p588_p1 = pneg %p587_p5 }
 0x1c2   : > { %681 = dma.done.wait (%p588_p1), %s466_s16, 32  }
 0x1c3   : > { %683 = vsyncadd (%p588_p1), %s466_s16, 4294967264  ;;  %p10_p2 = scmp.ge.s32.totalorder %s751_s18, 4   ;;  %s917_s12 = smov %s690_s13 }
 0x1c4   : > { %s918_s13 = smov %s694_s14  ;;  %s919_s14 = smov %s762_s23 }
 0x1c5   : > { %s920_s15 = smov %s751_s18  ;;  %12 = sbr.rel (!%p10_p2) target bundleno = 3 (0x3), region = 213 }
 0x1ca   :  { %478 = vsyncpa [#allocation6], 1 }
 0x1cb   :  { %480 = vsyncpa [#allocation6 + $0x1], 1 }

// kernel: custom-call.28
= control target key start
LH: loop header
LB: loop body
LE: loop exit
PB: predicated region body
PF: predicated region fallthrough
CT: control target
= control target key end

     0   :  { %s360_s6 = smov 0   ;;  %s362_s7 = smov 0   ;;  %s407_s0 = inlined_call_operand.vmem [shape: f32[2,1,4,4], index: 0, kind: input, shape index: {}]   ;;  %s408_s1 = inlined_call_operand.vmem [shape: f32[2,1,4,4], index: 1, kind: output, shape index: {}]  }
   0x1   :  { %s364_s8 = smov 0  }
   0x2 LB: > { %s286_s9 = sadd.s32 4294967295, %s347_s8   ;;  %s33_s10 = sadd.s32 1, %s343_s7  ;;  %s347_s8 = sphi %s364_s8, %s7_s8   ;;  %s343_s7 = sphi %s362_s7, %s410_s7   ;;  %s339_s6 = sphi %s360_s6, %s409_s6  }
   0x3   : > { %p35_p0 = scmp.ge.s32.totalorder %s33_s10, 2  ;;  %p288_p1 = scmp.ge.s32.totalorder %s347_s8, 2 }
   0x4   : > { %s49_s11 = sand.u32 (!%p288_p1), 1, %s347_s8   ;;  %s290_s12 = sshll.u32 (!%p288_p1), %s343_s7, 2 }
   0x5   : > { %s412_s10 = smov (%p35_p0, %s33_s10), 0  ;;  %47 = sbr.rel (%p288_p1) target bundleno = 12 (0xc), region = 16 }
   0x6   : > { %s289_s13 = sshll.u32 (!%p288_p1), %s49_s11, 2  ;;  %s56_s16 = scalar_lea.vmem (!%p288_p1), %s407_s0, %s290_s12 }
   0x7   : > { %s51_s17 = scalar_lea.vmem (!%p288_p1), [#allocation1], %s289_s13 }
   0xa   : > { %v73_v0 = vld [vmem:[%s56_s16] sm:$0xf] }
   0xb   : > { %74 = vst [vmem:[%s51_s17] sm:$0xf] %v73_v0 }
   0xc PF: > { %p291_p2 = scmp.ge.s32.totalorder %s347_s8, 1  ;;  %p91_p3 = scmp.lt.s32.totalorder %s347_s8, 3 }
   0xe   : > { %p92_p4 = pnand %p291_p2, %p91_p3 }
  0x10   : > { %95 = sbr.rel (%p92_p4) target bundleno = 641 (0x281), region = 50 }
  0x15   : > { %s387_s18 = sand.u32 1, %s286_s9   ;;  %v114_v1 = vlaneseq  ;;  %v349_v11 = vmov -1.0   ;;  %s295_s22 = sshll.u32 %s339_s6, 2 }
  0x16   : > { %s292_s19 = sshll.u32 %s387_s18, 2  ;;  %s193_s25 = scalar_lea.vmem %s408_s1, %s295_s22 }
  0x17   : > { %s104_s20 = scalar_lea.vmem [#allocation1], %s292_s19  ;;  %v115_v3 = vand.u32 127, %v114_v1  ;;  %v118_v4 = vshrl.u32 %v114_v1, 7  ;;  %s108_s21 = scalar_lea.vmem [#allocation3], %s292_s19 }
  0x18   : > { %v112_v2 = vld [vmem:[%s104_s20] sm:$0xf] }
  0x19   : > { %113 = vst [vmem:[#allocation0] sm:$0xf] %v112_v2  ;;  %vm116_vm0 = vcmp.lt.s32.totalorder %v115_v3, 4  ;;  %vm125_vm1 = vcmp.ge.s32.totalorder %v118_v4, %v115_v3  ;;  %vm120_vm2 = vcmp.eq.s32.totalorder %v118_v4, %v115_v3  ;;  %vm139_vm4 = vcmp.eq.s32.totalorder %v115_v3, 0 }
  0x1a   : > { %vm126_vm3 = vmand %vm125_vm1, %vm116_vm0  ;;  %vm136_vm5 = vcmp.eq.s32.totalorder %v115_v3, %v118_v4  ;;  %v140_v12 = vsel %vm139_vm4, 1.0, %v349_v11  ;;  %vm147_vm6 = vcmp.eq.s32.totalorder %v115_v3, 1  ;;  %vm157_vm7 = vcmp.eq.s32.totalorder %v115_v3, 2 }
  0x1b   : > { %v141_v13 = vsel %vm136_vm5, %v140_v12, 0.0  ;;  %vm167_vm8 = vcmp.eq.s32.totalorder %v115_v3, 3 }
  0x20   : > { %v121_v5 = vld [vmem:[#allocation0] sm:$0xff] }
  0x21   : > { %v122_v6 = vsel %vm120_vm2, %v121_v5, 0.0  ;;  %v127_v7 = vsel %vm126_vm3, %v121_v5, 0.0 }
  0x22   : > { %123 = vadd.xlane.f32.xlu0 %v122_v6 }
  0xab   : > { %v124_v8 = vpop.xlane.xlu0 %123 }
  0xac   : > { %323 = vrcp.f32 %v124_v8  ;;  %vm174_vm9 = vweird.f32 %v124_v8 }
  0xb9   : > { %v324_v9 = vpop.eup %323 }
  0xba   : > { %v129_v10 = vmul.f32 %v324_v9, %v127_v7 }
  0xbc   : > { %130 = vst [vmem:[#allocation4] sm:$0xff] %v129_v10 }
  0xc3   : > { %v143_v14 = vld [vmem:[#allocation4 + $0x1] ss:$0 sm:$0xff]  ;;  %v153_v17 = vld [vmem:[#allocation4 + $0x2] ss:$0 sm:$0xff]  ;;  %v163_v22 = vld [vmem:[#allocation4 + $0x3] ss:$0 sm:$0xff] }
  0xc4   : > { %v144_v15 = vxor.u32 2147483648, %v143_v14  ;;  %v154_v19 = vxor.u32 2147483648, %v153_v17  ;;  %v164_v24 = vxor.u32 2147483648, %v163_v22 }
  0xc6   : > { %v148_v16 = vmul.f32 %v144_v15, %v141_v13 }
  0xc8   : > { %149 = vadd.xlane.f32.xlu0 %v148_v16 }
 0x151   : > { %v150_v18 = vpop.xlane.xlu0 %149 }
 0x152   : > { %v151_v20 = vsel %vm147_vm6, %v150_v18, %v141_v13 }
 0x153   : > { %v158_v21 = vmul.f32 %v154_v19, %v151_v20 }
 0x155   : > { %159 = vadd.xlane.f32.xlu1 %v158_v21 }
 0x1de   : > { %v160_v23 = vpop.xlane.xlu1 %159 }
 0x1df   : > { %v161_v25 = vsel %vm157_vm7, %v160_v23, %v151_v20 }
 0x1e0   : > { %v168_v26 = vmul.f32 %v164_v24, %v161_v25 }
 0x1e2   : > { %169 = vadd.xlane.f32.xlu1 %v168_v26 }
 0x26b   : > { %v170_v27 = vpop.xlane.xlu1 %169 }
 0x26c   : > { %v171_v28 = vsel %vm167_vm8, %v170_v27, %v161_v25 }
 0x26d   : > { %v173_v29 = vmul.f32 %v324_v9, %v171_v28 }
 0x26f   : > { %v175_v30 = vsel %vm174_vm9, %v171_v28, %v173_v29 }
 0x270   : > { %176 = vst [vmem:[#allocation2] sm:$0xff] %v175_v30 }
 0x277   : > { %v181_v31 = vld [vmem:[#allocation2] sm:$0xf] }
 0x278   : > { %184 = vst [vmem:[%s108_s21] sm:$0xf] %v181_v31 }
 0x27f   : > { %v210_v32 = vld [vmem:[%s108_s21] sm:$0xf] }
 0x280   : > { %211 = vst [vmem:[%s193_s25] sm:$0xf] %v210_v32 }
 0x281 PF: > { %s7_s8 = sadd.s32 1, %s347_s8   ;;  %s409_s6 = smov %s343_s7 }
 0x282   : > { %p4_p5 = scmp.ge.s32.totalorder %s7_s8, 4   ;;  %s410_s7 = smov %s412_s10 }
 0x284   :  { %6 = sbr.rel (!%p4_p5) target bundleno = 2 (0x2), region = 113 }

// kernel: custom-call.27
= control target key start
LH: loop header
LB: loop body
LE: loop exit
PB: predicated region body
PF: predicated region fallthrough
CT: control target
= control target key end

     0   :  { %s359_s6 = smov 0   ;;  %s361_s7 = smov 0   ;;  %s406_s0 = inlined_call_operand.vmem [shape: f32[2,1,4,4], index: 0, kind: input, shape index: {}]   ;;  %s407_s1 = inlined_call_operand.vmem [shape: f32[2,1,4,4], index: 1, kind: output, shape index: {}]  }
   0x1   :  { %s363_s8 = smov 0  }
   0x2 LB: > { %s285_s9 = sadd.s32 4294967295, %s346_s8   ;;  %s33_s10 = sadd.s32 1, %s342_s7  ;;  %s346_s8 = sphi %s363_s8, %s7_s8   ;;  %s342_s7 = sphi %s361_s7, %s409_s7   ;;  %s338_s6 = sphi %s359_s6, %s408_s6  }
   0x3   : > { %p35_p0 = scmp.ge.s32.totalorder %s33_s10, 2  ;;  %p287_p1 = scmp.ge.s32.totalorder %s346_s8, 2 }
   0x4   : > { %s49_s11 = sand.u32 (!%p287_p1), 1, %s346_s8   ;;  %s289_s12 = sshll.u32 (!%p287_p1), %s342_s7, 2 }
   0x5   : > { %s411_s10 = smov (%p35_p0, %s33_s10), 0  ;;  %47 = sbr.rel (%p287_p1) target bundleno = 12 (0xc), region = 16 }
   0x6   : > { %s288_s13 = sshll.u32 (!%p287_p1), %s49_s11, 2  ;;  %s56_s16 = scalar_lea.vmem (!%p287_p1), %s406_s0, %s289_s12 }
   0x7   : > { %s51_s17 = scalar_lea.vmem (!%p287_p1), [#allocation1], %s288_s13 }
   0xa   : > { %v73_v0 = vld [vmem:[%s56_s16] sm:$0xf] }
   0xb   : > { %74 = vst [vmem:[%s51_s17] sm:$0xf] %v73_v0 }
   0xc PF: > { %p290_p2 = scmp.ge.s32.totalorder %s346_s8, 1  ;;  %p91_p3 = scmp.lt.s32.totalorder %s346_s8, 3 }
   0xe   : > { %p92_p4 = pnand %p290_p2, %p91_p3 }
  0x10   : > { %95 = sbr.rel (%p92_p4) target bundleno = 641 (0x281), region = 50 }
  0x15   : > { %s386_s18 = sand.u32 1, %s285_s9   ;;  %v114_v1 = vlaneseq  ;;  %v348_v11 = vmov -1.0   ;;  %s294_s22 = sshll.u32 %s338_s6, 2 }
  0x16   : > { %s291_s19 = sshll.u32 %s386_s18, 2  ;;  %s192_s25 = scalar_lea.vmem %s407_s1, %s294_s22 }
  0x17   : > { %s104_s20 = scalar_lea.vmem [#allocation1], %s291_s19  ;;  %v115_v3 = vand.u32 127, %v114_v1  ;;  %v118_v4 = vshrl.u32 %v114_v1, 7  ;;  %s108_s21 = scalar_lea.vmem [#allocation3], %s291_s19 }
  0x18   : > { %v112_v2 = vld [vmem:[%s104_s20] sm:$0xf] }
  0x19   : > { %113 = vst [vmem:[#allocation0] sm:$0xf] %v112_v2  ;;  %vm116_vm0 = vcmp.lt.s32.totalorder %v115_v3, 4  ;;  %vm125_vm1 = vcmp.le.s32.totalorder %v118_v4, %v115_v3  ;;  %vm120_vm2 = vcmp.eq.s32.totalorder %v118_v4, %v115_v3  ;;  %vm139_vm4 = vcmp.eq.s32.totalorder %v115_v3, 3 }
  0x1a   : > { %vm126_vm3 = vmand %vm125_vm1, %vm116_vm0  ;;  %vm136_vm5 = vcmp.eq.s32.totalorder %v115_v3, %v118_v4  ;;  %v140_v12 = vsel %vm139_vm4, 1.0, %v348_v11  ;;  %vm147_vm6 = vcmp.eq.s32.totalorder %v115_v3, 2  ;;  %vm157_vm7 = vcmp.eq.s32.totalorder %v115_v3, 1 }
  0x1b   : > { %v141_v13 = vsel %vm136_vm5, %v140_v12, 0.0  ;;  %vm166_vm8 = vcmp.eq.s32.totalorder %v115_v3, 0 }
  0x20   : > { %v121_v5 = vld [vmem:[#allocation0] sm:$0xff] }
  0x21   : > { %v122_v6 = vsel %vm120_vm2, %v121_v5, 0.0  ;;  %v127_v7 = vsel %vm126_vm3, %v121_v5, 0.0 }
  0x22   : > { %123 = vadd.xlane.f32.xlu0 %v122_v6 }
  0xab   : > { %v124_v8 = vpop.xlane.xlu0 %123 }
  0xac   : > { %322 = vrcp.f32 %v124_v8  ;;  %vm173_vm9 = vweird.f32 %v124_v8 }
  0xb9   : > { %v323_v9 = vpop.eup %322 }
  0xba   : > { %v129_v10 = vmul.f32 %v323_v9, %v127_v7 }
  0xbc   : > { %130 = vst [vmem:[#allocation4] sm:$0xff] %v129_v10 }
  0xc3   : > { %v143_v14 = vld [vmem:[#allocation4 + $0x2] ss:$0 sm:$0xff]  ;;  %v153_v17 = vld [vmem:[#allocation4 + $0x1] ss:$0 sm:$0xff]  ;;  %v162_v22 = vld [vmem:[#allocation4] ss:$0 sm:$0xff] }
  0xc4   : > { %v144_v15 = vxor.u32 2147483648, %v143_v14  ;;  %v154_v19 = vxor.u32 2147483648, %v153_v17  ;;  %v163_v24 = vxor.u32 2147483648, %v162_v22 }
  0xc6   : > { %v148_v16 = vmul.f32 %v144_v15, %v141_v13 }
  0xc8   : > { %149 = vadd.xlane.f32.xlu0 %v148_v16 }
 0x151   : > { %v150_v18 = vpop.xlane.xlu0 %149 }
 0x152   : > { %v151_v20 = vsel %vm147_vm6, %v150_v18, %v141_v13 }
 0x153   : > { %v158_v21 = vmul.f32 %v154_v19, %v151_v20 }
 0x155   : > { %159 = vadd.xlane.f32.xlu1 %v158_v21 }
 0x1de   : > { %v160_v23 = vpop.xlane.xlu1 %159 }
 0x1df   : > { %v161_v25 = vsel %vm157_vm7, %v160_v23, %v151_v20 }
 0x1e0   : > { %v167_v26 = vmul.f32 %v163_v24, %v161_v25 }
 0x1e2   : > { %168 = vadd.xlane.f32.xlu1 %v167_v26 }
 0x26b   : > { %v169_v27 = vpop.xlane.xlu1 %168 }
 0x26c   : > { %v170_v28 = vsel %vm166_vm8, %v169_v27, %v161_v25 }
 0x26d   : > { %v172_v29 = vmul.f32 %v323_v9, %v170_v28 }
 0x26f   : > { %v174_v30 = vsel %vm173_vm9, %v170_v28, %v172_v29 }
 0x270   : > { %175 = vst [vmem:[#allocation2] sm:$0xff] %v174_v30 }
 0x277   : > { %v180_v31 = vld [vmem:[#allocation2] sm:$0xf] }
 0x278   : > { %183 = vst [vmem:[%s108_s21] sm:$0xf] %v180_v31 }
 0x27f   : > { %v209_v32 = vld [vmem:[%s108_s21] sm:$0xf] }
 0x280   : > { %210 = vst [vmem:[%s192_s25] sm:$0xf] %v209_v32 }
 0x281 PF: > { %s7_s8 = sadd.s32 1, %s346_s8   ;;  %s408_s6 = smov %s342_s7 }
 0x282   : > { %p4_p5 = scmp.ge.s32.totalorder %s7_s8, 4   ;;  %s409_s7 = smov %s411_s10 }
 0x284   :  { %6 = sbr.rel (!%p4_p5) target bundleno = 2 (0x2), region = 112 }

// kernel: _forward_arrays.21
= control target key start
LH: loop header
LB: loop body
LE: loop exit
PB: predicated region body
PF: predicated region fallthrough
CT: control target
= control target key end

     0   :  { %v408_v0 = vmov 0   ;;  %v26_v3 = vlaneseq  ;;  %s739_s2 = inlined_call_operand.vmem [shape: f32[16,1], index: 2, kind: input, shape index: {}]   ;;  %s740_s1 = inlined_call_operand.vmem [shape: f32[8,512], index: 1, kind: input, shape index: {}]   ;;  %s741_s0 = inlined_call_operand.vmem [shape: f32[128,512], index: 0, kind: input, shape index: {}]   ;;  %s742_s3 = inlined_call_operand.vmem [shape: f32[16,512], index: 3, kind: output, shape index: {}]  }
   0x1   :  { %407 = vset.pattern.permute.xlu0 %v408_v0  ;;  %v354_v1 = vld [vmem:[%s739_s2] sm:$0xff]  ;;  %v355_v2 = vld [vmem:[%s739_s2 + $0x8] sm:$0xff]  ;;  %v451_v8 = vld [vmem:[%s740_s1 + $0x10] sm:$0xff] }
   0x2   :  { %362 = vperm.xlu0 %407, %v354_v1   ;;  %v435_v4 = vshrl.u32 %v26_v3, 7  ;;  %v441_v6 = vld [vmem:[%s740_s1] sm:$0xff]  ;;  %v446_v7 = vld [vmem:[%s740_s1 + $0x8] sm:$0xff]  ;;  %v456_v9 = vld [vmem:[%s740_s1 + $0x18] sm:$0xff] }
   0x3   :  { %v18_v11 = vld [vmem:[%s741_s0] sm:$0xff]  ;;  %v19_v12 = vld [vmem:[%s741_s0 + $0x8] sm:$0xff]  ;;  %v20_v13 = vld [vmem:[%s741_s0 + $0x10] sm:$0xff]  ;;  %v330_v62 = vrot.slane %v441_v6, 4 }
   0x4   :  { %v28_v5 = vsub.s32 0, %v435_v4  ;;  %v60_v10 = vsub.s32 1, %v435_v4  ;;  %v21_v14 = vld [vmem:[%s741_s0 + $0x18] sm:$0xff]  ;;  %v22_v19 = vld [vmem:[%s741_s0 + $0x20] sm:$0xff]  ;;  %v23_v20 = vld [vmem:[%s741_s0 + $0x28] sm:$0xff]  ;;  %v100_v29 = vsub.s32 2, %v435_v4 }
   0x5   :  { %v24_v21 = vld [vmem:[%s741_s0 + $0x30] sm:$0xff]  ;;  %v25_v22 = vld [vmem:[%s741_s0 + $0x38] sm:$0xff]  ;;  %v50_v23 = vld [vmem:[%s741_s0 + $0x40] sm:$0xff]  ;;  %v140_v58 = vsub.s32 3, %v435_v4 }
   0x6   :  { %367 = vperm.xlu0 %407, %v355_v2   ;;  %v29_v15 = vrot.slane %v441_v6, %v28_v5  ;;  %v33_v16 = vrot.slane %v446_v7, %v28_v5  ;;  %v37_v17 = vrot.slane %v451_v8, %v28_v5  ;;  %v41_v18 = vrot.slane %v456_v9, %v28_v5  ;;  %v51_v24 = vld [vmem:[%s741_s0 + $0x48] sm:$0xff]  ;;  %v52_v30 = vld [vmem:[%s741_s0 + $0x50] sm:$0xff]  ;;  %v53_v31 = vld [vmem:[%s741_s0 + $0x58] sm:$0xff] }
   0x7   :  { %v61_v25 = vrot.slane %v441_v6, %v60_v10  ;;  %v65_v26 = vrot.slane %v446_v7, %v60_v10  ;;  %v69_v27 = vrot.slane %v451_v8, %v60_v10  ;;  %v73_v28 = vrot.slane %v456_v9, %v60_v10  ;;  %v54_v32 = vld [vmem:[%s741_s0 + $0x60] sm:$0xff]  ;;  %v55_v37 = vld [vmem:[%s741_s0 + $0x68] sm:$0xff]  ;;  %v56_v38 = vld [vmem:[%s741_s0 + $0x70] sm:$0xff] }
   0x8   :  { %v42_v33 = vmul.f32 %v29_v15, %v18_v11  ;;  %v43_v34 = vmul.f32 %v33_v16, %v19_v12  ;;  %v44_v35 = vmul.f32 %v37_v17, %v20_v13  ;;  %v45_v36 = vmul.f32 %v41_v18, %v21_v14  ;;  %v57_v39 = vld [vmem:[%s741_s0 + $0x78] sm:$0xff]  ;;  %v90_v52 = vld [vmem:[%s741_s0 + $0x80] sm:$0xff]  ;;  %v91_v53 = vld [vmem:[%s741_s0 + $0x88] sm:$0xff] }
   0x9   :  { %v46_v40 = vmul.f32 %v29_v15, %v22_v19  ;;  %v47_v41 = vmul.f32 %v33_v16, %v23_v20  ;;  %v48_v42 = vmul.f32 %v37_v17, %v24_v21  ;;  %v49_v43 = vmul.f32 %v41_v18, %v25_v22  ;;  %v92_v59 = vld [vmem:[%s741_s0 + $0x90] sm:$0xff]  ;;  %v93_v60 = vld [vmem:[%s741_s0 + $0x98] sm:$0xff]  ;;  %v94_v61 = vld [vmem:[%s741_s0 + $0xa0] sm:$0xff] }
   0xa   :  { %v74_v44 = vmul.f32 %v61_v25, %v50_v23  ;;  %v75_v45 = vmul.f32 %v65_v26, %v51_v24  ;;  %v76_v46 = vmul.f32 %v69_v27, %v52_v30  ;;  %v77_v47 = vmul.f32 %v73_v28, %v53_v31  ;;  %v95_v3 = vld [vmem:[%s741_s0 + $0xa8] sm:$0xff]  ;;  %v96_v5 = vld [vmem:[%s741_s0 + $0xb0] sm:$0xff]  ;;  %v97_v10 = vld [vmem:[%s741_s0 + $0xb8] sm:$0xff] }
   0xb   :  { %v78_v48 = vmul.f32 %v61_v25, %v54_v32  ;;  %v79_v49 = vmul.f32 %v65_v26, %v55_v37  ;;  %v80_v50 = vmul.f32 %v69_v27, %v56_v38  ;;  %v81_v51 = vmul.f32 %v73_v28, %v57_v39  ;;  %v130_v23 = vld [vmem:[%s741_s0 + $0xc0] sm:$0xff]  ;;  %v132_v30 = vld [vmem:[%s741_s0 + $0xd0] sm:$0xff]  ;;  %v133_v31 = vld [vmem:[%s741_s0 + $0xd8] sm:$0xff] }
   0xc   :  { %v101_v54 = vrot.slane %v441_v6, %v100_v29  ;;  %v105_v55 = vrot.slane %v446_v7, %v100_v29  ;;  %v109_v56 = vrot.slane %v451_v8, %v100_v29  ;;  %v113_v57 = vrot.slane %v456_v9, %v100_v29  ;;  %v131_v29 = vld [vmem:[%s741_s0 + $0xc8] sm:$0xff]  ;;  %v134_v38 = vld [vmem:[%s741_s0 + $0xe0] sm:$0xff] }
   0xd   :  { %v82_v63 = vadd.f32 %v74_v44, %v42_v33  ;;  %v83_v0 = vadd.f32 %v75_v45, %v43_v34  ;;  %v84_v1 = vadd.f32 %v76_v46, %v44_v35  ;;  %v85_v2 = vadd.f32 %v77_v47, %v45_v36  ;;  %v136_v44 = vld [vmem:[%s741_s0 + $0xf0] sm:$0xff]  ;;  %v137_v45 = vld [vmem:[%s741_s0 + $0xf8] sm:$0xff] }
   0xe   :  { %v86_v11 = vadd.f32 %v78_v48, %v46_v40  ;;  %v87_v12 = vadd.f32 %v79_v49, %v47_v41  ;;  %v88_v13 = vadd.f32 %v80_v50, %v48_v42  ;;  %v89_v14 = vadd.f32 %v81_v51, %v49_v43  ;;  %v135_v43 = vld [vmem:[%s741_s0 + $0xe8] sm:$0xff]  ;;  %v170_v50 = vld [vmem:[%s741_s0 + $0x100] sm:$0xff] }
   0xf   :  { %v114_v15 = vmul.f32 %v101_v54, %v90_v52  ;;  %v115_v16 = vmul.f32 %v105_v55, %v91_v53  ;;  %v116_v17 = vmul.f32 %v109_v56, %v92_v59  ;;  %v117_v18 = vmul.f32 %v113_v57, %v93_v60  ;;  %v171_v59 = vld [vmem:[%s741_s0 + $0x108] sm:$0xff]  ;;  %v172_v60 = vld [vmem:[%s741_s0 + $0x110] sm:$0xff] }
  0x10   :  { %v118_v19 = vmul.f32 %v101_v54, %v94_v61  ;;  %v119_v20 = vmul.f32 %v105_v55, %v95_v3  ;;  %v120_v21 = vmul.f32 %v109_v56, %v96_v5  ;;  %v121_v22 = vmul.f32 %v113_v57, %v97_v10  ;;  %v173_v61 = vld [vmem:[%s741_s0 + $0x118] sm:$0xff] }
  0x11   :  { %v141_v24 = vrot.slane %v441_v6, %v140_v58  ;;  %v145_v25 = vrot.slane %v446_v7, %v140_v58  ;;  %v149_v26 = vrot.slane %v451_v8, %v140_v58  ;;  %v153_v27 = vrot.slane %v456_v9, %v140_v58 }
  0x12   :  { %v180_v28 = vsub.s32 4, %v435_v4  ;;  %v336_v32 = vrot.slane %v446_v7, 4  ;;  %v342_v33 = vrot.slane %v451_v8, 4  ;;  %v122_v34 = vadd.f32 %v114_v15, %v82_v63 }
  0x13   :  { %v123_v35 = vadd.f32 %v115_v16, %v83_v0  ;;  %v124_v36 = vadd.f32 %v116_v17, %v84_v1  ;;  %v125_v37 = vadd.f32 %v117_v18, %v85_v2  ;;  %v126_v39 = vadd.f32 %v118_v19, %v86_v11  ;;  %v174_v2 = vld [vmem:[%s741_s0 + $0x120] sm:$0xff] }
  0x14   :  { %v127_v40 = vadd.f32 %v119_v20, %v87_v12  ;;  %v128_v41 = vadd.f32 %v120_v21, %v88_v13  ;;  %v129_v42 = vadd.f32 %v121_v22, %v89_v14  ;;  %v154_v46 = vmul.f32 %v141_v24, %v130_v23  ;;  %v175_v13 = vld [vmem:[%s741_s0 + $0x128] sm:$0xff]  ;;  %v176_v14 = vld [vmem:[%s741_s0 + $0x130] sm:$0xff] }
  0x15   :  { %v155_v47 = vmul.f32 %v145_v25, %v131_v29  ;;  %v156_v48 = vmul.f32 %v149_v26, %v132_v30  ;;  %v157_v49 = vmul.f32 %v153_v27, %v133_v31  ;;  %v181_v51 = vrot.slane %v441_v6, %v180_v28 }
  0x16   :  { %v185_v52 = vrot.slane %v446_v7, %v180_v28  ;;  %v189_v53 = vrot.slane %v451_v8, %v180_v28  ;;  %v193_v54 = vrot.slane %v456_v9, %v180_v28  ;;  %v158_v55 = vmul.f32 %v141_v24, %v134_v38  ;;  %v211_v28 = vld [vmem:[%s741_s0 + $0x148] sm:$0xff] }
  0x17   :  { %v159_v56 = vmul.f32 %v145_v25, %v135_v43  ;;  %v160_v57 = vmul.f32 %v149_v26, %v136_v44  ;;  %v161_v58 = vmul.f32 %v153_v27, %v137_v45  ;;  %v220_v63 = vsub.s32 5, %v435_v4  ;;  %v210_v27 = vld [vmem:[%s741_s0 + $0x140] sm:$0xff]  ;;  %v216_v43 = vld [vmem:[%s741_s0 + $0x170] sm:$0xff]  ;;  %v217_v44 = vld [vmem:[%s741_s0 + $0x178] sm:$0xff] }
  0x18   :  { %v595_v0 = vsub.s32 6, %v435_v4  ;;  %v598_v1 = vsub.s32 7, %v435_v4  ;;  %v348_v3 = vrot.slane %v456_v9, 4  ;;  %v162_v5 = vadd.f32 %v154_v46, %v122_v34  ;;  %v177_v4 = vld [vmem:[%s741_s0 + $0x138] sm:$0xff] }
  0x19   :  { %v163_v10 = vadd.f32 %v155_v47, %v123_v35  ;;  %v164_v11 = vadd.f32 %v156_v48, %v124_v36  ;;  %v165_v12 = vadd.f32 %v157_v49, %v125_v37  ;;  %v194_v15 = vmul.f32 %v181_v51, %v170_v50 }
  0x1a   :  { %v195_v16 = vmul.f32 %v185_v52, %v171_v59  ;;  %v196_v17 = vmul.f32 %v189_v53, %v172_v60  ;;  %v197_v18 = vmul.f32 %v193_v54, %v173_v61  ;;  %v166_v19 = vadd.f32 %v158_v55, %v126_v39  ;;  %v212_v39 = vld [vmem:[%s741_s0 + $0x150] sm:$0xff] }
  0x1b   :  { %v167_v20 = vadd.f32 %v159_v56, %v127_v40  ;;  %v168_v21 = vadd.f32 %v160_v57, %v128_v41  ;;  %v169_v22 = vadd.f32 %v161_v58, %v129_v42  ;;  %v198_v23 = vmul.f32 %v181_v51, %v174_v2  ;;  %v213_v40 = vld [vmem:[%s741_s0 + $0x158] sm:$0xff]  ;;  %v214_v41 = vld [vmem:[%s741_s0 + $0x160] sm:$0xff]  ;;  %v215_v42 = vld [vmem:[%s741_s0 + $0x168] sm:$0xff] }
  0x1c   :  { %v199_v24 = vmul.f32 %v185_v52, %v175_v13  ;;  %v200_v25 = vmul.f32 %v189_v53, %v176_v14  ;;  %v201_v26 = vmul.f32 %v193_v54, %v177_v4  ;;  %v221_v29 = vrot.slane %v441_v6, %v220_v63  ;;  %v251_v4 = vld [vmem:[%s741_s0 + $0x188] sm:$0xff] }
  0x1d   :  { %v225_v30 = vrot.slane %v446_v7, %v220_v63  ;;  %v229_v31 = vrot.slane %v451_v8, %v220_v63  ;;  %v233_v34 = vrot.slane %v456_v9, %v220_v63  ;;  %v202_v35 = vadd.f32 %v194_v15, %v162_v5  ;;  %v252_v15 = vld [vmem:[%s741_s0 + $0x190] sm:$0xff] }
  0x1e   :  { %v203_v36 = vadd.f32 %v195_v16, %v163_v10  ;;  %v204_v37 = vadd.f32 %v196_v17, %v164_v11  ;;  %v205_v38 = vadd.f32 %v197_v18, %v165_v12  ;;  %v331_v45 = vadd.f32 %v330_v62, %v441_v6  ;;  %v253_v16 = vld [vmem:[%s741_s0 + $0x198] sm:$0xff] }
  0x1f   :  { %v337_v46 = vadd.f32 %v336_v32, %v446_v7  ;;  %v343_v47 = vadd.f32 %v342_v33, %v451_v8  ;;  %v349_v48 = vadd.f32 %v348_v3, %v456_v9  ;;  %v206_v49 = vadd.f32 %v198_v23, %v166_v19  ;;  %v250_v33 = vld [vmem:[%s741_s0 + $0x180] sm:$0xff]  ;;  %v257_v23 = vld [vmem:[%s741_s0 + $0x1b8] sm:$0xff] }
  0x20   :  { %v207_v50 = vadd.f32 %v199_v24, %v167_v20  ;;  %v208_v51 = vadd.f32 %v200_v25, %v168_v21  ;;  %v209_v52 = vadd.f32 %v201_v26, %v169_v22  ;;  %v234_v53 = vmul.f32 %v221_v29, %v210_v27  ;;  %v254_v20 = vld [vmem:[%s741_s0 + $0x1a0] sm:$0xff]  ;;  %v255_v21 = vld [vmem:[%s741_s0 + $0x1a8] sm:$0xff]  ;;  %v256_v22 = vld [vmem:[%s741_s0 + $0x1b0] sm:$0xff] }
  0x21   :  { %v235_v54 = vmul.f32 %v225_v30, %v211_v28  ;;  %v236_v55 = vmul.f32 %v229_v31, %v212_v39  ;;  %v237_v56 = vmul.f32 %v233_v34, %v213_v40  ;;  %v238_v57 = vmul.f32 %v221_v29, %v214_v41 }
  0x22   :  { %v239_v62 = vmul.f32 %v225_v30, %v215_v42  ;;  %v240_v58 = vmul.f32 %v229_v31, %v216_v43  ;;  %v241_v59 = vmul.f32 %v233_v34, %v217_v44  ;;  %v332_v60 = vrot.slane %v331_v45, 2  ;;  %v290_v34 = vld [vmem:[%s741_s0 + $0x1c0] sm:$0xff]  ;;  %v291_v43 = vld [vmem:[%s741_s0 + $0x1c8] sm:$0xff] }
  0x23   :  { %v338_v32 = vrot.slane %v337_v46, 2  ;;  %v344_v61 = vrot.slane %v343_v47, 2  ;;  %v350_v63 = vrot.slane %v349_v48, 2  ;;  %v261_v2 = vrot.slane %v441_v6, %v595_v0 }
  0x24   :  { %v265_v3 = vrot.slane %v446_v7, %v595_v0  ;;  %v269_v5 = vrot.slane %v451_v8, %v595_v0  ;;  %v273_v10 = vrot.slane %v456_v9, %v595_v0  ;;  %v242_v11 = vadd.f32 %v234_v53, %v202_v35 }
  0x25   :  { %v243_v12 = vadd.f32 %v235_v54, %v203_v36  ;;  %v244_v13 = vadd.f32 %v236_v55, %v204_v37  ;;  %v245_v14 = vadd.f32 %v237_v56, %v205_v38  ;;  %v246_v17 = vadd.f32 %v238_v57, %v206_v49  ;;  %v294_v49 = vld [vmem:[%s741_s0 + $0x1e0] sm:$0xff] }
  0x26   :  { %v247_v18 = vadd.f32 %v239_v62, %v207_v50  ;;  %v248_v19 = vadd.f32 %v240_v58, %v208_v51  ;;  %v249_v0 = vadd.f32 %v241_v59, %v209_v52  ;;  %v333_v24 = vadd.f32 %v332_v60, %v331_v45  ;;  %v295_v50 = vld [vmem:[%s741_s0 + $0x1e8] sm:$0xff]  ;;  %v296_v51 = vld [vmem:[%s741_s0 + $0x1f0] sm:$0xff]  ;;  %v297_v52 = vld [vmem:[%s741_s0 + $0x1f8] sm:$0xff] }
  0x27   :  { %v339_v25 = vadd.f32 %v338_v32, %v337_v46  ;;  %v345_v26 = vadd.f32 %v344_v61, %v343_v47  ;;  %v351_v27 = vadd.f32 %v350_v63, %v349_v48  ;;  %v274_v28 = vmul.f32 %v261_v2, %v250_v33 }
  0x28   :  { %v275_v29 = vmul.f32 %v265_v3, %v251_v4  ;;  %v276_v30 = vmul.f32 %v269_v5, %v252_v15  ;;  %v277_v31 = vmul.f32 %v273_v10, %v253_v16  ;;  %v301_v35 = vrot.slane %v441_v6, %v598_v1  ;;  %v292_v6 = vld [vmem:[%s741_s0 + $0x1d0] sm:$0xff] }
  0x29   :  { %v305_v36 = vrot.slane %v446_v7, %v598_v1  ;;  %v309_v37 = vrot.slane %v451_v8, %v598_v1  ;;  %v313_v38 = vrot.slane %v456_v9, %v598_v1  ;;  %v278_v39 = vmul.f32 %v261_v2, %v254_v20  ;;  %v293_v7 = vld [vmem:[%s741_s0 + $0x1d8] sm:$0xff] }
  0x2a   :  { %v279_v40 = vmul.f32 %v265_v3, %v255_v21  ;;  %v280_v41 = vmul.f32 %v269_v5, %v256_v22  ;;  %v281_v42 = vmul.f32 %v273_v10, %v257_v23  ;;  %v334_v8 = vrot.slane %v333_v24, 1 }
  0x2b   :  { %v340_v44 = vrot.slane %v339_v25, 1  ;;  %v346_v45 = vrot.slane %v345_v26, 1  ;;  %v352_v9 = vrot.slane %v351_v27, 1  ;;  %v282_v1 = vadd.f32 %v274_v28, %v242_v11 }
  0x2c   :  { %v283_v46 = vadd.f32 %v275_v29, %v243_v12  ;;  %v284_v47 = vadd.f32 %v276_v30, %v244_v13  ;;  %v285_v48 = vadd.f32 %v277_v31, %v245_v14  ;;  %v314_v53 = vmul.f32 %v301_v35, %v290_v34 }
  0x2d   :  { %v315_v54 = vmul.f32 %v305_v36, %v291_v43  ;;  %v316_v55 = vmul.f32 %v309_v37, %v292_v6  ;;  %v317_v56 = vmul.f32 %v313_v38, %v293_v7  ;;  %v286_v57 = vadd.f32 %v278_v39, %v246_v17 }
  0x2e   :  { %v287_v62 = vadd.f32 %v279_v40, %v247_v18  ;;  %v288_v58 = vadd.f32 %v280_v41, %v248_v19  ;;  %v289_v59 = vadd.f32 %v281_v42, %v249_v0  ;;  %v335_v60 = vadd.f32 %v334_v8, %v333_v24 }
  0x2f   :  { %v341_v32 = vadd.f32 %v340_v44, %v339_v25  ;;  %v347_v61 = vadd.f32 %v346_v45, %v345_v26  ;;  %v353_v63 = vadd.f32 %v352_v9, %v351_v27  ;;  %v318_v33 = vmul.f32 %v301_v35, %v294_v49 }
  0x30   :  { %v319_v2 = vmul.f32 %v305_v36, %v295_v50  ;;  %v320_v3 = vmul.f32 %v309_v37, %v296_v51  ;;  %v321_v5 = vmul.f32 %v313_v38, %v297_v52  ;;  %v322_v10 = vadd.f32 %v314_v53, %v282_v1 }
  0x31   :  { %v323_v11 = vadd.f32 %v315_v54, %v283_v46  ;;  %v324_v12 = vadd.f32 %v316_v55, %v284_v47  ;;  %v325_v13 = vadd.f32 %v317_v56, %v285_v48  ;;  %v356_v14 = vsub.f32 1.0, %v335_v60 }
  0x32   :  { %v357_v4 = vsub.f32 1.0, %v341_v32  ;;  %v358_v15 = vsub.f32 1.0, %v347_v61  ;;  %v359_v16 = vsub.f32 1.0, %v353_v63  ;;  %v326_v17 = vadd.f32 %v318_v33, %v286_v57 }
  0x33   :  { %v327_v18 = vadd.f32 %v319_v2, %v287_v62  ;;  %v328_v19 = vadd.f32 %v320_v3, %v288_v58  ;;  %v329_v0 = vadd.f32 %v321_v5, %v289_v59  ;;  %v378_v20 = vmul.f32 %v335_v60, %v322_v10 }
  0x34   :  { %v379_v21 = vmul.f32 %v341_v32, %v323_v11  ;;  %v380_v22 = vmul.f32 %v347_v61, %v324_v12  ;;  %v381_v23 = vmul.f32 %v353_v63, %v325_v13  ;;  %v382_v29 = vmul.f32 %v335_v60, %v326_v17 }
  0x35   :  { %v383_v30 = vmul.f32 %v341_v32, %v327_v18  ;;  %v384_v31 = vmul.f32 %v347_v61, %v328_v19  ;;  %v385_v34 = vmul.f32 %v353_v63, %v329_v0 }
  0x7d   :  { %v363_v24 = vpop.permute.xlu0 %362 }
  0x7e   :  { %v370_v25 = vmul.f32 %v363_v24, %v356_v14  ;;  %v371_v26 = vmul.f32 %v363_v24, %v357_v4  ;;  %v372_v27 = vmul.f32 %v363_v24, %v358_v15  ;;  %v373_v28 = vmul.f32 %v363_v24, %v359_v16 }
  0x80   :  { %v386_v35 = vadd.f32 %v378_v20, %v370_v25  ;;  %v387_v36 = vadd.f32 %v379_v21, %v371_v26  ;;  %v388_v37 = vadd.f32 %v380_v22, %v372_v27  ;;  %v389_v38 = vadd.f32 %v381_v23, %v373_v28 }
  0x81   :  { %v368_v39 = vpop.permute.xlu0 %367 }
  0x82   :  { %v374_v40 = vmul.f32 %v368_v39, %v356_v14  ;;  %v375_v41 = vmul.f32 %v368_v39, %v357_v4  ;;  %v376_v42 = vmul.f32 %v368_v39, %v358_v15  ;;  %v377_v43 = vmul.f32 %v368_v39, %v359_v16  ;;  %394 = vst [vmem:[%s742_s3] sm:$0xff] %v386_v35 }
  0x83   :  { %395 = vst [vmem:[%s742_s3 + $0x8] sm:$0xff] %v387_v36  ;;  %396 = vst [vmem:[%s742_s3 + $0x10] sm:$0xff] %v388_v37 }
  0x84   :  { %397 = vst [vmem:[%s742_s3 + $0x18] sm:$0xff] %v389_v38  ;;  %v390_v6 = vadd.f32 %v382_v29, %v374_v40  ;;  %v391_v7 = vadd.f32 %v383_v30, %v375_v41  ;;  %v392_v8 = vadd.f32 %v384_v31, %v376_v42  ;;  %v393_v44 = vadd.f32 %v385_v34, %v377_v43 }
  0x86   :  { %398 = vst [vmem:[%s742_s3 + $0x20] sm:$0xff] %v390_v6  ;;  %399 = vst [vmem:[%s742_s3 + $0x28] sm:$0xff] %v391_v7 }
  0x87   :  { %400 = vst [vmem:[%s742_s3 + $0x30] sm:$0xff] %v392_v8  ;;  %401 = vst [vmem:[%s742_s3 + $0x38] sm:$0xff] %v393_v44 }

// kernel: _forward_arrays.22
= control target key start
LH: loop header
LB: loop body
LE: loop exit
PB: predicated region body
PF: predicated region fallthrough
CT: control target
= control target key end

     0   :  { %v234_v1 = vmov 0   ;;  %vm82_vm0 = vcmask 261120   ;;  %s312_s1 = inlined_call_operand.vmem [shape: bf16[32,512], index: 1, kind: input, shape index: {}]   ;;  %s313_s2 = inlined_call_operand.vmem [shape: f32[16,1], index: 2, kind: input, shape index: {}]   ;;  %s314_s0 = inlined_call_operand.vmem [shape: bf16[16,32], index: 0, kind: input, shape index: {}]   ;;  %s315_s3 = inlined_call_operand.vmem [shape: f32[16,512], index: 3, kind: output, shape index: {}]  }
   0x1   :  { %v221_v0 = vld [vmem:[%s312_s1 + $0x24] ss:$16 sps:$4 sm:$0xff]   ;;  %118 = vmatprep.mubr.bf16.mxu0 %v234_v1  ;;  %161 = vmatprep.mubr.bf16.mxu1 %v234_v1  ;;  %v223_v2 = vld [vmem:[%s312_s1 + $0x2c] ss:$16 sps:$4 sm:$0xff]   ;;  %v225_v3 = vld [vmem:[%s312_s1 + $0x20] ss:$16 sps:$4 sm:$0xff]  }
   0x2   :  { %220 = vset.pattern.permute.xlu0 %v234_v1  ;;  %98 = vmatprep.subr.bf16.mxu0 %v221_v0  ;;  %v226_v4 = vld [vmem:[%s312_s1 + $0x28] ss:$16 sps:$4 sm:$0xff]   ;;  %v227_v5 = vld [vmem:[%s312_s1 + $0x4] ss:$16 sps:$4 sm:$0xff]   ;;  %v229_v6 = vld [vmem:[%s312_s1 + $0xc] ss:$16 sps:$4 sm:$0xff]  }
   0x3   :  { %141 = vmatprep.subr.bf16.mxu1 %v223_v2  ;;  %99 = vmatpush1.bf16.msra.mxu0 %v225_v3  ;;  %v231_v7 = vld [vmem:[%s312_s1] ss:$16 sps:$4 sm:$0xff]   ;;  %v232_v8 = vld [vmem:[%s312_s1 + $0x8] ss:$16 sps:$4 sm:$0xff]  }
   0x4   :  { %142 = vmatpush1.bf16.msra.mxu1 %v226_v4  ;;  %100 = vmatprep.subr.bf16.mxu0 %v227_v5  ;;  %v25_v9 = vld [vmem:[%s313_s2] sm:$0xff]  ;;  %v26_v11 = vld [vmem:[%s313_s2 + $0x8] sm:$0xff] }
   0x5   :  { %143 = vmatprep.subr.bf16.mxu1 %v229_v6  ;;  %v233_v10 = vld [vmem:[%s314_s0] sm:$0xff]   ;;  %29 = vperm.xlu0 %220, %v25_v9  }
   0x7   :  { %101 = vmatpush1.bf16.msra.mxu0 %v231_v7 }
   0x8   :  { %144 = vmatpush1.bf16.msra.mxu1 %v232_v8 }
   0x9   :  { %34 = vperm.xlu0 %220, %v26_v11  }
   0xa   :  { %217 = vmatmul.mubr.msk.bf16.vlgmr.msra.gmra.mxu0 %vm82_vm0, %v233_v10 }
   0xb   :  { %218 = vmatmul.mubr.msk.bf16.vlgmr.msra.gmra.mxu1 %vm82_vm0, %v233_v10 }
  0x80   :  { %v30_v12 = vpop.permute.xlu0 %29 }
  0x84   :  { %v35_v21 = vpop.permute.xlu0 %34 }
  0xca   :  { %v120_v13 = vpop.f32.mrf.mxu0 }
  0xcb   :  { %v163_v14 = vpop.f32.mrf.mxu1  ;;  %v121_v15 = vadd.f32 %v120_v13, %v30_v12 }
  0xcc   :  { %v164_v16 = vadd.f32 %v163_v14, %v30_v12  ;;  %v122_v17 = vpop.f32.mrf.mxu0 }
  0xcd   :  { %v165_v18 = vpop.f32.mrf.mxu1  ;;  %vm172_vm1 = vcmp.ge.f32.partialorder %v121_v15, 0.0  ;;  %v180_v19 = vmul.f32 0.01, %v121_v15  ;;  %v123_v22 = vadd.f32 %v122_v17, %v30_v12 }
  0xce   :  { %vm174_vm2 = vcmp.ge.f32.partialorder %v164_v16, 0.0  ;;  %v182_v20 = vmul.f32 0.01, %v164_v16  ;;  %v166_v23 = vadd.f32 %v165_v18, %v30_v12  ;;  %v124_v24 = vpop.f32.mrf.mxu0 }
  0xcf   :  { %v167_v25 = vpop.f32.mrf.mxu1  ;;  %v188_v26 = vsel %vm172_vm1, %v121_v15, %v180_v19  ;;  %v125_v28 = vadd.f32 %v124_v24, %v35_v21  ;;  %vm173_vm3 = vcmp.ge.f32.partialorder %v123_v22, 0.0  ;;  %v181_v30 = vmul.f32 0.01, %v123_v22 }
  0xd0   :  { %v190_v27 = vsel %vm174_vm2, %v164_v16, %v182_v20  ;;  %v168_v29 = vadd.f32 %v167_v25, %v35_v21  ;;  %196 = vst [vmem:[%s315_s3] sm:$0xff] %v188_v26  ;;  %vm175_vm4 = vcmp.ge.f32.partialorder %v166_v23, 0.0  ;;  %v183_v31 = vmul.f32 0.01, %v166_v23  ;;  %v126_v32 = vpop.f32.mrf.mxu0 }
  0xd1   :  { %198 = vst [vmem:[%s315_s3 + $0x10] sm:$0xff] %v190_v27  ;;  %v169_v33 = vpop.f32.mrf.mxu1  ;;  %vm176_vm5 = vcmp.ge.f32.partialorder %v125_v28, 0.0  ;;  %v184_v34 = vmul.f32 0.01, %v125_v28  ;;  %v189_v36 = vsel %vm173_vm3, %v123_v22, %v181_v30  ;;  %v127_v38 = vadd.f32 %v126_v32, %v35_v21 }
  0xd2   :  { %vm178_vm6 = vcmp.ge.f32.partialorder %v168_v29, 0.0  ;;  %v186_v35 = vmul.f32 0.01, %v168_v29  ;;  %v191_v37 = vsel %vm175_vm4, %v166_v23, %v183_v31  ;;  %v170_v39 = vadd.f32 %v169_v33, %v35_v21  ;;  %197 = vst [vmem:[%s315_s3 + $0x8] sm:$0xff] %v189_v36 }
  0xd3   :  { %199 = vst [vmem:[%s315_s3 + $0x18] sm:$0xff] %v191_v37  ;;  %v192_v40 = vsel %vm176_vm5, %v125_v28, %v184_v34  ;;  %vm177_vm7 = vcmp.ge.f32.partialorder %v127_v38, 0.0  ;;  %v185_v42 = vmul.f32 0.01, %v127_v38 }
  0xd4   :  { %v194_v41 = vsel %vm178_vm6, %v168_v29, %v186_v35  ;;  %200 = vst [vmem:[%s315_s3 + $0x20] sm:$0xff] %v192_v40  ;;  %vm179_vm8 = vcmp.ge.f32.partialorder %v170_v39, 0.0  ;;  %v187_v43 = vmul.f32 0.01, %v170_v39 }
  0xd5   :  { %202 = vst [vmem:[%s315_s3 + $0x30] sm:$0xff] %v194_v41  ;;  %v193_v44 = vsel %vm177_vm7, %v127_v38, %v185_v42 }
  0xd6   :  { %v195_v45 = vsel %vm179_vm8, %v170_v39, %v187_v43  ;;  %201 = vst [vmem:[%s315_s3 + $0x28] sm:$0xff] %v193_v44 }
  0xd7   :  { %203 = vst [vmem:[%s315_s3 + $0x38] sm:$0xff] %v195_v45 }

// kernel: _forward_arrays.23
= control target key start
LH: loop header
LB: loop body
LE: loop exit
PB: predicated region body
PF: predicated region fallthrough
CT: control target
= control target key end

     0   :  { %v1194_v1 = vmov 0   ;;  %vm698_vm0 = vcmask 392192   ;;  %s1595_s1 = inlined_call_operand.vmem [shape: bf16[432,512], index: 1, kind: input, shape index: {}]   ;;  %s1596_s0 = inlined_call_operand.vmem [shape: bf16[16,432], index: 0, kind: input, shape index: {}]   ;;  %s1597_s2 = inlined_call_operand.vmem [shape: f32[16,1], index: 2, kind: input, shape index: {}]   ;;  %s1598_s3 = inlined_call_operand.vmem [shape: f32[16,512], index: 3, kind: output, shape index: {}]  }
   0x1   :  { %v1026_v0 = vld [vmem:[%s1595_s1 + $0xe4] ss:$16 sps:$4 sm:$0xff]   ;;  %1025 = vset.pattern.permute.xlu0 %v1194_v1  ;;  %v1030_v3 = vld [vmem:[%s1595_s1 + $0xe0] ss:$16 sps:$4 sm:$0xff]   ;;  %v1320_v35 = vld [vmem:[%s1596_s0 + $0xc] ss:$16 sps:$4 sm:$0xff]  }
   0x2   :  { %v1028_v2 = vld [vmem:[%s1595_s1 + $0x2e4] ss:$16 sps:$4 sm:$0xff]   ;;  %702 = vmatprep.subr.bf16.mxu0 %v1026_v0  ;;  %v1031_v4 = vld [vmem:[%s1595_s1 + $0x2e0] ss:$16 sps:$4 sm:$0xff]   ;;  %1022 = vmatprep.mubr.msk.bf16.mxu1 %vm698_vm0, %v1320_v35  ;;  %v1099_v47 = vld [vmem:[%s1595_s1 + $0xec] ss:$16 sps:$4 sm:$0xff]  }
   0x3   :  { %745 = vmatprep.subr.bf16.mxu1 %v1028_v2  ;;  %v1032_v5 = vld [vmem:[%s1595_s1 + $0xc4] ss:$16 sps:$4 sm:$0xff]   ;;  %703 = vmatpush1.bf16.msra.mxu0 %v1030_v3  ;;  %v1036_v7 = vld [vmem:[%s1595_s1 + $0xc0] ss:$16 sps:$4 sm:$0xff]   ;;  %v1363_v48 = vld [vmem:[%s1596_s0 + $0x8] ss:$16 sps:$4 sm:$0xff]  }
   0x4   :  { %746 = vmatpush1.bf16.msra.mxu1 %v1031_v4  ;;  %v1034_v6 = vld [vmem:[%s1595_s1 + $0x2c4] ss:$16 sps:$4 sm:$0xff]   ;;  %704 = vmatprep.subr.bf16.mxu0 %v1032_v5  ;;  %v1037_v8 = vld [vmem:[%s1595_s1 + $0x2c0] ss:$16 sps:$4 sm:$0xff]   ;;  %v1097_v49 = vld [vmem:[%s1595_s1 + $0xe8] ss:$16 sps:$4 sm:$0xff]  }
   0x5   :  { %747 = vmatprep.subr.bf16.mxu1 %v1034_v6  ;;  %v1038_v9 = vld [vmem:[%s1595_s1 + $0xa4] ss:$16 sps:$4 sm:$0xff]   ;;  %v1042_v11 = vld [vmem:[%s1595_s1 + $0xa0] ss:$16 sps:$4 sm:$0xff]   ;;  %v1105_v52 = vld [vmem:[%s1595_s1 + $0xcc] ss:$16 sps:$4 sm:$0xff]  }
   0x6   :  { %v1040_v10 = vld [vmem:[%s1595_s1 + $0x2a4] ss:$16 sps:$4 sm:$0xff]   ;;  %v1043_v12 = vld [vmem:[%s1595_s1 + $0x2a0] ss:$16 sps:$4 sm:$0xff]   ;;  %v1103_v54 = vld [vmem:[%s1595_s1 + $0xc8] ss:$16 sps:$4 sm:$0xff]  }
   0x7   :  { %705 = vmatpush1.bf16.msra.mxu0 %v1036_v7  ;;  %v1044_v13 = vld [vmem:[%s1595_s1 + $0x84] ss:$16 sps:$4 sm:$0xff]   ;;  %v1048_v15 = vld [vmem:[%s1595_s1 + $0x80] ss:$16 sps:$4 sm:$0xff]   ;;  %v1111_v57 = vld [vmem:[%s1595_s1 + $0xac] ss:$16 sps:$4 sm:$0xff]  }
   0x8   :  { %748 = vmatpush1.bf16.msra.mxu1 %v1037_v8  ;;  %706 = vmatprep.subr.bf16.mxu0 %v1038_v9  ;;  %v1046_v14 = vld [vmem:[%s1595_s1 + $0x284] ss:$16 sps:$4 sm:$0xff]   ;;  %v1049_v16 = vld [vmem:[%s1595_s1 + $0x280] ss:$16 sps:$4 sm:$0xff]   ;;  %v1109_v58 = vld [vmem:[%s1595_s1 + $0xa8] ss:$16 sps:$4 sm:$0xff]  }
   0x9   :  { %749 = vmatprep.subr.bf16.mxu1 %v1040_v10  ;;  %v1050_v17 = vld [vmem:[%s1595_s1 + $0x64] ss:$16 sps:$4 sm:$0xff]   ;;  %v1054_v19 = vld [vmem:[%s1595_s1 + $0x60] ss:$16 sps:$4 sm:$0xff]   ;;  %v1117_v61 = vld [vmem:[%s1595_s1 + $0x8c] ss:$16 sps:$4 sm:$0xff]  }
   0xa   :  { %v1052_v18 = vld [vmem:[%s1595_s1 + $0x264] ss:$16 sps:$4 sm:$0xff]   ;;  %v1055_v20 = vld [vmem:[%s1595_s1 + $0x260] ss:$16 sps:$4 sm:$0xff]   ;;  %v1115_v62 = vld [vmem:[%s1595_s1 + $0x88] ss:$16 sps:$4 sm:$0xff]  }
   0xb   :  { %707 = vmatpush1.bf16.msra.mxu0 %v1042_v11  ;;  %v1056_v21 = vld [vmem:[%s1595_s1 + $0x44] ss:$16 sps:$4 sm:$0xff]   ;;  %v1060_v23 = vld [vmem:[%s1595_s1 + $0x40] ss:$16 sps:$4 sm:$0xff]   ;;  %v1123_v1 = vld [vmem:[%s1595_s1 + $0x6c] ss:$16 sps:$4 sm:$0xff]  }
   0xc   :  { %750 = vmatpush1.bf16.msra.mxu1 %v1043_v12  ;;  %708 = vmatprep.subr.bf16.mxu0 %v1044_v13  ;;  %v1058_v22 = vld [vmem:[%s1595_s1 + $0x244] ss:$16 sps:$4 sm:$0xff]   ;;  %v1061_v24 = vld [vmem:[%s1595_s1 + $0x240] ss:$16 sps:$4 sm:$0xff]   ;;  %v1121_v2 = vld [vmem:[%s1595_s1 + $0x68] ss:$16 sps:$4 sm:$0xff]  }
   0xd   :  { %751 = vmatprep.subr.bf16.mxu1 %v1046_v14  ;;  %v1062_v25 = vld [vmem:[%s1595_s1 + $0x24] ss:$16 sps:$4 sm:$0xff]   ;;  %v1066_v27 = vld [vmem:[%s1595_s1 + $0x20] ss:$16 sps:$4 sm:$0xff]   ;;  %v1130_v4 = vld [vmem:[%s1595_s1 + $0x4c] ss:$16 sps:$4 sm:$0xff]  }
   0xe   :  { %v1064_v26 = vld [vmem:[%s1595_s1 + $0x224] ss:$16 sps:$4 sm:$0xff]   ;;  %v1067_v28 = vld [vmem:[%s1595_s1 + $0x220] ss:$16 sps:$4 sm:$0xff]   ;;  %v1133_v5 = vld [vmem:[%s1595_s1 + $0x2ec] ss:$16 sps:$4 sm:$0xff]  }
   0xf   :  { %709 = vmatpush1.bf16.msra.mxu0 %v1048_v15  ;;  %v1068_v29 = vld [vmem:[%s1595_s1 + $0x4] ss:$16 sps:$4 sm:$0xff]   ;;  %v1072_v31 = vld [vmem:[%s1595_s1] ss:$16 sps:$4 sm:$0xff]   ;;  %v1128_v7 = vld [vmem:[%s1595_s1 + $0x48] ss:$16 sps:$4 sm:$0xff]  }
  0x10   :  { %752 = vmatpush1.bf16.msra.mxu1 %v1049_v16  ;;  %710 = vmatprep.subr.bf16.mxu0 %v1050_v17  ;;  %v1070_v30 = vld [vmem:[%s1595_s1 + $0x204] ss:$16 sps:$4 sm:$0xff]   ;;  %v1073_v32 = vld [vmem:[%s1595_s1 + $0x200] ss:$16 sps:$4 sm:$0xff]   ;;  %v1131_v8 = vld [vmem:[%s1595_s1 + $0x2e8] ss:$16 sps:$4 sm:$0xff]  }
  0x11   :  { %753 = vmatprep.subr.bf16.mxu1 %v1052_v18  ;;  %v1074_v33 = vld [vmem:[%s1595_s1 + $0x1e4] ss:$16 sps:$4 sm:$0xff]   ;;  %v1078_v36 = vld [vmem:[%s1595_s1 + $0x1e0] ss:$16 sps:$4 sm:$0xff]   ;;  %v1136_v9 = vld [vmem:[%s1595_s1 + $0x2c] ss:$16 sps:$4 sm:$0xff]  }
  0x12   :  { %v1076_v34 = vld [vmem:[%s1595_s1 + $0x344] ss:$16 sps:$4 sm:$0xff]   ;;  %v1079_v37 = vld [vmem:[%s1595_s1 + $0x340] ss:$16 sps:$4 sm:$0xff]   ;;  %v1139_v10 = vld [vmem:[%s1595_s1 + $0x2cc] ss:$16 sps:$4 sm:$0xff]  }
  0x13   :  { %711 = vmatpush1.bf16.msra.mxu0 %v1054_v19  ;;  %v1080_v38 = vld [vmem:[%s1595_s1 + $0x1c4] ss:$16 sps:$4 sm:$0xff]   ;;  %v1084_v40 = vld [vmem:[%s1595_s1 + $0x1c0] ss:$16 sps:$4 sm:$0xff]   ;;  %v1134_v11 = vld [vmem:[%s1595_s1 + $0x28] ss:$16 sps:$4 sm:$0xff]  }
  0x14   :  { %754 = vmatpush1.bf16.msra.mxu1 %v1055_v20  ;;  %712 = vmatprep.subr.bf16.mxu0 %v1056_v21  ;;  %v1082_v39 = vld [vmem:[%s1595_s1 + $0x324] ss:$16 sps:$4 sm:$0xff]   ;;  %v1085_v41 = vld [vmem:[%s1595_s1 + $0x320] ss:$16 sps:$4 sm:$0xff]   ;;  %v1137_v12 = vld [vmem:[%s1595_s1 + $0x2c8] ss:$16 sps:$4 sm:$0xff]  }
  0x15   :  { %755 = vmatprep.subr.bf16.mxu1 %v1058_v22  ;;  %v1086_v42 = vld [vmem:[%s1595_s1 + $0x1a4] ss:$16 sps:$4 sm:$0xff]   ;;  %v1090_v44 = vld [vmem:[%s1595_s1 + $0x1a0] ss:$16 sps:$4 sm:$0xff]   ;;  %v1142_v13 = vld [vmem:[%s1595_s1 + $0xc] ss:$16 sps:$4 sm:$0xff]  }
  0x16   :  { %v1088_v43 = vld [vmem:[%s1595_s1 + $0x304] ss:$16 sps:$4 sm:$0xff]   ;;  %v1091_v45 = vld [vmem:[%s1595_s1 + $0x300] ss:$16 sps:$4 sm:$0xff]   ;;  %v1145_v14 = vld [vmem:[%s1595_s1 + $0x2ac] ss:$16 sps:$4 sm:$0xff]  }
  0x17   :  { %713 = vmatpush1.bf16.msra.mxu0 %v1060_v23  ;;  %v1095_v46 = vld [vmem:[%s1595_s1 + $0x184] ss:$16 sps:$4 sm:$0xff]   ;;  %v1100_v50 = vld [vmem:[%s1595_s1 + $0x180] ss:$16 sps:$4 sm:$0xff]   ;;  %v1140_v15 = vld [vmem:[%s1595_s1 + $0x8] ss:$16 sps:$4 sm:$0xff]  }
  0x18   :  { %756 = vmatpush1.bf16.msra.mxu1 %v1061_v24  ;;  %714 = vmatprep.subr.bf16.mxu0 %v1062_v25  ;;  %v1101_v51 = vld [vmem:[%s1595_s1 + $0x164] ss:$16 sps:$4 sm:$0xff]   ;;  %v1106_v55 = vld [vmem:[%s1595_s1 + $0x160] ss:$16 sps:$4 sm:$0xff]   ;;  %v1143_v16 = vld [vmem:[%s1595_s1 + $0x2a8] ss:$16 sps:$4 sm:$0xff]  }
  0x19   :  { %757 = vmatprep.subr.bf16.mxu1 %v1064_v26  ;;  %v1127_v53 = vld [vmem:[%s1596_s0 + $0x4] ss:$16 sps:$4 sm:$0xff]   ;;  %v1112_v59 = vld [vmem:[%s1595_s1 + $0x140] ss:$16 sps:$4 sm:$0xff]   ;;  %v1148_v17 = vld [vmem:[%s1595_s1 + $0x1ec] ss:$16 sps:$4 sm:$0xff]  }
  0x1a   :  { %734 = vmatprep.mubr.bf16.mxu0 %v1127_v53  ;;  %v1107_v56 = vld [vmem:[%s1595_s1 + $0x144] ss:$16 sps:$4 sm:$0xff]   ;;  %v1118_v63 = vld [vmem:[%s1595_s1 + $0x120] ss:$16 sps:$4 sm:$0xff]   ;;  %v1151_v18 = vld [vmem:[%s1595_s1 + $0x28c] ss:$16 sps:$4 sm:$0xff]  }
  0x1b   :  { %715 = vmatpush1.bf16.msra.mxu0 %v1066_v27  ;;  %v1113_v60 = vld [vmem:[%s1595_s1 + $0x124] ss:$16 sps:$4 sm:$0xff]   ;;  %v1124_v3 = vld [vmem:[%s1595_s1 + $0x100] ss:$16 sps:$4 sm:$0xff]   ;;  %v1146_v20 = vld [vmem:[%s1595_s1 + $0x1e8] ss:$16 sps:$4 sm:$0xff]  }
  0x1c   :  { %758 = vmatpush1.bf16.msra.mxu1 %v1067_v28  ;;  %716 = vmatprep.subr.bf16.mxu0 %v1068_v29  ;;  %v1119_v0 = vld [vmem:[%s1595_s1 + $0x104] ss:$16 sps:$4 sm:$0xff]   ;;  %v1432_v6 = vld [vmem:[%s1596_s0] ss:$16 sps:$4 sm:$0xff]   ;;  %v1149_v21 = vld [vmem:[%s1595_s1 + $0x288] ss:$16 sps:$4 sm:$0xff]  }
  0x1d   :  { %759 = vmatprep.subr.bf16.mxu1 %v1070_v30  ;;  %v127_v19 = vld [vmem:[%s1597_s2] sm:$0xff]  ;;  %v128_v22 = vld [vmem:[%s1597_s2 + $0x8] sm:$0xff] }
  0x1e   :  { %131 = vperm.xlu0 %1025, %v127_v19   ;;  %v1154_v23 = vld [vmem:[%s1595_s1 + $0x1cc] ss:$16 sps:$4 sm:$0xff]   ;;  %v1152_v25 = vld [vmem:[%s1595_s1 + $0x1c8] ss:$16 sps:$4 sm:$0xff]  }
  0x1f   :  { %717 = vmatpush1.bf16.msra.mxu0 %v1072_v31  ;;  %v1157_v24 = vld [vmem:[%s1595_s1 + $0x26c] ss:$16 sps:$4 sm:$0xff]   ;;  %v1155_v26 = vld [vmem:[%s1595_s1 + $0x268] ss:$16 sps:$4 sm:$0xff]  }
  0x20   :  { %760 = vmatpush1.bf16.msra.mxu1 %v1073_v32  ;;  %718 = vmatprep.subr.bf16.mxu0 %v1074_v33  ;;  %v1160_v27 = vld [vmem:[%s1595_s1 + $0x1ac] ss:$16 sps:$4 sm:$0xff]   ;;  %v1158_v29 = vld [vmem:[%s1595_s1 + $0x1a8] ss:$16 sps:$4 sm:$0xff]  }
  0x21   :  { %771 = vmatprep.subr.bf16.mxu1 %v1076_v34  ;;  %v1163_v28 = vld [vmem:[%s1595_s1 + $0x24c] ss:$16 sps:$4 sm:$0xff]   ;;  %v1161_v30 = vld [vmem:[%s1595_s1 + $0x248] ss:$16 sps:$4 sm:$0xff]  }
  0x22   :  { %136 = vperm.xlu0 %1025, %v128_v22   ;;  %v1166_v31 = vld [vmem:[%s1595_s1 + $0x18c] ss:$16 sps:$4 sm:$0xff]   ;;  %v1164_v33 = vld [vmem:[%s1595_s1 + $0x188] ss:$16 sps:$4 sm:$0xff]  }
  0x23   :  { %719 = vmatpush2.bf16.msra.mxu0 %v1078_v36  ;;  %v1169_v32 = vld [vmem:[%s1595_s1 + $0x22c] ss:$16 sps:$4 sm:$0xff]   ;;  %v1167_v34 = vld [vmem:[%s1595_s1 + $0x228] ss:$16 sps:$4 sm:$0xff]  }
  0x24   :  { %772 = vmatpush2.bf16.msra.mxu1 %v1079_v37  ;;  %720 = vmatprep.subr.bf16.mxu0 %v1080_v38  ;;  %v1175_v36 = vld [vmem:[%s1595_s1 + $0x20c] ss:$16 sps:$4 sm:$0xff]   ;;  %v1170_v37 = vld [vmem:[%s1595_s1 + $0x168] ss:$16 sps:$4 sm:$0xff]  }
  0x25   :  { %773 = vmatprep.subr.bf16.mxu1 %v1082_v39  ;;  %v1173_v38 = vld [vmem:[%s1595_s1 + $0x208] ss:$16 sps:$4 sm:$0xff]   ;;  %v1178_v39 = vld [vmem:[%s1595_s1 + $0x14c] ss:$16 sps:$4 sm:$0xff]  }
  0x27   :  { %721 = vmatpush2.bf16.msra.mxu0 %v1084_v40  ;;  %v1181_v40 = vld [vmem:[%s1595_s1 + $0x34c] ss:$16 sps:$4 sm:$0xff]  }
  0x28   :  { %774 = vmatpush2.bf16.msra.mxu1 %v1085_v41  ;;  %722 = vmatprep.subr.bf16.mxu0 %v1086_v42  ;;  %v1176_v41 = vld [vmem:[%s1595_s1 + $0x148] ss:$16 sps:$4 sm:$0xff]  }
  0x29   :  { %775 = vmatprep.subr.bf16.mxu1 %v1088_v43  ;;  %v1179_v42 = vld [vmem:[%s1595_s1 + $0x348] ss:$16 sps:$4 sm:$0xff]   ;;  %v1184_v43 = vld [vmem:[%s1595_s1 + $0x12c] ss:$16 sps:$4 sm:$0xff]  }
  0x2b   :  { %723 = vmatpush2.bf16.msra.mxu0 %v1090_v44  ;;  %v1187_v44 = vld [vmem:[%s1595_s1 + $0x32c] ss:$16 sps:$4 sm:$0xff]  }
  0x2c   :  { %776 = vmatpush2.bf16.msra.mxu1 %v1091_v45  ;;  %724 = vmatprep.subr.bf16.mxu0 %v1095_v46  ;;  %v1182_v45 = vld [vmem:[%s1595_s1 + $0x128] ss:$16 sps:$4 sm:$0xff]  }
  0x2d   :  { %788 = vmatprep.subr.bf16.mxu1 %v1099_v47  ;;  %v1185_v46 = vld [vmem:[%s1595_s1 + $0x328] ss:$16 sps:$4 sm:$0xff]   ;;  %v1190_v47 = vld [vmem:[%s1595_s1 + $0x10c] ss:$16 sps:$4 sm:$0xff]  }
  0x2f   :  { %778 = vmatmul.mubr.bf16.vlgmr.msra.gmra.mxu1 %v1363_v48  ;;  %725 = vmatpush2.bf16.msra.mxu0 %v1100_v50  ;;  %v1188_v50 = vld [vmem:[%s1595_s1 + $0x108] ss:$16 sps:$4 sm:$0xff]  }
  0x30   :  { %789 = vmatpush1.bf16.msra.mxu1 %v1097_v49  ;;  %726 = vmatprep.subr.bf16.mxu0 %v1101_v51  ;;  %v1193_v49 = vld [vmem:[%s1595_s1 + $0x30c] ss:$16 sps:$4 sm:$0xff]   ;;  %v1191_v51 = vld [vmem:[%s1595_s1 + $0x308] ss:$16 sps:$4 sm:$0xff]  }
  0x31   :  { %790 = vmatprep.subr.bf16.mxu1 %v1105_v52  ;;  %820 = vmatprep.mubr.bf16.mxu1 %v1127_v53 }
  0x33   :  { %727 = vmatpush2.bf16.msra.mxu0 %v1106_v55 }
  0x34   :  { %791 = vmatpush1.bf16.msra.mxu1 %v1103_v54  ;;  %728 = vmatprep.subr.bf16.mxu0 %v1107_v56 }
  0x35   :  { %792 = vmatprep.subr.bf16.mxu1 %v1111_v57 }
  0x37   :  { %729 = vmatpush2.bf16.msra.mxu0 %v1112_v59 }
  0x38   :  { %793 = vmatpush1.bf16.msra.mxu1 %v1109_v58  ;;  %730 = vmatprep.subr.bf16.mxu0 %v1113_v60 }
  0x39   :  { %794 = vmatprep.subr.bf16.mxu1 %v1117_v61 }
  0x3b   :  { %731 = vmatpush2.bf16.msra.mxu0 %v1118_v63 }
  0x3c   :  { %795 = vmatpush1.bf16.msra.mxu1 %v1115_v62  ;;  %732 = vmatprep.subr.bf16.mxu0 %v1119_v0 }
  0x3d   :  { %796 = vmatprep.subr.bf16.mxu1 %v1123_v1 }
  0x3f   :  { %733 = vmatpush2.bf16.msra.mxu0 %v1124_v3 }
  0x40   :  { %797 = vmatpush1.bf16.msra.mxu1 %v1121_v2  ;;  %831 = vmatprep.subr.bf16.mxu0 %v1133_v5 }
  0x41   :  { %798 = vmatprep.subr.bf16.mxu1 %v1130_v4 }
  0x42   :  { %735 = vmatmul.mubr.bf16.vlgmr.msra.gmra.mxu0 %v1432_v6 }
  0x43   :  { %832 = vmatpush1.bf16.msra.mxu0 %v1131_v8  ;;  %1023 = vmatprep.mubr.msk.bf16.mxu0 %vm698_vm0, %v1320_v35  ;;  %v1172_v35 = vld [vmem:[%s1595_s1 + $0x16c] ss:$16 sps:$4 sm:$0xff]  }
  0x44   :  { %799 = vmatpush1.bf16.msra.mxu1 %v1128_v7  ;;  %833 = vmatprep.subr.bf16.mxu0 %v1139_v10 }
  0x45   :  { %800 = vmatprep.subr.bf16.mxu1 %v1136_v9 }
  0x47   :  { %834 = vmatpush1.bf16.msra.mxu0 %v1137_v12 }
  0x48   :  { %801 = vmatpush1.bf16.msra.mxu1 %v1134_v11  ;;  %835 = vmatprep.subr.bf16.mxu0 %v1145_v14 }
  0x49   :  { %802 = vmatprep.subr.bf16.mxu1 %v1142_v13 }
  0x4b   :  { %836 = vmatpush1.bf16.msra.mxu0 %v1143_v16 }
  0x4c   :  { %803 = vmatpush1.bf16.msra.mxu1 %v1140_v15  ;;  %837 = vmatprep.subr.bf16.mxu0 %v1151_v18 }
  0x4d   :  { %804 = vmatprep.subr.bf16.mxu1 %v1148_v17 }
  0x4f   :  { %838 = vmatpush1.bf16.msra.mxu0 %v1149_v21 }
  0x50   :  { %805 = vmatpush2.bf16.msra.mxu1 %v1146_v20  ;;  %839 = vmatprep.subr.bf16.mxu0 %v1157_v24 }
  0x51   :  { %806 = vmatprep.subr.bf16.mxu1 %v1154_v23 }
  0x53   :  { %840 = vmatpush1.bf16.msra.mxu0 %v1155_v26 }
  0x54   :  { %807 = vmatpush2.bf16.msra.mxu1 %v1152_v25  ;;  %841 = vmatprep.subr.bf16.mxu0 %v1163_v28 }
  0x55   :  { %808 = vmatprep.subr.bf16.mxu1 %v1160_v27 }
  0x57   :  { %842 = vmatpush1.bf16.msra.mxu0 %v1161_v30 }
  0x58   :  { %809 = vmatpush2.bf16.msra.mxu1 %v1158_v29  ;;  %843 = vmatprep.subr.bf16.mxu0 %v1169_v32 }
  0x59   :  { %810 = vmatprep.subr.bf16.mxu1 %v1166_v31 }
  0x5b   :  { %844 = vmatpush1.bf16.msra.mxu0 %v1167_v34 }
  0x5c   :  { %811 = vmatpush2.bf16.msra.mxu1 %v1164_v33  ;;  %845 = vmatprep.subr.bf16.mxu0 %v1175_v36 }
  0x5d   :  { %812 = vmatprep.subr.bf16.mxu1 %v1172_v35 }
  0x5f   :  { %846 = vmatpush1.bf16.msra.mxu0 %v1173_v38 }
  0x60   :  { %813 = vmatpush2.bf16.msra.mxu1 %v1170_v37  ;;  %857 = vmatprep.subr.bf16.mxu0 %v1181_v40 }
  0x61   :  { %814 = vmatprep.subr.bf16.mxu1 %v1178_v39 }
  0x63   :  { %858 = vmatpush2.bf16.msra.mxu0 %v1179_v42 }
  0x64   :  { %815 = vmatpush2.bf16.msra.mxu1 %v1176_v41  ;;  %859 = vmatprep.subr.bf16.mxu0 %v1187_v44 }
  0x65   :  { %816 = vmatprep.subr.bf16.mxu1 %v1184_v43 }
  0x67   :  { %860 = vmatpush2.bf16.msra.mxu0 %v1185_v46 }
  0x68   :  { %817 = vmatpush2.bf16.msra.mxu1 %v1182_v45  ;;  %861 = vmatprep.subr.bf16.mxu0 %v1193_v49 }
  0x69   :  { %818 = vmatprep.subr.bf16.mxu1 %v1190_v47 }
  0x6b   :  { %862 = vmatpush2.bf16.msra.mxu0 %v1191_v51 }
  0x6c   :  { %819 = vmatpush2.bf16.msra.mxu1 %v1188_v50 }
  0x6e   :  { %864 = vmatmul.mubr.bf16.vlgmr.msra.gmra.mxu0 %v1363_v48 }
  0x6f   :  { %821 = vmatmul.mubr.bf16.vlgmr.msra.gmra.mxu1 %v1432_v6 }
  0x99   :  { %v132_v52 = vpop.permute.xlu0 %131 }
  0x9d   :  { %v137_v58 = vpop.permute.xlu0 %136 }
  0xef   :  { %v779_v53 = vpop.f32.mrf.mxu1 }
  0xf1   :  { %v781_v55 = vpop.f32.mrf.mxu1 }
  0xf3   :  { %v783_v62 = vpop.f32.mrf.mxu1 }
  0xf5   :  { %v785_v6 = vpop.f32.mrf.mxu1 }
 0x102   :  { %v736_v54 = vpop.f32.mrf.mxu0 }
 0x103   :  { %v737_v56 = vadd.f32 %v736_v54, %v132_v52 }
 0x104   :  { %v738_v57 = vpop.f32.mrf.mxu0 }
 0x105   :  { %v780_v59 = vadd.f32 %v779_v53, %v737_v56  ;;  %v739_v60 = vadd.f32 %v738_v57, %v132_v52 }
 0x106   :  { %v740_v61 = vpop.f32.mrf.mxu0 }
 0x107   :  { %vm874_vm1 = vcmp.ge.f32.partialorder %v780_v59, 0.0  ;;  %v882_v63 = vmul.f32 0.01, %v780_v59  ;;  %v782_v0 = vadd.f32 %v781_v55, %v739_v60  ;;  %v741_v1 = vadd.f32 %v740_v61, %v137_v58 }
 0x108   :  { %v742_v2 = vpop.f32.mrf.mxu0 }
 0x109   :  { %v890_v3 = vsel %vm874_vm1, %v780_v59, %v882_v63  ;;  %vm875_vm2 = vcmp.ge.f32.partialorder %v782_v0, 0.0  ;;  %v883_v4 = vmul.f32 0.01, %v782_v0  ;;  %v784_v48 = vadd.f32 %v783_v62, %v741_v1 }
 0x10a   :  { %898 = vst [vmem:[%s1598_s3] sm:$0xff] %v890_v3  ;;  %v743_v5 = vadd.f32 %v742_v2, %v137_v58 }
 0x10b   :  { %v891_v7 = vsel %vm875_vm2, %v782_v0, %v883_v4  ;;  %vm878_vm3 = vcmp.ge.f32.partialorder %v784_v48, 0.0  ;;  %v886_v8 = vmul.f32 0.01, %v784_v48 }
 0x10c   :  { %899 = vst [vmem:[%s1598_s3 + $0x8] sm:$0xff] %v891_v7  ;;  %v786_v9 = vadd.f32 %v785_v6, %v743_v5 }
 0x10d   :  { %v894_v10 = vsel %vm878_vm3, %v784_v48, %v886_v8 }
 0x10e   :  { %902 = vst [vmem:[%s1598_s3 + $0x20] sm:$0xff] %v894_v10  ;;  %vm879_vm4 = vcmp.ge.f32.partialorder %v786_v9, 0.0  ;;  %v887_v11 = vmul.f32 0.01, %v786_v9 }
 0x110   :  { %v895_v12 = vsel %vm879_vm4, %v786_v9, %v887_v11 }
 0x111   :  { %903 = vst [vmem:[%s1598_s3 + $0x28] sm:$0xff] %v895_v12 }
 0x12e   :  { %v865_v14 = vpop.f32.mrf.mxu0 }
 0x12f   :  { %v822_v13 = vpop.f32.mrf.mxu1 }
 0x130   :  { %v823_v15 = vadd.f32 %v822_v13, %v132_v52  ;;  %v867_v17 = vpop.f32.mrf.mxu0 }
 0x131   :  { %v824_v16 = vpop.f32.mrf.mxu1 }
 0x132   :  { %v866_v18 = vadd.f32 %v865_v14, %v823_v15  ;;  %v825_v19 = vadd.f32 %v824_v16, %v132_v52  ;;  %v869_v24 = vpop.f32.mrf.mxu0 }
 0x133   :  { %v826_v20 = vpop.f32.mrf.mxu1 }
 0x134   :  { %vm876_vm5 = vcmp.ge.f32.partialorder %v866_v18, 0.0  ;;  %v884_v21 = vmul.f32 0.01, %v866_v18  ;;  %v868_v22 = vadd.f32 %v867_v17, %v825_v19  ;;  %v827_v23 = vadd.f32 %v826_v20, %v137_v58  ;;  %v871_v32 = vpop.f32.mrf.mxu0 }
 0x135   :  { %v828_v25 = vpop.f32.mrf.mxu1 }
 0x136   :  { %v892_v26 = vsel %vm876_vm5, %v866_v18, %v884_v21  ;;  %vm877_vm6 = vcmp.ge.f32.partialorder %v868_v22, 0.0  ;;  %v885_v27 = vmul.f32 0.01, %v868_v22  ;;  %v870_v28 = vadd.f32 %v869_v24, %v827_v23 }
 0x137   :  { %900 = vst [vmem:[%s1598_s3 + $0x10] sm:$0xff] %v892_v26  ;;  %v829_v29 = vadd.f32 %v828_v25, %v137_v58 }
 0x138   :  { %v893_v30 = vsel %vm877_vm6, %v868_v22, %v885_v27  ;;  %vm880_vm7 = vcmp.ge.f32.partialorder %v870_v28, 0.0  ;;  %v888_v31 = vmul.f32 0.01, %v870_v28 }
 0x139   :  { %901 = vst [vmem:[%s1598_s3 + $0x18] sm:$0xff] %v893_v30  ;;  %v872_v33 = vadd.f32 %v871_v32, %v829_v29 }
 0x13a   :  { %v896_v34 = vsel %vm880_vm7, %v870_v28, %v888_v31 }
 0x13b   :  { %904 = vst [vmem:[%s1598_s3 + $0x30] sm:$0xff] %v896_v34  ;;  %vm881_vm8 = vcmp.ge.f32.partialorder %v872_v33, 0.0  ;;  %v889_v35 = vmul.f32 0.01, %v872_v33 }
 0x13d   :  { %v897_v36 = vsel %vm881_vm8, %v872_v33, %v889_v35 }
 0x13e   :  { %905 = vst [vmem:[%s1598_s3 + $0x38] sm:$0xff] %v897_v36 }

// kernel: _forward_arrays.19
= control target key start
LH: loop header
LB: loop body
LE: loop exit
PB: predicated region body
PF: predicated region fallthrough
CT: control target
= control target key end

     0   :  { %s712_s12 = smov 0   ;;  %s714_s13 = smov 0   ;;  %s937_s0 = inlined_call_operand.vmem [shape: f32[64,2048], index: 0, kind: input, shape index: {}]   ;;  %s938_s1 = inlined_call_operand.vmem [shape: f32[8,2048], index: 1, kind: input, shape index: {}]   ;;  %s939_s2 = inlined_call_operand.vmem [shape: f32[8,1], index: 2, kind: input, shape index: {}]   ;;  %s940_s3 = inlined_call_operand.vmem [shape: f32[8,2048], index: 3, kind: output, shape index: {}]  }
   0x1   :  { %s716_s14 = smov 0  }
   0x2 LB: > { %s625_s15 = sadd.s32 4294967295, %s689_s14   ;;  %s729_s16 = sadd.s32 1, %s689_s14   ;;  %s689_s14 = sphi %s716_s14, %s943_s14   ;;  %s685_s13 = sphi %s714_s13, %s942_s13   ;;  %s681_s12 = sphi %s712_s12, %s941_s12  }
   0x3   : > { %s17_s17 = ssub.s32 %s689_s14, %s729_s16  ;;  %s20_s18 = sadd.s32 1, %s685_s13 }
   0x4   : > { %p18_p0 = scmp.eq.s32.totalorder %s17_s17, 0  ;;  %p27_p1 = scmp.ne.s32.totalorder %s685_s13, %s681_s12 }
   0x5   : > { %p28_p2 = scmp.eq.s32.totalorder %s689_s14, 0  ;;  %p628_p4 = scmp.ge.s32.totalorder %s689_s14, 4 }
   0x6   : > { %s738_s19 = scalar_select %p18_p0, %s685_s13, %s20_s18  }
   0x7   : > { %p29_p3 = por %p28_p2, %p27_p1  ;;  %129 = sbr.rel (%p628_p4) target bundleno = 32 (0x20), region = 20 }
   0xc   : > { %132 = sbr.rel (!%p29_p3) target bundleno = 32 (0x20), region = 24  ;;  %s134_s20 = sand.u32 (%p29_p3), 1, %s685_s13  }
   0xd   : > { %s640_s21 = sshll.u32 (%p29_p3), %s689_s14, 5  ;;  %s629_s22 = sshll.u32 (%p29_p3), %s134_s20, 8 }
   0xe   : > { %s746_s25 = scalar_lea.vmem (%p29_p3), %s937_s0, %s640_s21  ;;  %s751_s26 = scalar_lea.vmem (%p29_p3), [#allocation2], %s629_s22 }
   0xf   : > { %v152_v0 = vld [vmem:[%s746_s25] sm:$0xff] (%p29_p3)  ;;  %v154_v1 = vld [vmem:[%s746_s25 + $0x8] sm:$0xff] (%p29_p3)  ;;  %v156_v2 = vld [vmem:[%s746_s25 + $0x10] sm:$0xff] (%p29_p3) }
  0x10   : > { %153 = vst [vmem:[%s751_s26] sm:$0xff] (%p29_p3), %v152_v0  ;;  %155 = vst [vmem:[%s751_s26 + $0x8] sm:$0xff] (%p29_p3), %v154_v1  ;;  %v158_v3 = vld [vmem:[%s746_s25 + $0x18] sm:$0xff] (%p29_p3)  ;;  %v160_v4 = vld [vmem:[%s746_s25 + $0x80] sm:$0xff] (%p29_p3) }
  0x11   : > { %157 = vst [vmem:[%s751_s26 + $0x10] sm:$0xff] %v156_v2  ;;  %v162_v5 = vld [vmem:[%s746_s25 + $0x88] sm:$0xff]  ;;  %159 = vst [vmem:[%s751_s26 + $0x18] sm:$0xff] %v158_v3  ;;  %v164_v6 = vld [vmem:[%s746_s25 + $0x90] sm:$0xff] }
  0x12   : > { %161 = vst [vmem:[%s751_s26 + $0x20] sm:$0xff] %v160_v4  ;;  %163 = vst [vmem:[%s751_s26 + $0x28] sm:$0xff] %v162_v5  ;;  %v166_v7 = vld [vmem:[%s746_s25 + $0x98] sm:$0xff]  ;;  %v168_v8 = vld [vmem:[%s746_s25 + $0x100] sm:$0xff] }
  0x13   : > { %165 = vst [vmem:[%s751_s26 + $0x30] sm:$0xff] %v164_v6  ;;  %167 = vst [vmem:[%s751_s26 + $0x38] sm:$0xff] %v166_v7  ;;  %v170_v9 = vld [vmem:[%s746_s25 + $0x108] sm:$0xff]  ;;  %v172_v10 = vld [vmem:[%s746_s25 + $0x110] sm:$0xff] }
  0x14   : > { %169 = vst [vmem:[%s751_s26 + $0x40] sm:$0xff] %v168_v8  ;;  %v174_v11 = vld [vmem:[%s746_s25 + $0x118] sm:$0xff]  ;;  %171 = vst [vmem:[%s751_s26 + $0x48] sm:$0xff] %v170_v9  ;;  %v176_v12 = vld [vmem:[%s746_s25 + $0x180] sm:$0xff] }
  0x15   : > { %173 = vst [vmem:[%s751_s26 + $0x50] sm:$0xff] %v172_v10  ;;  %175 = vst [vmem:[%s751_s26 + $0x58] sm:$0xff] %v174_v11  ;;  %v178_v13 = vld [vmem:[%s746_s25 + $0x188] sm:$0xff]  ;;  %v180_v14 = vld [vmem:[%s746_s25 + $0x190] sm:$0xff] }
  0x16   : > { %177 = vst [vmem:[%s751_s26 + $0x60] sm:$0xff] %v176_v12  ;;  %179 = vst [vmem:[%s751_s26 + $0x68] sm:$0xff] %v178_v13  ;;  %v182_v15 = vld [vmem:[%s746_s25 + $0x198] sm:$0xff]  ;;  %v184_v16 = vld [vmem:[%s746_s25 + $0x200] sm:$0xff] }
  0x17   : > { %181 = vst [vmem:[%s751_s26 + $0x70] sm:$0xff] %v180_v14  ;;  %v186_v17 = vld [vmem:[%s746_s25 + $0x208] sm:$0xff]  ;;  %183 = vst [vmem:[%s751_s26 + $0x78] sm:$0xff] %v182_v15  ;;  %v188_v18 = vld [vmem:[%s746_s25 + $0x210] sm:$0xff] }
  0x18   : > { %185 = vst [vmem:[%s751_s26 + $0x80] sm:$0xff] %v184_v16  ;;  %187 = vst [vmem:[%s751_s26 + $0x88] sm:$0xff] %v186_v17  ;;  %v190_v19 = vld [vmem:[%s746_s25 + $0x218] sm:$0xff]  ;;  %v192_v20 = vld [vmem:[%s746_s25 + $0x280] sm:$0xff] }
  0x19   : > { %189 = vst [vmem:[%s751_s26 + $0x90] sm:$0xff] %v188_v18  ;;  %191 = vst [vmem:[%s751_s26 + $0x98] sm:$0xff] %v190_v19  ;;  %v194_v21 = vld [vmem:[%s746_s25 + $0x288] sm:$0xff]  ;;  %v196_v22 = vld [vmem:[%s746_s25 + $0x290] sm:$0xff] }
  0x1a   : > { %193 = vst [vmem:[%s751_s26 + $0xa0] sm:$0xff] %v192_v20  ;;  %v198_v23 = vld [vmem:[%s746_s25 + $0x298] sm:$0xff]  ;;  %195 = vst [vmem:[%s751_s26 + $0xa8] sm:$0xff] %v194_v21  ;;  %v200_v24 = vld [vmem:[%s746_s25 + $0x300] sm:$0xff] }
  0x1b   : > { %197 = vst [vmem:[%s751_s26 + $0xb0] sm:$0xff] %v196_v22  ;;  %199 = vst [vmem:[%s751_s26 + $0xb8] sm:$0xff] %v198_v23  ;;  %v202_v25 = vld [vmem:[%s746_s25 + $0x308] sm:$0xff]  ;;  %v204_v26 = vld [vmem:[%s746_s25 + $0x310] sm:$0xff] }
  0x1c   : > { %201 = vst [vmem:[%s751_s26 + $0xc0] sm:$0xff] %v200_v24  ;;  %203 = vst [vmem:[%s751_s26 + $0xc8] sm:$0xff] %v202_v25  ;;  %v206_v27 = vld [vmem:[%s746_s25 + $0x318] sm:$0xff]  ;;  %v208_v28 = vld [vmem:[%s746_s25 + $0x380] sm:$0xff] }
  0x1d   : > { %205 = vst [vmem:[%s751_s26 + $0xd0] sm:$0xff] %v204_v26  ;;  %v210_v29 = vld [vmem:[%s746_s25 + $0x388] sm:$0xff]  ;;  %207 = vst [vmem:[%s751_s26 + $0xd8] sm:$0xff] %v206_v27  ;;  %v212_v30 = vld [vmem:[%s746_s25 + $0x390] sm:$0xff] }
  0x1e   : > { %209 = vst [vmem:[%s751_s26 + $0xe0] sm:$0xff] %v208_v28  ;;  %211 = vst [vmem:[%s751_s26 + $0xe8] sm:$0xff] %v210_v29  ;;  %v214_v31 = vld [vmem:[%s746_s25 + $0x398] sm:$0xff] }
  0x1f   : > { %213 = vst [vmem:[%s751_s26 + $0xf0] sm:$0xff] %v212_v30  ;;  %215 = vst [vmem:[%s751_s26 + $0xf8] sm:$0xff] %v214_v31 }
  0x20 PF: > { %p632_p5 = scmp.ge.s32.totalorder %s689_s14, 1  ;;  %p229_p6 = scmp.lt.s32.totalorder %s689_s14, 5 }
  0x22   : > { %p230_p7 = pnand %p632_p5, %p229_p6 }
  0x23   : > { %s634_s29 = sshll.u32 (!%p230_p7), %s625_s15, 2  ;;  %s236_s30 = sand.u32 (!%p230_p7), 1, %s681_s12  }
  0x24   : > { %233 = sbr.rel (%p230_p7) target bundleno = 173 (0xad), region = 51  ;;  %p266_p8 = scmp.lt.s32.totalorder (!%p230_p7), %s634_s29, 15 }
  0x25   : > { %s633_s5 = sshll.u32 (!%p230_p7), %s236_s30, 8 }
  0x26   : > { %s842_s9 = scalar_lea.vmem (!%p230_p7), [#allocation2], %s633_s5 }
  0x29   : > { %v525_v32 = vld [vmem:[%s939_s2] sm:$0xff]  ;;  %v691_v33 = vmov 0   ;;  %s945_s29 = smov (!%p266_p8, %s634_s29), 15  ;;  %v285_v34 = vlaneseq  ;;  %v282_v43 = vld [vmem:[%s842_s9 + $0x8] sm:$0xff]  ;;  %v283_v48 = vld [vmem:[%s842_s9 + $0x10] sm:$0xff] }
  0x2a   : > { %666 = vset.pattern.permute.xlu0 %v691_v33  ;;  %s635_s4 = sshll.u32 %s945_s29, 3  ;;  %v281_v42 = vld [vmem:[%s842_s9] sm:$0xff]  ;;  %v284_v49 = vld [vmem:[%s842_s9 + $0x18] sm:$0xff]  ;;  %v306_v55 = vld [vmem:[%s842_s9 + $0x28] sm:$0xff] }
  0x2b   : > { %532 = vperm.xlu0 %666, %v525_v32   ;;  %v825_v35 = vshrl.u32 %v285_v34, 7  ;;  %s269_s8 = scalar_lea.vmem %s938_s1, %s635_s4  ;;  %v305_v51 = vld [vmem:[%s842_s9 + $0x20] sm:$0xff]  ;;  %v307_v56 = vld [vmem:[%s842_s9 + $0x30] sm:$0xff]  ;;  %v308_v57 = vld [vmem:[%s842_s9 + $0x38] sm:$0xff]  ;;  %s275_s12 = scalar_lea.vmem %s940_s3, %s635_s4 }
  0x2c   : > { %v834_v38 = vld [vmem:[%s269_s8] sm:$0xff]  ;;  %v836_v39 = vld [vmem:[%s269_s8 + $0x8] sm:$0xff]  ;;  %v838_v40 = vld [vmem:[%s269_s8 + $0x10] sm:$0xff] }
  0x2d   : > { %v287_v36 = vsub.s32 0, %v825_v35  ;;  %v311_v37 = vsub.s32 1, %v825_v35  ;;  %v840_v41 = vld [vmem:[%s269_s8 + $0x18] sm:$0xff]  ;;  %v339_v58 = vsub.s32 2, %v825_v35  ;;  %v367_v6 = vsub.s32 3, %v825_v35  ;;  %v333_v7 = vld [vmem:[%s842_s9 + $0x40] sm:$0xff] }
  0x2e   : > { %v334_v8 = vld [vmem:[%s842_s9 + $0x48] sm:$0xff]  ;;  %v335_v9 = vld [vmem:[%s842_s9 + $0x50] sm:$0xff]  ;;  %v336_v11 = vld [vmem:[%s842_s9 + $0x58] sm:$0xff]  ;;  %v395_v28 = vsub.s32 4, %v825_v35 }
  0x2f   : > { %v288_v44 = vrot.slane %v834_v38, %v287_v36  ;;  %v292_v45 = vrot.slane %v836_v39, %v287_v36  ;;  %v296_v46 = vrot.slane %v838_v40, %v287_v36  ;;  %v312_v47 = vrot.slane %v834_v38, %v311_v37  ;;  %v361_v21 = vld [vmem:[%s842_s9 + $0x60] sm:$0xff]  ;;  %v362_v25 = vld [vmem:[%s842_s9 + $0x68] sm:$0xff]  ;;  %v363_v26 = vld [vmem:[%s842_s9 + $0x70] sm:$0xff] }
  0x30   : > { %v300_v50 = vrot.slane %v840_v41, %v287_v36  ;;  %v316_v52 = vrot.slane %v836_v39, %v311_v37  ;;  %v320_v53 = vrot.slane %v838_v40, %v311_v37  ;;  %v324_v54 = vrot.slane %v840_v41, %v311_v37  ;;  %v364_v27 = vld [vmem:[%s842_s9 + $0x78] sm:$0xff] }
  0x31   : > { %v301_v59 = vmul.f32 %v288_v44, %v281_v42  ;;  %v302_v60 = vmul.f32 %v292_v45, %v282_v43  ;;  %v303_v61 = vmul.f32 %v296_v46, %v283_v48  ;;  %v325_v62 = vmul.f32 %v312_v47, %v305_v51  ;;  %v389_v46 = vld [vmem:[%s842_s9 + $0x80] sm:$0xff]  ;;  %v390_v47 = vld [vmem:[%s842_s9 + $0x88] sm:$0xff]  ;;  %v391_v48 = vld [vmem:[%s842_s9 + $0x90] sm:$0xff] }
  0x32   : > { %v304_v63 = vmul.f32 %v300_v50, %v284_v49  ;;  %v326_v0 = vmul.f32 %v316_v52, %v306_v55  ;;  %v327_v1 = vmul.f32 %v320_v53, %v307_v56  ;;  %v328_v2 = vmul.f32 %v324_v54, %v308_v57  ;;  %v392_v50 = vld [vmem:[%s842_s9 + $0x98] sm:$0xff] }
  0x33   : > { %v340_v3 = vrot.slane %v834_v38, %v339_v58  ;;  %v344_v4 = vrot.slane %v836_v39, %v339_v58  ;;  %v348_v5 = vrot.slane %v838_v40, %v339_v58  ;;  %v352_v10 = vrot.slane %v840_v41, %v339_v58 }
  0x34   : > { %v329_v12 = vadd.f32 %v325_v62, %v301_v59  ;;  %v330_v13 = vadd.f32 %v326_v0, %v302_v60  ;;  %v331_v14 = vadd.f32 %v327_v1, %v303_v61  ;;  %v332_v15 = vadd.f32 %v328_v2, %v304_v63  ;;  %v417_v0 = vld [vmem:[%s842_s9 + $0xa0] sm:$0xff] }
  0x35   : > { %v353_v16 = vmul.f32 %v340_v3, %v333_v7  ;;  %v354_v17 = vmul.f32 %v344_v4, %v334_v8  ;;  %v355_v18 = vmul.f32 %v348_v5, %v335_v9  ;;  %v368_v19 = vrot.slane %v834_v38, %v367_v6  ;;  %v418_v4 = vld [vmem:[%s842_s9 + $0xa8] sm:$0xff]  ;;  %v419_v5 = vld [vmem:[%s842_s9 + $0xb0] sm:$0xff] }
  0x36   : > { %v356_v20 = vmul.f32 %v352_v10, %v336_v11  ;;  %v372_v22 = vrot.slane %v836_v39, %v367_v6  ;;  %v376_v23 = vrot.slane %v838_v40, %v367_v6  ;;  %v380_v24 = vrot.slane %v840_v41, %v367_v6  ;;  %v420_v6 = vld [vmem:[%s842_s9 + $0xb8] sm:$0xff] }
  0x37   : > { %v357_v29 = vadd.f32 %v353_v16, %v329_v12  ;;  %v358_v30 = vadd.f32 %v354_v17, %v330_v13  ;;  %v359_v31 = vadd.f32 %v355_v18, %v331_v14  ;;  %v381_v32 = vmul.f32 %v368_v19, %v361_v21 }
  0x38   : > { %v360_v33 = vadd.f32 %v356_v20, %v332_v15  ;;  %v382_v34 = vmul.f32 %v372_v22, %v362_v25  ;;  %v383_v36 = vmul.f32 %v376_v23, %v363_v26  ;;  %v384_v37 = vmul.f32 %v380_v24, %v364_v27 }
  0x39   : > { %v396_v42 = vrot.slane %v834_v38, %v395_v28  ;;  %v400_v43 = vrot.slane %v836_v39, %v395_v28  ;;  %v404_v44 = vrot.slane %v838_v40, %v395_v28  ;;  %v423_v45 = vsub.s32 5, %v825_v35 }
  0x3a   : > { %v408_v49 = vrot.slane %v840_v41, %v395_v28  ;;  %v501_v51 = vrot.slane %v834_v38, 4  ;;  %v507_v52 = vrot.slane %v836_v39, 4  ;;  %v513_v53 = vrot.slane %v838_v40, 4  ;;  %v445_v28 = vld [vmem:[%s842_s9 + $0xc0] sm:$0xff] }
  0x3b   : > { %v519_v54 = vrot.slane %v840_v41, 4  ;;  %v385_v55 = vadd.f32 %v381_v32, %v357_v29  ;;  %v386_v56 = vadd.f32 %v382_v34, %v358_v30  ;;  %v387_v57 = vadd.f32 %v383_v36, %v359_v31  ;;  %v446_v29 = vld [vmem:[%s842_s9 + $0xc8] sm:$0xff]  ;;  %v447_v30 = vld [vmem:[%s842_s9 + $0xd0] sm:$0xff] }
  0x3c   : > { %v388_v58 = vadd.f32 %v384_v37, %v360_v33  ;;  %v409_v59 = vmul.f32 %v396_v42, %v389_v46  ;;  %v410_v60 = vmul.f32 %v400_v43, %v390_v47  ;;  %v411_v61 = vmul.f32 %v404_v44, %v391_v48  ;;  %v448_v37 = vld [vmem:[%s842_s9 + $0xd8] sm:$0xff] }
  0x3d   : > { %v424_v62 = vrot.slane %v834_v38, %v423_v45  ;;  %v412_v63 = vmul.f32 %v408_v49, %v392_v50  ;;  %v428_v1 = vrot.slane %v836_v39, %v423_v45  ;;  %v432_v2 = vrot.slane %v838_v40, %v423_v45  ;;  %v473_v50 = vld [vmem:[%s842_s9 + $0xe0] sm:$0xff] }
  0x3e   : > { %v436_v3 = vrot.slane %v840_v41, %v423_v45  ;;  %v502_v7 = vadd.f32 %v501_v51, %v834_v38  ;;  %v508_v8 = vadd.f32 %v507_v52, %v836_v39  ;;  %v514_v9 = vadd.f32 %v513_v53, %v838_v40 }
  0x3f   : > { %v520_v10 = vadd.f32 %v519_v54, %v840_v41  ;;  %v451_v11 = vsub.s32 6, %v825_v35  ;;  %v413_v12 = vadd.f32 %v409_v59, %v385_v55  ;;  %v414_v13 = vadd.f32 %v410_v60, %v386_v56  ;;  %v474_v54 = vld [vmem:[%s842_s9 + $0xe8] sm:$0xff]  ;;  %v475_v55 = vld [vmem:[%s842_s9 + $0xf0] sm:$0xff]  ;;  %v476_v56 = vld [vmem:[%s842_s9 + $0xf8] sm:$0xff] }
  0x40   : > { %v415_v14 = vadd.f32 %v411_v61, %v387_v57  ;;  %v437_v15 = vmul.f32 %v424_v62, %v417_v0  ;;  %v416_v16 = vadd.f32 %v412_v63, %v388_v58  ;;  %v438_v17 = vmul.f32 %v428_v1, %v418_v4 }
  0x41   : > { %v439_v18 = vmul.f32 %v432_v2, %v419_v5  ;;  %v440_v19 = vmul.f32 %v436_v3, %v420_v6  ;;  %v503_v20 = vrot.slane %v502_v7, 2  ;;  %v509_v21 = vrot.slane %v508_v8, 2 }
  0x42   : > { %v515_v22 = vrot.slane %v514_v9, 2  ;;  %v521_v23 = vrot.slane %v520_v10, 2  ;;  %v452_v24 = vrot.slane %v834_v38, %v451_v11  ;;  %v456_v25 = vrot.slane %v836_v39, %v451_v11 }
  0x43   : > { %v460_v26 = vrot.slane %v838_v40, %v451_v11  ;;  %v479_v27 = vsub.s32 7, %v825_v35  ;;  %v464_v31 = vrot.slane %v840_v41, %v451_v11  ;;  %v441_v32 = vadd.f32 %v437_v15, %v413_v12 }
  0x44   : > { %v442_v33 = vadd.f32 %v438_v17, %v414_v13  ;;  %v443_v34 = vadd.f32 %v439_v18, %v415_v14  ;;  %v444_v36 = vadd.f32 %v440_v19, %v416_v16  ;;  %v504_v42 = vadd.f32 %v503_v20, %v502_v7 }
  0x45   : > { %v510_v43 = vadd.f32 %v509_v21, %v508_v8  ;;  %v516_v44 = vadd.f32 %v515_v22, %v514_v9  ;;  %v522_v45 = vadd.f32 %v521_v23, %v520_v10  ;;  %v465_v46 = vmul.f32 %v452_v24, %v445_v28 }
  0x46   : > { %v466_v35 = vmul.f32 %v456_v25, %v446_v29  ;;  %v467_v47 = vmul.f32 %v460_v26, %v447_v30  ;;  %v480_v48 = vrot.slane %v834_v38, %v479_v27  ;;  %v468_v49 = vmul.f32 %v464_v31, %v448_v37 }
  0x47   : > { %v484_v51 = vrot.slane %v836_v39, %v479_v27  ;;  %v488_v52 = vrot.slane %v838_v40, %v479_v27  ;;  %v492_v53 = vrot.slane %v840_v41, %v479_v27  ;;  %v505_v57 = vrot.slane %v504_v42, 1 }
  0x48   : > { %v511_v58 = vrot.slane %v510_v43, 1  ;;  %v517_v59 = vrot.slane %v516_v44, 1  ;;  %v523_v60 = vrot.slane %v522_v45, 1  ;;  %v469_v61 = vadd.f32 %v465_v46, %v441_v32 }
  0x49   : > { %v470_v62 = vadd.f32 %v466_v35, %v442_v33  ;;  %v471_v63 = vadd.f32 %v467_v47, %v443_v34  ;;  %v493_v0 = vmul.f32 %v480_v48, %v473_v50  ;;  %v472_v38 = vadd.f32 %v468_v49, %v444_v36 }
  0x4a   : > { %v494_v1 = vmul.f32 %v484_v51, %v474_v54  ;;  %v495_v2 = vmul.f32 %v488_v52, %v475_v55  ;;  %v496_v3 = vmul.f32 %v492_v53, %v476_v56  ;;  %v506_v39 = vadd.f32 %v505_v57, %v504_v42 }
  0x4b   : > { %v512_v4 = vadd.f32 %v511_v58, %v510_v43  ;;  %v518_v40 = vadd.f32 %v517_v59, %v516_v44  ;;  %v524_v5 = vadd.f32 %v523_v60, %v522_v45  ;;  %v497_v41 = vadd.f32 %v493_v0, %v469_v61 }
  0x4c   : > { %v498_v6 = vadd.f32 %v494_v1, %v470_v62  ;;  %v499_v7 = vadd.f32 %v495_v2, %v471_v63  ;;  %v500_v8 = vadd.f32 %v496_v3, %v472_v38  ;;  %v526_v9 = vsub.f32 1.0, %v506_v39 }
  0x4d   : > { %v527_v10 = vsub.f32 1.0, %v512_v4  ;;  %v528_v11 = vsub.f32 1.0, %v518_v40  ;;  %v529_v12 = vsub.f32 1.0, %v524_v5  ;;  %v539_v13 = vmul.f32 %v506_v39, %v497_v41 }
  0x4e   : > { %v540_v14 = vmul.f32 %v512_v4, %v498_v6  ;;  %v541_v15 = vmul.f32 %v518_v40, %v499_v7  ;;  %v542_v16 = vmul.f32 %v524_v5, %v500_v8 }
  0xa6   : > { %v533_v17 = vpop.permute.xlu0 %532 }
  0xa7   : > { %v535_v18 = vmul.f32 %v533_v17, %v526_v9  ;;  %v536_v19 = vmul.f32 %v533_v17, %v527_v10  ;;  %v537_v20 = vmul.f32 %v533_v17, %v528_v11  ;;  %v538_v21 = vmul.f32 %v533_v17, %v529_v12 }
  0xa9   : > { %v543_v22 = vadd.f32 %v539_v13, %v535_v18  ;;  %v544_v23 = vadd.f32 %v540_v14, %v536_v19  ;;  %v545_v24 = vadd.f32 %v541_v15, %v537_v20  ;;  %v546_v25 = vadd.f32 %v542_v16, %v538_v21 }
  0xab   : > { %547 = vst [vmem:[%s275_s12] sm:$0xff] %v543_v22  ;;  %548 = vst [vmem:[%s275_s12 + $0x8] sm:$0xff] %v544_v23 }
  0xac   : > { %549 = vst [vmem:[%s275_s12 + $0x10] sm:$0xff] %v545_v24  ;;  %550 = vst [vmem:[%s275_s12 + $0x18] sm:$0xff] %v546_v25 }
  0xad PF: > { %p10_p9 = scmp.ge.s32.totalorder %s729_s16, 6   ;;  %s941_s12 = smov %s685_s13 }
  0xae   : > { %s942_s13 = smov %s738_s19  ;;  %s943_s14 = smov %s729_s16 }
  0xaf   :  { %12 = sbr.rel (!%p10_p9) target bundleno = 2 (0x2), region = 93 }

// kernel: _forward_arrays.20
= control target key start
LH: loop header
LB: loop body
LE: loop exit
PB: predicated region body
PF: predicated region fallthrough
CT: control target
= control target key end

     0   :  { %s492_s12 = smov 0   ;;  %s494_s13 = smov 0   ;;  %s550_s0 = inlined_call_operand.vmem [shape: bf16[8,16], index: 0, kind: input, shape index: {}]   ;;  %s551_s1 = inlined_call_operand.vmem [shape: bf16[16,2048], index: 1, kind: input, shape index: {}]   ;;  %s552_s2 = inlined_call_operand.vmem [shape: f32[8,1], index: 2, kind: input, shape index: {}]   ;;  %s553_s3 = inlined_call_operand.vmem [shape: f32[8,2048], index: 3, kind: output, shape index: {}]  }
   0x1   :  { %s496_s14 = smov 0  }
   0x2 LB: > { %s395_s15 = sadd.s32 4294967295, %s469_s14   ;;  %s509_s16 = sadd.s32 1, %s469_s14   ;;  %s469_s14 = sphi %s496_s14, %s556_s14   ;;  %s465_s13 = sphi %s494_s13, %s555_s13   ;;  %s461_s12 = sphi %s492_s12, %s554_s12  }
   0x3   : > { %s38_s17 = ssub.s32 %s469_s14, %s509_s16  ;;  %s41_s18 = sadd.s32 1, %s465_s13 }
   0x4   : > { %p39_p0 = scmp.eq.s32.totalorder %s38_s17, 0  ;;  %p48_p1 = scmp.ne.s32.totalorder %s465_s13, %s461_s12 }
   0x5   : > { %p49_p2 = scmp.eq.s32.totalorder %s469_s14, 0  ;;  %p398_p4 = scmp.ge.s32.totalorder %s469_s14, 4 }
   0x6   : > { %s518_s19 = scalar_select %p39_p0, %s465_s13, %s41_s18  }
   0x7   : > { %p50_p3 = por %p49_p2, %p48_p1  ;;  %127 = sbr.rel (%p398_p4) target bundleno = 18 (0x12), region = 24 }
   0xc   : > { %130 = sbr.rel (!%p50_p3) target bundleno = 18 (0x12), region = 28  ;;  %s132_s20 = sand.u32 (%p50_p3), 1, %s465_s13  }
   0xd   : > { %s414_s21 = sshll.u32 (%p50_p3), %s469_s14, 4  ;;  %s399_s22 = sshll.u32 (%p50_p3), %s132_s20, 5 }
   0xe   : > { %s137_s25 = scalar_lea.vmem (%p50_p3), %s551_s1, %s414_s21  ;;  %s134_s26 = scalar_lea.vmem (%p50_p3), [#allocation2], %s399_s22 }
   0xf   : > { %v150_v0 = vld [vmem:[%s137_s25] sm:$0xff] (%p50_p3)  ;;  %v152_v1 = vld [vmem:[%s137_s25 + $0x8] sm:$0xff] (%p50_p3) }
  0x10   : > { %v154_v2 = vld [vmem:[%s137_s25 + $0x40] sm:$0xff] (%p50_p3)  ;;  %151 = vst [vmem:[%s134_s26] sm:$0xff] (%p50_p3), %v150_v0  ;;  %153 = vst [vmem:[%s134_s26 + $0x8] sm:$0xff] (%p50_p3), %v152_v1  ;;  %v156_v3 = vld [vmem:[%s137_s25 + $0x48] sm:$0xff] (%p50_p3) }
  0x11   : > { %155 = vst [vmem:[%s134_s26 + $0x10] sm:$0xff] %v154_v2  ;;  %157 = vst [vmem:[%s134_s26 + $0x18] sm:$0xff] %v156_v3 }
  0x12 PF: > { %p402_p5 = scmp.ge.s32.totalorder %s469_s14, 1  ;;  %p162_p6 = scmp.lt.s32.totalorder %s469_s14, 5 }
  0x14   : > { %p163_p7 = pnand %p402_p5, %p162_p6 }
  0x15   : > { %s169_s27 = sand.u32 (!%p163_p7), 1, %s461_s12   ;;  %s404_s7 = sshll.u32 (!%p163_p7), %s395_s15, 2 }
  0x16   : > { %166 = sbr.rel (%p163_p7) target bundleno = 237 (0xed), region = 51  ;;  %s403_s30 = sshll.u32 (!%p163_p7), %s169_s27, 5 }
  0x17   : > { %s171_s4 = scalar_lea.vmem (!%p163_p7), [#allocation2], %s403_s30  ;;  %p194_p8 = scmp.lt.s32.totalorder (!%p163_p7), %s404_s7, 15 }
  0x1b   : > { %v205_v4 = vld [vmem:[%s552_s2] sm:$0xff]  ;;  %v471_v5 = vmov 0   ;;  %v443_v7 = vld [vmem:[%s171_s4 + $0xc] ss:$16 sps:$4 sm:$0xff]   ;;  %v446_v9 = vld [vmem:[%s171_s4 + $0x8] ss:$16 sps:$4 sm:$0xff]  }
  0x1c   : > { %267 = vmatprep.mubr.bf16.mxu0 %v471_v5  ;;  %308 = vmatprep.mubr.bf16.mxu1 %v471_v5  ;;  %v441_v6 = vld [vmem:[%s171_s4 + $0x4] ss:$16 sps:$4 sm:$0xff]   ;;  %v445_v8 = vld [vmem:[%s171_s4] ss:$16 sps:$4 sm:$0xff]   ;;  %vm231_vm0 = vcmask 130048   ;;  %s558_s7 = smov (!%p194_p8, %s404_s7), 15 }
  0x1d   : > { %440 = vset.pattern.permute.xlu0 %v471_v5  ;;  %249 = vmatprep.subr.bf16.mxu0 %v441_v6  ;;  %v200_v10 = vld [vmem:[%s550_s0] sm:$0xf]  ;;  %s405_s8 = sshll.u32 %s558_s7, 3 }
  0x1e   : > { %208 = vperm.xlu0 %440, %v205_v4   ;;  %290 = vmatprep.subr.bf16.mxu1 %v443_v7  ;;  %s197_s11 = scalar_lea.vmem %s553_s3, %s405_s8 }
  0x1f   : > { %250 = vmatpush1.bf16.msra.mxu0 %v445_v8  ;;  %291 = vmatpush1.bf16.msra.mxu1 %v446_v9 }
  0x22   : > { %410 = vmatmul.mubr.msk.bf16.vlgmr.msra.gmra.mxu0 %vm231_vm0, %v200_v10  ;;  %411 = vmatmul.mubr.msk.bf16.vlgmr.msra.gmra.mxu1 %vm231_vm0, %v200_v10 }
  0x99   : > { %v209_v11 = vpop.permute.xlu0 %208 }
  0xe2   : > { %v269_v12 = vpop.f32.mrf.mxu0  ;;  %v310_v13 = vpop.f32.mrf.mxu1 }
  0xe3   : > { %v270_v14 = vadd.f32 %v269_v12, %v209_v11  ;;  %v311_v15 = vadd.f32 %v310_v13, %v209_v11 }
  0xe4   : > { %v271_v16 = vpop.f32.mrf.mxu0  ;;  %v312_v17 = vpop.f32.mrf.mxu1 }
  0xe5   : > { %vm317_vm1 = vcmp.ge.f32.partialorder %v270_v14, 0.0  ;;  %v321_v18 = vmul.f32 0.01, %v270_v14  ;;  %vm319_vm2 = vcmp.ge.f32.partialorder %v311_v15, 0.0  ;;  %v323_v19 = vmul.f32 0.01, %v311_v15 }
  0xe6   : > { %v272_v20 = vadd.f32 %v271_v16, %v209_v11  ;;  %v313_v21 = vadd.f32 %v312_v17, %v209_v11  ;;  %v273_v22 = vpop.f32.mrf.mxu0  ;;  %v314_v23 = vpop.f32.mrf.mxu1 }
  0xe7   : > { %v325_v24 = vsel %vm317_vm1, %v270_v14, %v321_v18  ;;  %v327_v25 = vsel %vm319_vm2, %v311_v15, %v323_v19 }
  0xe8   : > { %329 = vst [vmem:[%s197_s11] sm:$0xff] %v325_v24  ;;  %331 = vst [vmem:[%s197_s11 + $0x10] sm:$0xff] %v327_v25  ;;  %vm318_vm3 = vcmp.ge.f32.partialorder %v272_v20, 0.0  ;;  %v322_v26 = vmul.f32 0.01, %v272_v20  ;;  %vm320_vm4 = vcmp.ge.f32.partialorder %v313_v21, 0.0  ;;  %v274_v28 = vpop.f32.mrf.mxu0  ;;  %v315_v29 = vpop.f32.mrf.mxu1 }
  0xe9   : > { %v324_v27 = vmul.f32 0.01, %v313_v21 }
  0xea   : > { %v326_v30 = vsel %vm318_vm3, %v272_v20, %v322_v26 }
  0xeb   : > { %v328_v31 = vsel %vm320_vm4, %v313_v21, %v324_v27  ;;  %330 = vst [vmem:[%s197_s11 + $0x8] sm:$0xff] %v326_v30 }
  0xec   : > { %332 = vst [vmem:[%s197_s11 + $0x18] sm:$0xff] %v328_v31 }
  0xed PF: > { %p10_p9 = scmp.ge.s32.totalorder %s509_s16, 6   ;;  %s554_s12 = smov %s465_s13 }
  0xee   : > { %s555_s13 = smov %s518_s19  ;;  %s556_s14 = smov %s509_s16 }
  0xef   :  { %12 = sbr.rel (!%p10_p9) target bundleno = 2 (0x2), region = 90 }

// kernel: _forward_arrays.24
= control target key start
LH: loop header
LB: loop body
LE: loop exit
PB: predicated region body
PF: predicated region fallthrough
CT: control target
= control target key end

     0   :  { %s1048_s12 = smov 0   ;;  %s1050_s13 = smov 0   ;;  %s1286_s0 = inlined_call_operand.vmem [shape: bf16[8,224], index: 0, kind: input, shape index: {}]   ;;  %s1287_s1 = inlined_call_operand.vmem [shape: bf16[224,2048], index: 1, kind: input, shape index: {}]   ;;  %s1288_s2 = inlined_call_operand.vmem [shape: f32[8,1], index: 2, kind: input, shape index: {}]   ;;  %s1289_s3 = inlined_call_operand.vmem [shape: f32[8,2048], index: 3, kind: output, shape index: {}]  }
   0x1   :  { %s1052_s14 = smov 0  }
   0x2 LB: > { %s817_s15 = sadd.s32 4294967295, %s1025_s14   ;;  %s1065_s16 = sadd.s32 1, %s1025_s14   ;;  %s1025_s14 = sphi %s1052_s14, %s1292_s14   ;;  %s1021_s13 = sphi %s1050_s13, %s1291_s13   ;;  %s1017_s12 = sphi %s1048_s12, %s1290_s12  }
   0x3   : > { %s38_s17 = ssub.s32 %s1025_s14, %s1065_s16  ;;  %s41_s18 = sadd.s32 1, %s1021_s13 }
   0x4   : > { %p39_p0 = scmp.eq.s32.totalorder %s38_s17, 0  ;;  %p48_p1 = scmp.ne.s32.totalorder %s1021_s13, %s1017_s12 }
   0x5   : > { %p49_p2 = scmp.eq.s32.totalorder %s1025_s14, 0  ;;  %p820_p4 = scmp.ge.s32.totalorder %s1025_s14, 4 }
   0x6   : > { %s1074_s19 = scalar_select %p39_p0, %s1021_s13, %s41_s18  }
   0x7   : > { %p50_p3 = por %p49_p2, %p48_p1  ;;  %127 = sbr.rel (%p820_p4) target bundleno = 44 (0x2c), region = 24 }
   0xc   : > { %130 = sbr.rel (!%p50_p3) target bundleno = 44 (0x2c), region = 28  ;;  %s132_s20 = sand.u32 (%p50_p3), 1, %s1021_s13  }
   0xd   : > { %s888_s21 = sshll.u32 (%p50_p3), %s1025_s14, 4  ;;  %s889_s22 = smul.u32 (%p50_p3), 448, %s132_s20 }
   0xe   : > { %s1082_s25 = scalar_lea.vmem (%p50_p3), %s1287_s1, %s888_s21 }
   0xf   : > { %v150_v0 = vld [vmem:[%s1082_s25] sm:$0xff] (%p50_p3)  ;;  %v152_v1 = vld [vmem:[%s1082_s25 + $0x8] sm:$0xff] (%p50_p3)  ;;  %s1090_s26 = scalar_lea.vmem (%p50_p3), [#allocation2], %s889_s22 }
  0x10   : > { %v154_v2 = vld [vmem:[%s1082_s25 + $0x40] sm:$0xff] (%p50_p3)  ;;  %v156_v3 = vld [vmem:[%s1082_s25 + $0x48] sm:$0xff] (%p50_p3)  ;;  %151 = vst [vmem:[%s1090_s26] sm:$0xff] (%p50_p3), %v150_v0  ;;  %153 = vst [vmem:[%s1090_s26 + $0x8] sm:$0xff] (%p50_p3), %v152_v1 }
  0x11   : > { %v158_v4 = vld [vmem:[%s1082_s25 + $0x80] sm:$0xff]  ;;  %v160_v5 = vld [vmem:[%s1082_s25 + $0x88] sm:$0xff]  ;;  %155 = vst [vmem:[%s1090_s26 + $0x10] sm:$0xff] %v154_v2  ;;  %157 = vst [vmem:[%s1090_s26 + $0x18] sm:$0xff] %v156_v3 }
  0x12   : > { %159 = vst [vmem:[%s1090_s26 + $0x20] sm:$0xff] %v158_v4  ;;  %161 = vst [vmem:[%s1090_s26 + $0x28] sm:$0xff] %v160_v5  ;;  %v162_v6 = vld [vmem:[%s1082_s25 + $0xc0] sm:$0xff]  ;;  %v164_v7 = vld [vmem:[%s1082_s25 + $0xc8] sm:$0xff] }
  0x13   : > { %v166_v8 = vld [vmem:[%s1082_s25 + $0x100] sm:$0xff]  ;;  %163 = vst [vmem:[%s1090_s26 + $0x30] sm:$0xff] %v162_v6  ;;  %165 = vst [vmem:[%s1090_s26 + $0x38] sm:$0xff] %v164_v7  ;;  %v168_v9 = vld [vmem:[%s1082_s25 + $0x108] sm:$0xff] }
  0x14   : > { %167 = vst [vmem:[%s1090_s26 + $0x40] sm:$0xff] %v166_v8  ;;  %v170_v10 = vld [vmem:[%s1082_s25 + $0x140] sm:$0xff]  ;;  %v172_v11 = vld [vmem:[%s1082_s25 + $0x148] sm:$0xff]  ;;  %169 = vst [vmem:[%s1090_s26 + $0x48] sm:$0xff] %v168_v9 }
  0x15   : > { %171 = vst [vmem:[%s1090_s26 + $0x50] sm:$0xff] %v170_v10  ;;  %173 = vst [vmem:[%s1090_s26 + $0x58] sm:$0xff] %v172_v11  ;;  %v174_v12 = vld [vmem:[%s1082_s25 + $0x180] sm:$0xff]  ;;  %v176_v13 = vld [vmem:[%s1082_s25 + $0x188] sm:$0xff] }
  0x16   : > { %v178_v14 = vld [vmem:[%s1082_s25 + $0x1c0] sm:$0xff]  ;;  %175 = vst [vmem:[%s1090_s26 + $0x60] sm:$0xff] %v174_v12  ;;  %177 = vst [vmem:[%s1090_s26 + $0x68] sm:$0xff] %v176_v13  ;;  %v180_v15 = vld [vmem:[%s1082_s25 + $0x1c8] sm:$0xff] }
  0x17   : > { %179 = vst [vmem:[%s1090_s26 + $0x70] sm:$0xff] %v178_v14  ;;  %v182_v16 = vld [vmem:[%s1082_s25 + $0x200] sm:$0xff]  ;;  %v184_v17 = vld [vmem:[%s1082_s25 + $0x208] sm:$0xff]  ;;  %181 = vst [vmem:[%s1090_s26 + $0x78] sm:$0xff] %v180_v15 }
  0x18   : > { %183 = vst [vmem:[%s1090_s26 + $0x80] sm:$0xff] %v182_v16  ;;  %185 = vst [vmem:[%s1090_s26 + $0x88] sm:$0xff] %v184_v17  ;;  %v186_v18 = vld [vmem:[%s1082_s25 + $0x240] sm:$0xff]  ;;  %v188_v19 = vld [vmem:[%s1082_s25 + $0x248] sm:$0xff] }
  0x19   : > { %v190_v20 = vld [vmem:[%s1082_s25 + $0x280] sm:$0xff]  ;;  %187 = vst [vmem:[%s1090_s26 + $0x90] sm:$0xff] %v186_v18  ;;  %189 = vst [vmem:[%s1090_s26 + $0x98] sm:$0xff] %v188_v19  ;;  %v192_v21 = vld [vmem:[%s1082_s25 + $0x288] sm:$0xff] }
  0x1a   : > { %191 = vst [vmem:[%s1090_s26 + $0xa0] sm:$0xff] %v190_v20  ;;  %v194_v22 = vld [vmem:[%s1082_s25 + $0x2c0] sm:$0xff]  ;;  %v196_v23 = vld [vmem:[%s1082_s25 + $0x2c8] sm:$0xff]  ;;  %193 = vst [vmem:[%s1090_s26 + $0xa8] sm:$0xff] %v192_v21 }
  0x1b   : > { %195 = vst [vmem:[%s1090_s26 + $0xb0] sm:$0xff] %v194_v22  ;;  %197 = vst [vmem:[%s1090_s26 + $0xb8] sm:$0xff] %v196_v23  ;;  %v198_v24 = vld [vmem:[%s1082_s25 + $0x300] sm:$0xff]  ;;  %v200_v25 = vld [vmem:[%s1082_s25 + $0x308] sm:$0xff] }
  0x1c   : > { %v202_v26 = vld [vmem:[%s1082_s25 + $0x340] sm:$0xff]  ;;  %199 = vst [vmem:[%s1090_s26 + $0xc0] sm:$0xff] %v198_v24  ;;  %201 = vst [vmem:[%s1090_s26 + $0xc8] sm:$0xff] %v200_v25  ;;  %v204_v27 = vld [vmem:[%s1082_s25 + $0x348] sm:$0xff] }
  0x1d   : > { %203 = vst [vmem:[%s1090_s26 + $0xd0] sm:$0xff] %v202_v26  ;;  %v206_v28 = vld [vmem:[%s1082_s25 + $0x380] sm:$0xff]  ;;  %v208_v29 = vld [vmem:[%s1082_s25 + $0x388] sm:$0xff]  ;;  %205 = vst [vmem:[%s1090_s26 + $0xd8] sm:$0xff] %v204_v27 }
  0x1e   : > { %207 = vst [vmem:[%s1090_s26 + $0xe0] sm:$0xff] %v206_v28  ;;  %209 = vst [vmem:[%s1090_s26 + $0xe8] sm:$0xff] %v208_v29  ;;  %v210_v30 = vld [vmem:[%s1082_s25 + $0x3c0] sm:$0xff]  ;;  %v212_v31 = vld [vmem:[%s1082_s25 + $0x3c8] sm:$0xff] }
  0x1f   : > { %v214_v32 = vld [vmem:[%s1082_s25 + $0x400] sm:$0xff]  ;;  %211 = vst [vmem:[%s1090_s26 + $0xf0] sm:$0xff] %v210_v30  ;;  %213 = vst [vmem:[%s1090_s26 + $0xf8] sm:$0xff] %v212_v31  ;;  %v216_v33 = vld [vmem:[%s1082_s25 + $0x408] sm:$0xff] }
  0x20   : > { %215 = vst [vmem:[%s1090_s26 + $0x100] sm:$0xff] %v214_v32  ;;  %v218_v34 = vld [vmem:[%s1082_s25 + $0x440] sm:$0xff]  ;;  %v220_v35 = vld [vmem:[%s1082_s25 + $0x448] sm:$0xff]  ;;  %217 = vst [vmem:[%s1090_s26 + $0x108] sm:$0xff] %v216_v33 }
  0x21   : > { %219 = vst [vmem:[%s1090_s26 + $0x110] sm:$0xff] %v218_v34  ;;  %221 = vst [vmem:[%s1090_s26 + $0x118] sm:$0xff] %v220_v35  ;;  %v222_v36 = vld [vmem:[%s1082_s25 + $0x480] sm:$0xff]  ;;  %v224_v37 = vld [vmem:[%s1082_s25 + $0x488] sm:$0xff] }
  0x22   : > { %v226_v38 = vld [vmem:[%s1082_s25 + $0x4c0] sm:$0xff]  ;;  %223 = vst [vmem:[%s1090_s26 + $0x120] sm:$0xff] %v222_v36  ;;  %225 = vst [vmem:[%s1090_s26 + $0x128] sm:$0xff] %v224_v37  ;;  %v228_v39 = vld [vmem:[%s1082_s25 + $0x4c8] sm:$0xff] }
  0x23   : > { %227 = vst [vmem:[%s1090_s26 + $0x130] sm:$0xff] %v226_v38  ;;  %v230_v40 = vld [vmem:[%s1082_s25 + $0x500] sm:$0xff]  ;;  %v232_v41 = vld [vmem:[%s1082_s25 + $0x508] sm:$0xff]  ;;  %229 = vst [vmem:[%s1090_s26 + $0x138] sm:$0xff] %v228_v39 }
  0x24   : > { %231 = vst [vmem:[%s1090_s26 + $0x140] sm:$0xff] %v230_v40  ;;  %233 = vst [vmem:[%s1090_s26 + $0x148] sm:$0xff] %v232_v41  ;;  %v234_v42 = vld [vmem:[%s1082_s25 + $0x540] sm:$0xff]  ;;  %v236_v43 = vld [vmem:[%s1082_s25 + $0x548] sm:$0xff] }
  0x25   : > { %v238_v44 = vld [vmem:[%s1082_s25 + $0x580] sm:$0xff]  ;;  %235 = vst [vmem:[%s1090_s26 + $0x150] sm:$0xff] %v234_v42  ;;  %237 = vst [vmem:[%s1090_s26 + $0x158] sm:$0xff] %v236_v43  ;;  %v240_v45 = vld [vmem:[%s1082_s25 + $0x588] sm:$0xff] }
  0x26   : > { %239 = vst [vmem:[%s1090_s26 + $0x160] sm:$0xff] %v238_v44  ;;  %v242_v46 = vld [vmem:[%s1082_s25 + $0x5c0] sm:$0xff]  ;;  %v244_v47 = vld [vmem:[%s1082_s25 + $0x5c8] sm:$0xff]  ;;  %241 = vst [vmem:[%s1090_s26 + $0x168] sm:$0xff] %v240_v45 }
  0x27   : > { %243 = vst [vmem:[%s1090_s26 + $0x170] sm:$0xff] %v242_v46  ;;  %245 = vst [vmem:[%s1090_s26 + $0x178] sm:$0xff] %v244_v47  ;;  %v246_v48 = vld [vmem:[%s1082_s25 + $0x600] sm:$0xff]  ;;  %v248_v49 = vld [vmem:[%s1082_s25 + $0x608] sm:$0xff] }
  0x28   : > { %v250_v50 = vld [vmem:[%s1082_s25 + $0x640] sm:$0xff]  ;;  %247 = vst [vmem:[%s1090_s26 + $0x180] sm:$0xff] %v246_v48  ;;  %249 = vst [vmem:[%s1090_s26 + $0x188] sm:$0xff] %v248_v49  ;;  %v252_v51 = vld [vmem:[%s1082_s25 + $0x648] sm:$0xff] }
  0x29   : > { %251 = vst [vmem:[%s1090_s26 + $0x190] sm:$0xff] %v250_v50  ;;  %v254_v52 = vld [vmem:[%s1082_s25 + $0x680] sm:$0xff]  ;;  %v256_v53 = vld [vmem:[%s1082_s25 + $0x688] sm:$0xff]  ;;  %253 = vst [vmem:[%s1090_s26 + $0x198] sm:$0xff] %v252_v51 }
  0x2a   : > { %255 = vst [vmem:[%s1090_s26 + $0x1a0] sm:$0xff] %v254_v52  ;;  %257 = vst [vmem:[%s1090_s26 + $0x1a8] sm:$0xff] %v256_v53  ;;  %v258_v54 = vld [vmem:[%s1082_s25 + $0x6c0] sm:$0xff]  ;;  %v260_v55 = vld [vmem:[%s1082_s25 + $0x6c8] sm:$0xff] }
  0x2b   : > { %259 = vst [vmem:[%s1090_s26 + $0x1b0] sm:$0xff] %v258_v54  ;;  %261 = vst [vmem:[%s1090_s26 + $0x1b8] sm:$0xff] %v260_v55 }
  0x2c PF: > { %p823_p5 = scmp.ge.s32.totalorder %s1025_s14, 1  ;;  %p266_p6 = scmp.lt.s32.totalorder %s1025_s14, 5 }
  0x2e   : > { %p267_p7 = pnand %p823_p5, %p266_p6 }
  0x2f   : > { %s273_s27 = sand.u32 (!%p267_p7), 1, %s1017_s12   ;;  %s824_s7 = sshll.u32 (!%p267_p7), %s817_s15, 2 }
  0x30   : > { %270 = sbr.rel (%p267_p7) target bundleno = 314 (0x13a), region = 51  ;;  %p298_p8 = scmp.lt.s32.totalorder (!%p267_p7), %s824_s7, 15 }
  0x31   : > { %s890_s5 = smul.u32 (!%p267_p7), 448, %s273_s27 }
  0x33   : > { %s1211_s6 = scalar_lea.vmem (!%p267_p7), [#allocation2], %s890_s5 }
  0x35   : > { %v1204_v56 = vld [vmem:[%s1286_s0] sm:$0xff]  ;;  %vm653_vm0 = vcmask 785408   ;;  %v1027_v59 = vmov 0   ;;  %v919_v61 = vld [vmem:[%s1211_s6 + $0xec] ss:$16 sps:$4 sm:$0xff]   ;;  %s1294_s7 = smov (!%p298_p8, %s824_s7), 15 }
  0x36   : > { %v361_v57 = vld [vmem:[%s1288_s2] sm:$0xff]  ;;  %v827_v58 = vcombine.high %v1204_v56, %v1204_v56  ;;  %916 = vset.pattern.permute.xlu0 %v1027_v59  ;;  %v922_v63 = vld [vmem:[%s1211_s6 + $0xe8] ss:$16 sps:$4 sm:$0xff]   ;;  %698 = vmatprep.subr.bf16.mxu1 %v919_v61  ;;  %v925_v1 = vld [vmem:[%s1211_s6 + $0xcc] ss:$16 sps:$4 sm:$0xff]   ;;  %v826_v52 = vcombine.low %v1204_v56, %v1204_v56  ;;  %s825_s8 = sshll.u32 %s1294_s7, 3 }
  0x37   : > { %364 = vperm.xlu0 %916, %v361_v57   ;;  %v917_v60 = vld [vmem:[%s1211_s6 + $0xe4] ss:$16 sps:$4 sm:$0xff]   ;;  %v921_v62 = vld [vmem:[%s1211_s6 + $0xe0] ss:$16 sps:$4 sm:$0xff]   ;;  %699 = vmatpush1.bf16.msra.mxu1 %v922_v63  ;;  %v928_v3 = vld [vmem:[%s1211_s6 + $0xc8] ss:$16 sps:$4 sm:$0xff]   ;;  %s301_s11 = scalar_lea.vmem %s1289_s3, %s825_s8 }
  0x38   : > { %884 = vmatprep.mubr.msk.bf16.mxu0 %vm653_vm0, %v827_v58  ;;  %885 = vmatprep.mubr.msk.bf16.mxu1 %vm653_vm0, %v827_v58  ;;  %v923_v0 = vld [vmem:[%s1211_s6 + $0xc4] ss:$16 sps:$4 sm:$0xff]   ;;  %v927_v2 = vld [vmem:[%s1211_s6 + $0xc0] ss:$16 sps:$4 sm:$0xff]   ;;  %v931_v5 = vld [vmem:[%s1211_s6 + $0xac] ss:$16 sps:$4 sm:$0xff]  }
  0x39   : > { %657 = vmatprep.subr.bf16.mxu0 %v917_v60  ;;  %700 = vmatprep.subr.bf16.mxu1 %v925_v1  ;;  %v929_v4 = vld [vmem:[%s1211_s6 + $0xa4] ss:$16 sps:$4 sm:$0xff]   ;;  %v933_v6 = vld [vmem:[%s1211_s6 + $0xa0] ss:$16 sps:$4 sm:$0xff]   ;;  %v934_v7 = vld [vmem:[%s1211_s6 + $0xa8] ss:$16 sps:$4 sm:$0xff]  }
  0x3a   : > { %658 = vmatpush1.bf16.msra.mxu0 %v921_v62  ;;  %v935_v8 = vld [vmem:[%s1211_s6 + $0x84] ss:$16 sps:$4 sm:$0xff]   ;;  %v937_v9 = vld [vmem:[%s1211_s6 + $0x8c] ss:$16 sps:$4 sm:$0xff]   ;;  %v939_v10 = vld [vmem:[%s1211_s6 + $0x80] ss:$16 sps:$4 sm:$0xff]  }
  0x3b   : > { %659 = vmatprep.subr.bf16.mxu0 %v923_v0  ;;  %701 = vmatpush1.bf16.msra.mxu1 %v928_v3  ;;  %v940_v11 = vld [vmem:[%s1211_s6 + $0x88] ss:$16 sps:$4 sm:$0xff]   ;;  %v941_v12 = vld [vmem:[%s1211_s6 + $0x64] ss:$16 sps:$4 sm:$0xff]   ;;  %v943_v13 = vld [vmem:[%s1211_s6 + $0x6c] ss:$16 sps:$4 sm:$0xff]  }
  0x3c   : > { %702 = vmatprep.subr.bf16.mxu1 %v931_v5  ;;  %v945_v14 = vld [vmem:[%s1211_s6 + $0x60] ss:$16 sps:$4 sm:$0xff]   ;;  %v946_v15 = vld [vmem:[%s1211_s6 + $0x68] ss:$16 sps:$4 sm:$0xff]   ;;  %v947_v16 = vld [vmem:[%s1211_s6 + $0x44] ss:$16 sps:$4 sm:$0xff]  }
  0x3d   : > { %v949_v17 = vld [vmem:[%s1211_s6 + $0x4c] ss:$16 sps:$4 sm:$0xff]   ;;  %v951_v18 = vld [vmem:[%s1211_s6 + $0x40] ss:$16 sps:$4 sm:$0xff]   ;;  %v952_v19 = vld [vmem:[%s1211_s6 + $0x48] ss:$16 sps:$4 sm:$0xff]  }
  0x3e   : > { %660 = vmatpush1.bf16.msra.mxu0 %v927_v2  ;;  %v953_v20 = vld [vmem:[%s1211_s6 + $0x24] ss:$16 sps:$4 sm:$0xff]   ;;  %v955_v21 = vld [vmem:[%s1211_s6 + $0x2c] ss:$16 sps:$4 sm:$0xff]   ;;  %v957_v22 = vld [vmem:[%s1211_s6 + $0x20] ss:$16 sps:$4 sm:$0xff]  }
  0x3f   : > { %661 = vmatprep.subr.bf16.mxu0 %v929_v4  ;;  %703 = vmatpush1.bf16.msra.mxu1 %v934_v7  ;;  %v958_v23 = vld [vmem:[%s1211_s6 + $0x28] ss:$16 sps:$4 sm:$0xff]   ;;  %v959_v24 = vld [vmem:[%s1211_s6 + $0x4] ss:$16 sps:$4 sm:$0xff]   ;;  %v961_v25 = vld [vmem:[%s1211_s6 + $0xc] ss:$16 sps:$4 sm:$0xff]  }
  0x40   : > { %704 = vmatprep.subr.bf16.mxu1 %v937_v9  ;;  %v963_v26 = vld [vmem:[%s1211_s6] ss:$16 sps:$4 sm:$0xff]   ;;  %v964_v27 = vld [vmem:[%s1211_s6 + $0x8] ss:$16 sps:$4 sm:$0xff]   ;;  %v965_v28 = vld [vmem:[%s1211_s6 + $0x1a4] ss:$16 sps:$4 sm:$0xff]  }
  0x41   : > { %v967_v29 = vld [vmem:[%s1211_s6 + $0x1ac] ss:$16 sps:$4 sm:$0xff]   ;;  %v969_v30 = vld [vmem:[%s1211_s6 + $0x1a0] ss:$16 sps:$4 sm:$0xff]   ;;  %v970_v31 = vld [vmem:[%s1211_s6 + $0x1a8] ss:$16 sps:$4 sm:$0xff]  }
  0x42   : > { %662 = vmatpush1.bf16.msra.mxu0 %v933_v6  ;;  %v971_v32 = vld [vmem:[%s1211_s6 + $0x184] ss:$16 sps:$4 sm:$0xff]   ;;  %v973_v33 = vld [vmem:[%s1211_s6 + $0x18c] ss:$16 sps:$4 sm:$0xff]   ;;  %v975_v34 = vld [vmem:[%s1211_s6 + $0x180] ss:$16 sps:$4 sm:$0xff]  }
  0x43   : > { %663 = vmatprep.subr.bf16.mxu0 %v935_v8  ;;  %705 = vmatpush1.bf16.msra.mxu1 %v940_v11  ;;  %v976_v35 = vld [vmem:[%s1211_s6 + $0x188] ss:$16 sps:$4 sm:$0xff]   ;;  %v977_v36 = vld [vmem:[%s1211_s6 + $0x164] ss:$16 sps:$4 sm:$0xff]   ;;  %v979_v37 = vld [vmem:[%s1211_s6 + $0x16c] ss:$16 sps:$4 sm:$0xff]  }
  0x44   : > { %706 = vmatprep.subr.bf16.mxu1 %v943_v13  ;;  %v981_v38 = vld [vmem:[%s1211_s6 + $0x160] ss:$16 sps:$4 sm:$0xff]   ;;  %v982_v39 = vld [vmem:[%s1211_s6 + $0x168] ss:$16 sps:$4 sm:$0xff]   ;;  %v983_v40 = vld [vmem:[%s1211_s6 + $0x144] ss:$16 sps:$4 sm:$0xff]  }
  0x45   : > { %v985_v41 = vld [vmem:[%s1211_s6 + $0x14c] ss:$16 sps:$4 sm:$0xff]   ;;  %v987_v42 = vld [vmem:[%s1211_s6 + $0x140] ss:$16 sps:$4 sm:$0xff]   ;;  %v988_v43 = vld [vmem:[%s1211_s6 + $0x148] ss:$16 sps:$4 sm:$0xff]  }
  0x46   : > { %664 = vmatpush1.bf16.msra.mxu0 %v939_v10  ;;  %v989_v44 = vld [vmem:[%s1211_s6 + $0x124] ss:$16 sps:$4 sm:$0xff]   ;;  %v991_v45 = vld [vmem:[%s1211_s6 + $0x12c] ss:$16 sps:$4 sm:$0xff]   ;;  %v993_v46 = vld [vmem:[%s1211_s6 + $0x120] ss:$16 sps:$4 sm:$0xff]  }
  0x47   : > { %665 = vmatprep.subr.bf16.mxu0 %v941_v12  ;;  %707 = vmatpush1.bf16.msra.mxu1 %v946_v15  ;;  %v994_v47 = vld [vmem:[%s1211_s6 + $0x128] ss:$16 sps:$4 sm:$0xff]   ;;  %v995_v48 = vld [vmem:[%s1211_s6 + $0x104] ss:$16 sps:$4 sm:$0xff]   ;;  %v997_v49 = vld [vmem:[%s1211_s6 + $0x10c] ss:$16 sps:$4 sm:$0xff]  }
  0x48   : > { %708 = vmatprep.subr.bf16.mxu1 %v949_v17  ;;  %v999_v50 = vld [vmem:[%s1211_s6 + $0x100] ss:$16 sps:$4 sm:$0xff]   ;;  %v1000_v51 = vld [vmem:[%s1211_s6 + $0x108] ss:$16 sps:$4 sm:$0xff]  }
  0x4a   : > { %666 = vmatpush1.bf16.msra.mxu0 %v945_v14 }
  0x4b   : > { %667 = vmatprep.subr.bf16.mxu0 %v947_v16  ;;  %709 = vmatpush1.bf16.msra.mxu1 %v952_v19 }
  0x4c   : > { %710 = vmatprep.subr.bf16.mxu1 %v955_v21 }
  0x4e   : > { %668 = vmatpush1.bf16.msra.mxu0 %v951_v18 }
  0x4f   : > { %669 = vmatprep.subr.bf16.mxu0 %v953_v20  ;;  %711 = vmatpush1.bf16.msra.mxu1 %v958_v23 }
  0x50   : > { %712 = vmatprep.subr.bf16.mxu1 %v961_v25 }
  0x52   : > { %670 = vmatpush1.bf16.msra.mxu0 %v957_v22 }
  0x53   : > { %671 = vmatprep.subr.bf16.mxu0 %v959_v24  ;;  %713 = vmatpush1.bf16.msra.mxu1 %v964_v27 }
  0x54   : > { %718 = vmatprep.subr.bf16.mxu1 %v967_v29 }
  0x56   : > { %672 = vmatpush1.bf16.msra.mxu0 %v963_v26 }
  0x57   : > { %677 = vmatprep.subr.bf16.mxu0 %v965_v28  ;;  %719 = vmatpush2.bf16.msra.mxu1 %v970_v31 }
  0x58   : > { %720 = vmatprep.subr.bf16.mxu1 %v973_v33 }
  0x5a   : > { %678 = vmatpush2.bf16.msra.mxu0 %v969_v30 }
  0x5b   : > { %679 = vmatprep.subr.bf16.mxu0 %v971_v32  ;;  %721 = vmatpush2.bf16.msra.mxu1 %v976_v35 }
  0x5c   : > { %722 = vmatprep.subr.bf16.mxu1 %v979_v37 }
  0x5e   : > { %680 = vmatpush2.bf16.msra.mxu0 %v975_v34 }
  0x5f   : > { %681 = vmatprep.subr.bf16.mxu0 %v977_v36  ;;  %723 = vmatpush2.bf16.msra.mxu1 %v982_v39 }
  0x60   : > { %724 = vmatprep.subr.bf16.mxu1 %v985_v41 }
  0x62   : > { %682 = vmatpush2.bf16.msra.mxu0 %v981_v38 }
  0x63   : > { %683 = vmatprep.subr.bf16.mxu0 %v983_v40  ;;  %725 = vmatpush2.bf16.msra.mxu1 %v988_v43 }
  0x64   : > { %726 = vmatprep.subr.bf16.mxu1 %v991_v45 }
  0x66   : > { %684 = vmatpush2.bf16.msra.mxu0 %v987_v42 }
  0x67   : > { %685 = vmatprep.subr.bf16.mxu0 %v989_v44  ;;  %727 = vmatpush2.bf16.msra.mxu1 %v994_v47 }
  0x68   : > { %728 = vmatprep.subr.bf16.mxu1 %v997_v49 }
  0x6a   : > { %686 = vmatpush2.bf16.msra.mxu0 %v993_v46 }
  0x6b   : > { %687 = vmatprep.subr.bf16.mxu0 %v995_v48  ;;  %729 = vmatpush2.bf16.msra.mxu1 %v1000_v51 }
  0x6e   : > { %688 = vmatpush2.bf16.msra.mxu0 %v999_v50  ;;  %731 = vmatmul.mubr.bf16.vlgmr.msra.gmra.mxu1 %v826_v52 }
  0x71   : > { %690 = vmatmul.mubr.bf16.vlgmr.msra.gmra.mxu0 %v826_v52 }
  0xb2   : > { %v365_v53 = vpop.permute.xlu0 %364 }
 0x12e   : > { %v732_v55 = vpop.f32.mrf.mxu1 }
 0x12f   : > { %v733_v58 = vadd.f32 %v732_v55, %v365_v53 }
 0x130   : > { %v734_v60 = vpop.f32.mrf.mxu1 }
 0x131   : > { %v691_v54 = vpop.f32.mrf.mxu0  ;;  %vm741_vm2 = vcmp.ge.f32.partialorder %v733_v58, 0.0  ;;  %v745_v61 = vmul.f32 0.01, %v733_v58  ;;  %v735_v63 = vadd.f32 %v734_v60, %v365_v53 }
 0x132   : > { %v692_v57 = vadd.f32 %v691_v54, %v365_v53  ;;  %v736_v1 = vpop.f32.mrf.mxu1 }
 0x133   : > { %v693_v59 = vpop.f32.mrf.mxu0  ;;  %v749_v3 = vsel %vm741_vm2, %v733_v58, %v745_v61  ;;  %vm742_vm4 = vcmp.ge.f32.partialorder %v735_v63, 0.0  ;;  %v746_v5 = vmul.f32 0.01, %v735_v63 }
 0x134   : > { %vm739_vm1 = vcmp.ge.f32.partialorder %v692_v57, 0.0  ;;  %v743_v56 = vmul.f32 0.01, %v692_v57  ;;  %v694_v62 = vadd.f32 %v693_v59, %v365_v53  ;;  %753 = vst [vmem:[%s301_s11 + $0x10] sm:$0xff] %v749_v3  ;;  %v737_v7 = vpop.f32.mrf.mxu1 }
 0x135   : > { %v695_v0 = vpop.f32.mrf.mxu0  ;;  %v750_v9 = vsel %vm742_vm4, %v735_v63, %v746_v5 }
 0x136   : > { %v747_v2 = vsel %vm739_vm1, %v692_v57, %v743_v56  ;;  %vm740_vm3 = vcmp.ge.f32.partialorder %v694_v62, 0.0  ;;  %v744_v4 = vmul.f32 0.01, %v694_v62  ;;  %754 = vst [vmem:[%s301_s11 + $0x18] sm:$0xff] %v750_v9 }
 0x137   : > { %751 = vst [vmem:[%s301_s11] sm:$0xff] %v747_v2  ;;  %v696_v6 = vpop.f32.mrf.mxu0 }
 0x138   : > { %v748_v8 = vsel %vm740_vm3, %v694_v62, %v744_v4 }
 0x139   : > { %752 = vst [vmem:[%s301_s11 + $0x8] sm:$0xff] %v748_v8 }
 0x13a PF: > { %p10_p9 = scmp.ge.s32.totalorder %s1065_s16, 6   ;;  %s1290_s12 = smov %s1021_s13 }
 0x13b   : > { %s1291_s13 = smov %s1074_s19  ;;  %s1292_s14 = smov %s1065_s16 }
 0x13c   :  { %12 = sbr.rel (!%p10_p9) target bundleno = 2 (0x2), region = 90 }

// kernel: _forward_arrays.25
= control target key start
LH: loop header
LB: loop body
LE: loop exit
PB: predicated region body
PF: predicated region fallthrough
CT: control target
= control target key end

     0   :  { %s480_s12 = smov 0   ;;  %s482_s13 = smov 0   ;;  %s538_s0 = inlined_call_operand.vmem [shape: bf16[8,16], index: 0, kind: input, shape index: {}]   ;;  %s539_s1 = inlined_call_operand.vmem [shape: bf16[16,2048], index: 1, kind: input, shape index: {}]   ;;  %s540_s2 = inlined_call_operand.vmem [shape: f32[8,1], index: 2, kind: input, shape index: {}]   ;;  %s541_s3 = inlined_call_operand.vmem [shape: f32[8,2048], index: 3, kind: output, shape index: {}]  }
   0x1   :  { %s484_s14 = smov 0  }
   0x2 LB: > { %s383_s15 = sadd.s32 4294967295, %s457_s14   ;;  %s497_s16 = sadd.s32 1, %s457_s14   ;;  %s457_s14 = sphi %s484_s14, %s544_s14   ;;  %s453_s13 = sphi %s482_s13, %s543_s13   ;;  %s449_s12 = sphi %s480_s12, %s542_s12  }
   0x3   : > { %s38_s17 = ssub.s32 %s457_s14, %s497_s16  ;;  %s41_s18 = sadd.s32 1, %s453_s13 }
   0x4   : > { %p39_p0 = scmp.eq.s32.totalorder %s38_s17, 0  ;;  %p48_p1 = scmp.ne.s32.totalorder %s453_s13, %s449_s12 }
   0x5   : > { %p49_p2 = scmp.eq.s32.totalorder %s457_s14, 0  ;;  %p386_p4 = scmp.ge.s32.totalorder %s457_s14, 4 }
   0x6   : > { %s506_s19 = scalar_select %p39_p0, %s453_s13, %s41_s18  }
   0x7   : > { %p50_p3 = por %p49_p2, %p48_p1  ;;  %127 = sbr.rel (%p386_p4) target bundleno = 18 (0x12), region = 24 }
   0xc   : > { %130 = sbr.rel (!%p50_p3) target bundleno = 18 (0x12), region = 28  ;;  %s132_s20 = sand.u32 (%p50_p3), 1, %s453_s13  }
   0xd   : > { %s402_s21 = sshll.u32 (%p50_p3), %s457_s14, 4  ;;  %s387_s22 = sshll.u32 (%p50_p3), %s132_s20, 5 }
   0xe   : > { %s137_s25 = scalar_lea.vmem (%p50_p3), %s539_s1, %s402_s21  ;;  %s134_s26 = scalar_lea.vmem (%p50_p3), [#allocation2], %s387_s22 }
   0xf   : > { %v150_v0 = vld [vmem:[%s137_s25] sm:$0xff] (%p50_p3)  ;;  %v152_v1 = vld [vmem:[%s137_s25 + $0x8] sm:$0xff] (%p50_p3) }
  0x10   : > { %v154_v2 = vld [vmem:[%s137_s25 + $0x40] sm:$0xff] (%p50_p3)  ;;  %151 = vst [vmem:[%s134_s26] sm:$0xff] (%p50_p3), %v150_v0  ;;  %153 = vst [vmem:[%s134_s26 + $0x8] sm:$0xff] (%p50_p3), %v152_v1  ;;  %v156_v3 = vld [vmem:[%s137_s25 + $0x48] sm:$0xff] (%p50_p3) }
  0x11   : > { %155 = vst [vmem:[%s134_s26 + $0x10] sm:$0xff] %v154_v2  ;;  %157 = vst [vmem:[%s134_s26 + $0x18] sm:$0xff] %v156_v3 }
  0x12 PF: > { %p390_p5 = scmp.ge.s32.totalorder %s457_s14, 1  ;;  %p162_p6 = scmp.lt.s32.totalorder %s457_s14, 5 }
  0x14   : > { %p163_p7 = pnand %p390_p5, %p162_p6 }
  0x15   : > { %s169_s27 = sand.u32 (!%p163_p7), 1, %s449_s12   ;;  %s392_s7 = sshll.u32 (!%p163_p7), %s383_s15, 2 }
  0x16   : > { %166 = sbr.rel (%p163_p7) target bundleno = 233 (0xe9), region = 51  ;;  %s391_s30 = sshll.u32 (!%p163_p7), %s169_s27, 5 }
  0x17   : > { %s171_s4 = scalar_lea.vmem (!%p163_p7), [#allocation2], %s391_s30  ;;  %p194_p8 = scmp.lt.s32.totalorder (!%p163_p7), %s392_s7, 15 }
  0x1b   : > { %v205_v4 = vld [vmem:[%s540_s2] sm:$0xff]  ;;  %v459_v5 = vmov 0   ;;  %v431_v7 = vld [vmem:[%s171_s4 + $0xc] ss:$16 sps:$4 sm:$0xff]   ;;  %v434_v9 = vld [vmem:[%s171_s4 + $0x8] ss:$16 sps:$4 sm:$0xff]  }
  0x1c   : > { %267 = vmatprep.mubr.bf16.mxu0 %v459_v5  ;;  %308 = vmatprep.mubr.bf16.mxu1 %v459_v5  ;;  %v429_v6 = vld [vmem:[%s171_s4 + $0x4] ss:$16 sps:$4 sm:$0xff]   ;;  %v433_v8 = vld [vmem:[%s171_s4] ss:$16 sps:$4 sm:$0xff]   ;;  %vm231_vm0 = vcmask 130048   ;;  %s546_s7 = smov (!%p194_p8, %s392_s7), 15 }
  0x1d   : > { %428 = vset.pattern.permute.xlu0 %v459_v5  ;;  %249 = vmatprep.subr.bf16.mxu0 %v429_v6  ;;  %v200_v10 = vld [vmem:[%s538_s0] sm:$0xf]  ;;  %s393_s8 = sshll.u32 %s546_s7, 3 }
  0x1e   : > { %208 = vperm.xlu0 %428, %v205_v4   ;;  %290 = vmatprep.subr.bf16.mxu1 %v431_v7  ;;  %s197_s11 = scalar_lea.vmem %s541_s3, %s393_s8 }
  0x1f   : > { %250 = vmatpush1.bf16.msra.mxu0 %v433_v8  ;;  %291 = vmatpush1.bf16.msra.mxu1 %v434_v9 }
  0x22   : > { %398 = vmatmul.mubr.msk.bf16.vlgmr.msra.gmra.mxu0 %vm231_vm0, %v200_v10  ;;  %399 = vmatmul.mubr.msk.bf16.vlgmr.msra.gmra.mxu1 %vm231_vm0, %v200_v10 }
  0x99   : > { %v209_v11 = vpop.permute.xlu0 %208 }
  0xe2   : > { %v269_v12 = vpop.f32.mrf.mxu0  ;;  %v310_v13 = vpop.f32.mrf.mxu1 }
  0xe3   : > { %v270_v14 = vadd.f32 %v269_v12, %v209_v11  ;;  %v311_v15 = vadd.f32 %v310_v13, %v209_v11 }
  0xe4   : > { %v271_v16 = vpop.f32.mrf.mxu0  ;;  %v312_v17 = vpop.f32.mrf.mxu1 }
  0xe5   : > { %317 = vst [vmem:[%s197_s11] sm:$0xff] %v270_v14  ;;  %319 = vst [vmem:[%s197_s11 + $0x10] sm:$0xff] %v311_v15  ;;  %v272_v18 = vadd.f32 %v271_v16, %v209_v11  ;;  %v313_v19 = vadd.f32 %v312_v17, %v209_v11 }
  0xe6   : > { %v273_v20 = vpop.f32.mrf.mxu0  ;;  %v314_v21 = vpop.f32.mrf.mxu1 }
  0xe7   : > { %318 = vst [vmem:[%s197_s11 + $0x8] sm:$0xff] %v272_v18  ;;  %320 = vst [vmem:[%s197_s11 + $0x18] sm:$0xff] %v313_v19 }
  0xe8   : > { %v274_v22 = vpop.f32.mrf.mxu0  ;;  %v315_v23 = vpop.f32.mrf.mxu1 }
  0xe9 PF: > { %p10_p9 = scmp.ge.s32.totalorder %s497_s16, 6   ;;  %s542_s12 = smov %s453_s13 }
  0xea   : > { %s543_s13 = smov %s506_s19  ;;  %s544_s14 = smov %s497_s16 }
  0xeb   :  { %12 = sbr.rel (!%p10_p9) target bundleno = 2 (0x2), region = 90 }

// kernel: _forward_arrays.15
= control target key start
LH: loop header
LB: loop body
LE: loop exit
PB: predicated region body
PF: predicated region fallthrough
CT: control target
= control target key end

     0   :  { %s89_s0 = inlined_call_operand.<no memory space> [shape: s32[1], index: 0, kind: input, shape index: {}]   ;;  %s90_s1 = inlined_call_operand.vmem [shape: f32[16,128], index: 1, kind: input, shape index: {}]   ;;  %s91_s2 = inlined_call_operand.vmem [shape: f32[16,128], index: 2, kind: input, shape index: {}]   ;;  %s92_s3 = inlined_call_operand.vmem [shape: f32[16,128], index: 3, kind: output, shape index: {}]  }
   0x1   :  { %v15_v0 = vld [vmem:[%s90_s1] sm:$0xff]  ;;  %p22_p0 = scmp.ne.s32.totalorder %s89_s0, 0  ;;  %v16_v1 = vld [vmem:[%s90_s1 + $0x8] sm:$0xff] }
   0x2   :  { %vm17_vm0 = vcmp.eq.f32.partialorder %v15_v0, 254.0  ;;  %vm18_vm1 = vcmp.eq.f32.partialorder %v16_v1, 254.0  ;;  %v32_v4 = vld [vmem:[%s91_s2] sm:$0xff]  ;;  %v33_v6 = vld [vmem:[%s91_s2 + $0x8] sm:$0xff] }
   0x3   :  { %v19_v2 = vsel %vm17_vm0, 255.0, %v15_v0  ;;  %s25_s18 = scalar_select %p22_p0, 1, 0  ;;  %v20_v3 = vsel %vm18_vm1, 255.0, %v16_v1  ;;  %vm34_vm6 = vcmp.eq.f32.partialorder %v32_v4, 0.0  ;;  %vm35_vm8 = vcmp.eq.f32.partialorder %v33_v6, 0.0 }
   0x4   :  { %vm23_vm2 = vcmp.eq.f32.partialorder %v19_v2, 253.0  ;;  %vm24_vm3 = vcmp.eq.f32.partialorder %v20_v3, 253.0 }
   0x5   :  { %v26_v5 = vstv %s25_s18 }
   0x6   :  { %vm27_vm4 = vcmp.eq.s32.totalorder %v26_v5, 1 }
   0x7   :  { %vm28_vm5 = vmand %vm27_vm4, %vm23_vm2 }
   0x8   :  { %v30_v7 = vsel %vm28_vm5, 255.0, %v19_v2  ;;  %vm29_vm7 = vmand %vm27_vm4, %vm24_vm3 }
   0x9   :  { %vm36_vm9 = vcmp.eq.f32.partialorder %v30_v7, 1.0  ;;  %v31_v8 = vsel %vm29_vm7, 255.0, %v20_v3 }
   0xa   :  { %vm38_vm10 = vmand %vm34_vm6, %vm36_vm9  ;;  %vm37_vm11 = vcmp.eq.f32.partialorder %v31_v8, 1.0 }
   0xb   :  { %v40_v9 = vsel %vm38_vm10, 255.0, %v30_v7  ;;  %vm39_vm12 = vmand %vm35_vm8, %vm37_vm11 }
   0xc   :  { %42 = vst [vmem:[%s92_s3] sm:$0xff] %v40_v9  ;;  %v41_v10 = vsel %vm39_vm12, 255.0, %v31_v8 }
   0xd   :  { %43 = vst [vmem:[%s92_s3 + $0x8] sm:$0xff] %v41_v10 }

</bundles_post_ra>
